<compile_context>
chip_gen: v5e
topology: v5e:2x2
jax: 0.10.0
libtpu: 0.0.40
codegen_flags: <defaults>
</compile_context>

<pallas_src>
import math

import jax
import jax.numpy as jnp
from jax.experimental import pallas as pl
from jax.experimental.pallas import tpu as pltpu


def _cell(gates, c, H):
    """LSTM cell activations. Gate blocks are pre-permuted (in the wrapper) from
    PyTorch's (i, f, g, o) order to (i, f, o, g), so one sigmoid covers gates[:, :3H]
    and one tanh covers gates[:, 3H:]."""
    sig = jax.nn.sigmoid(gates[:, :3 * H])      # i | f | o   (1 EUP op)
    i = sig[:, 0 * H:1 * H]
    f = sig[:, 1 * H:2 * H]
    o = sig[:, 2 * H:3 * H]
    g = jnp.tanh(gates[:, 3 * H:4 * H])         # g           (1 EUP op)
    c_new = f * c + i * g
    h_new = o * jnp.tanh(c_new)
    return h_new, c_new


def make_kernel(L, T, B, D, H):
    def kernel(*refs):
        it = iter(refs)
        x_ref = next(it)                        # (T*B, D)  f32   time-major, flattened
        len_ref = next(it)                      # (B, 1)    int32
        tf_ref = next(it)                       # (T*B, 4H) f32   teacher-forcing mask

        def read_lstm():
            wih0 = next(it)[...]                                   # (in, 4H) bf16
            whh0 = next(it)[...]                                   # (H, 4H)  bf16
            b0 = next(it)[...]                                     # (1, 4H)  f32
            hi = []
            for _ in range(L - 1):
                wf = next(it)[...]                                 # (2H, 4H) bf16
                b = jnp.broadcast_to(next(it)[...], (B, 4 * H))    # (B, 4H)  f32
                hi.append((wf, b))
            return wih0, whh0, b0, hi

        wih0_e, whh0_e, b0_e, enc_hi = read_lstm()
        wih0_d, whh0_d, b0_d, dec_hi = read_lstm()
        wp = next(it)[...]                                         # (H, 4H) bf16 folded
        bp = jnp.broadcast_to(next(it)[...], (B, 4 * H))           # (B, 4H) f32  folded
        wout = next(it)[...]                                       # (H, D)  f32
        bout = jnp.broadcast_to(next(it)[...], (B, D))             # (B, D)  f32
        out_ref = next(it)                                         # (T, B, D) f32
        enc_out_ref = next(it)                                     # (T, B, H) f32

        # ---------------- hoisted, once-per-call work ----------------
        x2d = x_ref[...].astype(jnp.bfloat16)                      # (T*B, D)
        lens = jnp.broadcast_to(len_ref[...], (B, H))              # (B, H) int32
        tf_mask = tf_ref[...]                                      # (T*B, 4H)

        # Layer-0 input projections for all timesteps (one tall matmul each, layer-0
        # bias folded in).  These feed the recurrence but sit off its critical path.
        xg_e = jnp.dot(x2d, wih0_e, preferred_element_type=jnp.float32) + b0_e
        xg_d = jnp.dot(x2d, wih0_d, preferred_element_type=jnp.float32) + b0_d

        h = [jnp.zeros((B, H), jnp.float32) for _ in range(L)]
        c = [jnp.zeros((B, H), jnp.float32) for _ in range(L)]

        # ---------------- Encoder (packed-sequence semantics), fully unrolled --------
        for t in range(T):
            valid_t = lens > t                                     # (B, H) bool
            gates = xg_e[t * B:(t + 1) * B] + jnp.dot(
                h[0].astype(jnp.bfloat16), whh0_e,
                preferred_element_type=jnp.float32)
            hn, cn = _cell(gates, c[0], H)
            h[0] = jnp.where(valid_t, hn, h[0])                    # hold state past length
            c[0] = jnp.where(valid_t, cn, c[0])
            for l in range(1, L):
                wf, b = enc_hi[l - 1]
                z = jnp.concatenate([h[l - 1], h[l]], axis=1).astype(jnp.bfloat16)
                gates = jnp.dot(z, wf, preferred_element_type=jnp.float32) + b
                hn, cn = _cell(gates, c[l], H)
                h[l] = jnp.where(valid_t, hn, h[l])
                c[l] = jnp.where(valid_t, cn, c[l])
            # pad_packed_sequence zero-pads past each length; per-step store (off-chain)
            enc_out_ref[t] = jnp.where(valid_t, h[L - 1], 0.0)

        # ---------------- Decoder with teacher forcing, fully unrolled ----------------
        for t in range(T):
            if t == 0:
                g0x = xg_d[(T - 1) * B:T * B]                      # decoder_input = x[:, -1, :]
            else:
                # Decision made after producing outputs[:, t-1]:
                #   next input = x[:, t-1, :] if tf[t-1] else dec_out_{t-1}.
                # Non-TF branch is folded through wih0_dec:
                #   dec_out @ wih0_dec + b0_dec == h_top @ wp + bp.
                fb = jnp.dot(h[L - 1].astype(jnp.bfloat16), wp,
                             preferred_element_type=jnp.float32) + bp
                g0x = jnp.where(tf_mask[(t - 1) * B:t * B] > 0.5,
                                xg_d[(t - 1) * B:t * B], fb)
            gates = g0x + jnp.dot(h[0].astype(jnp.bfloat16), whh0_d,
                                  preferred_element_type=jnp.float32)
            h[0], c[0] = _cell(gates, c[0], H)
            for l in range(1, L):
                wf, b = dec_hi[l - 1]
                z = jnp.concatenate([h[l - 1], h[l]], axis=1).astype(jnp.bfloat16)
                gates = jnp.dot(z, wf, preferred_element_type=jnp.float32) + b
                h[l], c[l] = _cell(gates, c[l], H)
            # Real output projection only feeds the store; off the recurrent chain.
            out_ref[t] = (jnp.dot(h[L - 1], wout,
                                  preferred_element_type=jnp.float32) + bout)

    return kernel


def _ifgo_to_ifog(w, axis):
    """Permute PyTorch gate blocks (i, f, g, o) -> (i, f, o, g) along `axis`."""
    i, f, g, o = jnp.split(w, 4, axis=axis)
    return jnp.concatenate([i, f, o, g], axis=axis)


def _prep_lstm(layers, H):
    """PyTorch-layout -> kernel layout: gate-permute, transpose, combine biases,
    and fuse [wih_t; whh_t] for layers >= 1.  Kept in f32 here; cast to bf16 when
    flattened into the kernel inputs."""
    out = []
    for l, p in enumerate(layers):
        wih_t = jnp.transpose(_ifgo_to_ifog(p["wih"], 0)).astype(jnp.float32)  # (in, 4H)
        whh_t = jnp.transpose(_ifgo_to_ifog(p["whh"], 0)).astype(jnp.float32)  # (H, 4H)
        b = _ifgo_to_ifog(p["bih"] + p["bhh"], 0).reshape(1, 4 * H).astype(jnp.float32)
        if l == 0:
            out.append(dict(wih_t=wih_t, whh_t=whh_t, b=b))
        else:
            out.append(dict(wf=jnp.concatenate([wih_t, whh_t], axis=0), b=b))   # (2H, 4H)
    return out


def lstm_tf_autoencoder(x, lengths, tf_mask, params, num_layers, hidden_dim):
    """x: (B, T, D) f32, lengths: (B,) int32 (max == T), tf_mask: (T,) 0/1.
    params: PyTorch-layout weights (see init_params). Returns (outputs, encoder_out)."""
    B, T, D = x.shape
    H, L = hidden_dim, num_layers

    # pad_packed_sequence pads to max(lengths); the kernel assumes that equals T.
    try:
        max_len = int(jnp.max(lengths))
    except jax.errors.ConcretizationTypeError:
        max_len = None
    if max_len is not None:
        assert max_len == T, "kernel assumes max(lengths) == seq_len (pad/pack semantics)"

    enc = _prep_lstm(params["encoder"], H)
    dec = _prep_lstm(params["decoder"], H)
    wout_t = jnp.transpose(params["wout"]).astype(jnp.float32)          # (H, D)
    bout = params["bout"].reshape(1, D).astype(jnp.float32)             # (1, D)

    # Fold the decoder output projection through the decoder layer-0 input weights
    # (weight-only transform, done once): dec_out @ wih0_dec + b0_dec == h_top@wp + bp.
    wih0_dec_t = dec[0]["wih_t"]                                        # (D, 4H) f32
    wp = jnp.dot(wout_t, wih0_dec_t).astype(jnp.bfloat16)               # (H, 4H)
    bp = (jnp.dot(bout, wih0_dec_t) + dec[0]["b"]).astype(jnp.float32)  # (1, 4H)

    x2d = jnp.transpose(x, (1, 0, 2)).reshape(T * B, D).astype(jnp.float32)
    lengths2d = lengths.reshape(B, 1).astype(jnp.int32)
    tf_full = jnp.broadcast_to(
        tf_mask.astype(jnp.float32).reshape(T, 1, 1), (T, B, 4 * H)
    ).reshape(T * B, 4 * H)

    flat_inputs = [x2d, lengths2d, tf_full]
    for lstm in (enc, dec):
        l0 = lstm[0]
        flat_inputs += [l0["wih_t"].astype(jnp.bfloat16),
                        l0["whh_t"].astype(jnp.bfloat16),
                        l0["b"]]
        for lyr in lstm[1:]:
            flat_inputs += [lyr["wf"].astype(jnp.bfloat16), lyr["b"]]
    flat_inputs += [wp, bp, wout_t, bout]

    vmem = pl.BlockSpec(memory_space=pltpu.MemorySpace.VMEM)
    out_shapes = (
        jax.ShapeDtypeStruct((T, B, D), jnp.float32),   # decoder outputs (time-major)
        jax.ShapeDtypeStruct((T, B, H), jnp.float32),   # encoder_out (time-major)
    )

    outputs_tm, enc_out_tm = pl.pallas_call(
        make_kernel(L, T, B, D, H),
        out_shape=out_shapes,
        in_specs=[vmem] * len(flat_inputs),
        out_specs=(vmem, vmem),
    )(*flat_inputs)

    outputs = jnp.transpose(outputs_tm, (1, 0, 2))       # (B, T, D) batch-first
    encoder_out = jnp.transpose(enc_out_tm, (1, 0, 2))   # (B, T, H) batch-first
    return outputs, encoder_out


def init_params(key, D, H, L):
    """Deterministic PyTorch-style uniform(-1/sqrt(H), 1/sqrt(H)) init, in the exact
    PyTorch layout (gate order i,f,g,o; wih:(4H,in), whh:(4H,H), wout:(D,H))."""
    kscale = 1.0 / math.sqrt(H)
    params = {}
    for which in ("encoder", "decoder"):
        layers = []
        for l in range(L):
            in_dim = D if l == 0 else H
            key, k1, k2, k3, k4 = jax.random.split(key, 5)
            layers.append({
                "wih": jax.random.uniform(k1, (4 * H, in_dim), jnp.float32, -kscale, kscale),
                "whh": jax.random.uniform(k2, (4 * H, H), jnp.float32, -kscale, kscale),
                "bih": jax.random.uniform(k3, (4 * H,), jnp.float32, -kscale, kscale),
                "bhh": jax.random.uniform(k4, (4 * H,), jnp.float32, -kscale, kscale),
            })
        params[which] = layers
    key, k1, k2 = jax.random.split(key, 3)
    params["wout"] = jax.random.uniform(k1, (D, H), jnp.float32, -kscale, kscale)
    params["bout"] = jax.random.uniform(k2, (D,), jnp.float32, -kscale, kscale)
    return params


if __name__ == "__main__":
    B, T, D, H, L = 4, 8, 8, 32, 2      # batch, seq_len, input_dim, hidden_dim, num_layers
    key = jax.random.PRNGKey(0)
    kx, kp, ktf = jax.random.split(key, 3)

    x = jax.random.normal(kx, (B, T, D), jnp.float32)
    lengths = jnp.array([T, 5, T, 3], dtype=jnp.int32)       # max == T
    # deterministic stand-in for `random.random() < teacher_forcing_ratio` (ratio=0.5)
    tf_mask = jax.random.bernoulli(ktf, 0.5, (T,)).astype(jnp.int32)
    params = init_params(kp, D, H, L)

    outputs, encoder_out = lstm_tf_autoencoder(x, lengths, tf_mask, params, L, H)
    jax.block_until_ready((outputs, encoder_out))
    assert outputs.shape == (B, T, D) and encoder_out.shape == (B, T, H)
    print("KERNEL_OK")
</pallas_src>

<mosaic_0001>
module attributes {stable_mosaic.version = 11 : i64} {
  func.func @kernel(%arg0: memref<32x8xf32, #tpu.memory_space<vmem>>, %arg1: memref<4x1xi32, #tpu.memory_space<vmem>>, %arg2: memref<32x128xf32, #tpu.memory_space<vmem>>, %arg3: memref<8x128xbf16, #tpu.memory_space<vmem>>, %arg4: memref<32x128xbf16, #tpu.memory_space<vmem>>, %arg5: memref<1x128xf32, #tpu.memory_space<vmem>>, %arg6: memref<64x128xbf16, #tpu.memory_space<vmem>>, %arg7: memref<1x128xf32, #tpu.memory_space<vmem>>, %arg8: memref<8x128xbf16, #tpu.memory_space<vmem>>, %arg9: memref<32x128xbf16, #tpu.memory_space<vmem>>, %arg10: memref<1x128xf32, #tpu.memory_space<vmem>>, %arg11: memref<64x128xbf16, #tpu.memory_space<vmem>>, %arg12: memref<1x128xf32, #tpu.memory_space<vmem>>, %arg13: memref<32x128xbf16, #tpu.memory_space<vmem>>, %arg14: memref<1x128xf32, #tpu.memory_space<vmem>>, %arg15: memref<32x8xf32, #tpu.memory_space<vmem>>, %arg16: memref<1x8xf32, #tpu.memory_space<vmem>>, %arg17: memref<8x4x8xf32, #tpu.memory_space<vmem>>, %arg18: memref<8x4x32xf32, #tpu.memory_space<vmem>>) attributes {dimension_semantics = [], scalar_prefetch = 0 : i64, scratch_operands = 0 : i64, tpu.core_type = #tpu.core_type<tc>} {
    %c0 = arith.constant 0 : index
    %c0_0 = arith.constant 0 : index
    %0 = vector.load %arg3[%c0, %c0_0] : memref<8x128xbf16, #tpu.memory_space<vmem>>, vector<8x128xbf16>
    %c0_1 = arith.constant 0 : index
    %c0_2 = arith.constant 0 : index
    %1 = vector.load %arg4[%c0_1, %c0_2] : memref<32x128xbf16, #tpu.memory_space<vmem>>, vector<32x128xbf16>
    %c0_3 = arith.constant 0 : index
    %c0_4 = arith.constant 0 : index
    %2 = vector.load %arg5[%c0_3, %c0_4] : memref<1x128xf32, #tpu.memory_space<vmem>>, vector<1x128xf32>
    %c0_5 = arith.constant 0 : index
    %c0_6 = arith.constant 0 : index
    %3 = vector.load %arg6[%c0_5, %c0_6] : memref<64x128xbf16, #tpu.memory_space<vmem>>, vector<64x128xbf16>
    %c0_7 = arith.constant 0 : index
    %c0_8 = arith.constant 0 : index
    %4 = vector.load %arg7[%c0_7, %c0_8] : memref<1x128xf32, #tpu.memory_space<vmem>>, vector<1x128xf32>
    %5 = vector.shape_cast %4 : vector<1x128xf32> to vector<1x128xf32>
    %6 = vector.broadcast %5 : vector<1x128xf32> to vector<4x128xf32>
    %c0_9 = arith.constant 0 : index
    %c0_10 = arith.constant 0 : index
    %7 = vector.load %arg8[%c0_9, %c0_10] : memref<8x128xbf16, #tpu.memory_space<vmem>>, vector<8x128xbf16>
    %c0_11 = arith.constant 0 : index
    %c0_12 = arith.constant 0 : index
    %8 = vector.load %arg9[%c0_11, %c0_12] : memref<32x128xbf16, #tpu.memory_space<vmem>>, vector<32x128xbf16>
    %c0_13 = arith.constant 0 : index
    %c0_14 = arith.constant 0 : index
    %9 = vector.load %arg10[%c0_13, %c0_14] : memref<1x128xf32, #tpu.memory_space<vmem>>, vector<1x128xf32>
    %c0_15 = arith.constant 0 : index
    %c0_16 = arith.constant 0 : index
    %10 = vector.load %arg11[%c0_15, %c0_16] : memref<64x128xbf16, #tpu.memory_space<vmem>>, vector<64x128xbf16>
    %c0_17 = arith.constant 0 : index
    %c0_18 = arith.constant 0 : index
    %11 = vector.load %arg12[%c0_17, %c0_18] : memref<1x128xf32, #tpu.memory_space<vmem>>, vector<1x128xf32>
    %12 = vector.shape_cast %11 : vector<1x128xf32> to vector<1x128xf32>
    %13 = vector.broadcast %12 : vector<1x128xf32> to vector<4x128xf32>
    %c0_19 = arith.constant 0 : index
    %c0_20 = arith.constant 0 : index
    %14 = vector.load %arg13[%c0_19, %c0_20] : memref<32x128xbf16, #tpu.memory_space<vmem>>, vector<32x128xbf16>
    %c0_21 = arith.constant 0 : index
    %c0_22 = arith.constant 0 : index
    %15 = vector.load %arg14[%c0_21, %c0_22] : memref<1x128xf32, #tpu.memory_space<vmem>>, vector<1x128xf32>
    %16 = vector.shape_cast %15 : vector<1x128xf32> to vector<1x128xf32>
    %17 = vector.broadcast %16 : vector<1x128xf32> to vector<4x128xf32>
    %c0_23 = arith.constant 0 : index
    %c0_24 = arith.constant 0 : index
    %18 = vector.load %arg15[%c0_23, %c0_24] : memref<32x8xf32, #tpu.memory_space<vmem>>, vector<32x8xf32>
    %c0_25 = arith.constant 0 : index
    %c0_26 = arith.constant 0 : index
    %19 = vector.load %arg16[%c0_25, %c0_26] : memref<1x8xf32, #tpu.memory_space<vmem>>, vector<1x8xf32>
    %20 = vector.shape_cast %19 : vector<1x8xf32> to vector<1x8xf32>
    %21 = vector.broadcast %20 : vector<1x8xf32> to vector<4x8xf32>
    %c0_27 = arith.constant 0 : index
    %c0_28 = arith.constant 0 : index
    %22 = vector.load %arg0[%c0_27, %c0_28] : memref<32x8xf32, #tpu.memory_space<vmem>>, vector<32x8xf32>
    %23 = arith.truncf %22 : vector<32x8xf32> to vector<32x8xbf16>
    %c0_29 = arith.constant 0 : index
    %c0_30 = arith.constant 0 : index
    %24 = vector.load %arg1[%c0_29, %c0_30] : memref<4x1xi32, #tpu.memory_space<vmem>>, vector<4x1xi32>
    %25 = vector.shape_cast %24 : vector<4x1xi32> to vector<4x1xi32>
    %26 = vector.broadcast %25 : vector<4x1xi32> to vector<4x32xi32>
    %c0_31 = arith.constant 0 : index
    %c0_32 = arith.constant 0 : index
    %27 = vector.load %arg2[%c0_31, %c0_32] : memref<32x128xf32, #tpu.memory_space<vmem>>, vector<32x128xf32>
    %cst = arith.constant dense<0.000000e+00> : vector<32x128xf32>
    %28 = tpu.matmul %23, %0, %cst {dimension_numbers = #tpu.dot_dimension_numbers<[1], [0], [0], [1], [0, 0, 1, 1], [], []>} : vector<32x8xbf16>, vector<8x128xbf16>, vector<32x128xf32> -> vector<32x128xf32>
    %29 = vector.broadcast %2 : vector<1x128xf32> to vector<32x128xf32>
    %30 = arith.addf %28, %29 : vector<32x128xf32>
    %cst_33 = arith.constant dense<0.000000e+00> : vector<32x128xf32>
    %31 = tpu.matmul %23, %7, %cst_33 {dimension_numbers = #tpu.dot_dimension_numbers<[1], [0], [0], [1], [0, 0, 1, 1], [], []>} : vector<32x8xbf16>, vector<8x128xbf16>, vector<32x128xf32> -> vector<32x128xf32>
    %32 = vector.broadcast %9 : vector<1x128xf32> to vector<32x128xf32>
    %33 = arith.addf %31, %32 : vector<32x128xf32>
    %cst_34 = arith.constant 0.000000e+00 : f32
    %34 = vector.broadcast %cst_34 : f32 to vector<4x32xf32>
    %cst_35 = arith.constant 0.000000e+00 : f32
    %35 = vector.broadcast %cst_35 : f32 to vector<4x32xf32>
    %cst_36 = arith.constant 0.000000e+00 : f32
    %36 = vector.broadcast %cst_36 : f32 to vector<4x32xf32>
    %cst_37 = arith.constant 0.000000e+00 : f32
    %37 = vector.broadcast %cst_37 : f32 to vector<4x32xf32>
    %c0_i32 = arith.constant 0 : i32
    %38 = vector.broadcast %c0_i32 : i32 to vector<4x32xi32>
    %39 = arith.cmpi sgt, %26, %38 : vector<4x32xi32>
    %40 = vector.extract_strided_slice %30 {offsets = [0, 0], sizes = [4, 128], strides = [1, 1]} : vector<32x128xf32> to vector<4x128xf32>
    %41 = arith.truncf %34 : vector<4x32xf32> to vector<4x32xbf16>
    %cst_38 = arith.constant dense<0.000000e+00> : vector<4x128xf32>
    %42 = tpu.matmul %41, %1, %cst_38 {dimension_numbers = #tpu.dot_dimension_numbers<[1], [0], [0], [1], [0, 0, 1, 1], [], []>} : vector<4x32xbf16>, vector<32x128xbf16>, vector<4x128xf32> -> vector<4x128xf32>
    %43 = arith.addf %40, %42 : vector<4x128xf32>
    %44 = vector.extract_strided_slice %43 {offsets = [0, 0], sizes = [4, 96], strides = [1, 1]} : vector<4x128xf32> to vector<4x96xf32>
    %45 = arith.negf %44 : vector<4x96xf32>
    %46 = math.exp %45 : vector<4x96xf32>
    %cst_39 = arith.constant 1.000000e+00 : f32
    %47 = vector.broadcast %cst_39 : f32 to vector<4x96xf32>
    %48 = arith.addf %47, %46 : vector<4x96xf32>
    %49 = arith.divf %47, %48 : vector<4x96xf32>
    %50 = vector.extract_strided_slice %49 {offsets = [0, 0], sizes = [4, 32], strides = [1, 1]} : vector<4x96xf32> to vector<4x32xf32>
    %51 = vector.extract_strided_slice %49 {offsets = [0, 32], sizes = [4, 32], strides = [1, 1]} : vector<4x96xf32> to vector<4x32xf32>
    %52 = vector.extract_strided_slice %49 {offsets = [0, 64], sizes = [4, 32], strides = [1, 1]} : vector<4x96xf32> to vector<4x32xf32>
    %53 = vector.extract_strided_slice %43 {offsets = [0, 96], sizes = [4, 32], strides = [1, 1]} : vector<4x128xf32> to vector<4x32xf32>
    %54 = math.tanh %53 : vector<4x32xf32>
    %55 = arith.mulf %51, %36 : vector<4x32xf32>
    %56 = arith.mulf %50, %54 : vector<4x32xf32>
    %57 = arith.addf %55, %56 : vector<4x32xf32>
    %58 = math.tanh %57 : vector<4x32xf32>
    %59 = arith.mulf %52, %58 : vector<4x32xf32>
    %60 = arith.select %39, %59, %34 : vector<4x32xi1>, vector<4x32xf32>
    %61 = arith.select %39, %57, %36 : vector<4x32xi1>, vector<4x32xf32>
    %62 = tpu.concatenate %60, %35 in 1 : vector<4x32xf32>, vector<4x32xf32> -> vector<4x64xf32>
    %63 = arith.truncf %62 : vector<4x64xf32> to vector<4x64xbf16>
    %cst_40 = arith.constant dense<0.000000e+00> : vector<4x128xf32>
    %64 = tpu.matmul %63, %3, %cst_40 {dimension_numbers = #tpu.dot_dimension_numbers<[1], [0], [0], [1], [0, 0, 1, 1], [], []>} : vector<4x64xbf16>, vector<64x128xbf16>, vector<4x128xf32> -> vector<4x128xf32>
    %65 = arith.addf %64, %6 : vector<4x128xf32>
    %66 = vector.extract_strided_slice %65 {offsets = [0, 0], sizes = [4, 96], strides = [1, 1]} : vector<4x128xf32> to vector<4x96xf32>
    %67 = arith.negf %66 : vector<4x96xf32>
    %68 = math.exp %67 : vector<4x96xf32>
    %cst_41 = arith.constant 1.000000e+00 : f32
    %69 = vector.broadcast %cst_41 : f32 to vector<4x96xf32>
    %70 = arith.addf %69, %68 : vector<4x96xf32>
    %71 = arith.divf %69, %70 : vector<4x96xf32>
    %72 = vector.extract_strided_slice %71 {offsets = [0, 0], sizes = [4, 32], strides = [1, 1]} : vector<4x96xf32> to vector<4x32xf32>
    %73 = vector.extract_strided_slice %71 {offsets = [0, 32], sizes = [4, 32], strides = [1, 1]} : vector<4x96xf32> to vector<4x32xf32>
    %74 = vector.extract_strided_slice %71 {offsets = [0, 64], sizes = [4, 32], strides = [1, 1]} : vector<4x96xf32> to vector<4x32xf32>
    %75 = vector.extract_strided_slice %65 {offsets = [0, 96], sizes = [4, 32], strides = [1, 1]} : vector<4x128xf32> to vector<4x32xf32>
    %76 = math.tanh %75 : vector<4x32xf32>
    %77 = arith.mulf %73, %37 : vector<4x32xf32>
    %78 = arith.mulf %72, %76 : vector<4x32xf32>
    %79 = arith.addf %77, %78 : vector<4x32xf32>
    %80 = math.tanh %79 : vector<4x32xf32>
    %81 = arith.mulf %74, %80 : vector<4x32xf32>
    %82 = arith.select %39, %81, %35 : vector<4x32xi1>, vector<4x32xf32>
    %83 = arith.select %39, %79, %37 : vector<4x32xi1>, vector<4x32xf32>
    %cst_42 = arith.constant 0.000000e+00 : f32
    %84 = vector.broadcast %cst_42 : f32 to vector<4x32xf32>
    %85 = arith.select %39, %82, %84 : vector<4x32xi1>, vector<4x32xf32>
    %c0_43 = arith.constant 0 : index
    %c0_44 = arith.constant 0 : index
    %c0_45 = arith.constant 0 : index
    %86 = vector.load %arg18[%c0_43, %c0_44, %c0_45] : memref<8x4x32xf32, #tpu.memory_space<vmem>>, vector<1x4x32xf32>
    %87 = vector.shape_cast %86 : vector<1x4x32xf32> to vector<4x32xf32>
    %88 = vector.shape_cast %85 : vector<4x32xf32> to vector<1x4x32xf32>
    tpu.vector_store %arg18[%c0_43, %c0_44, %c0_45], %88 {strides = array<i32>} : memref<8x4x32xf32, #tpu.memory_space<vmem>>, vector<1x4x32xf32>,
    %c1_i32 = arith.constant 1 : i32
    %89 = vector.broadcast %c1_i32 : i32 to vector<4x32xi32>
    %90 = arith.cmpi sgt, %26, %89 : vector<4x32xi32>
    %91 = vector.extract_strided_slice %30 {offsets = [4, 0], sizes = [4, 128], strides = [1, 1]} : vector<32x128xf32> to vector<4x128xf32>
    %92 = arith.truncf %60 : vector<4x32xf32> to vector<4x32xbf16>
    %cst_46 = arith.constant dense<0.000000e+00> : vector<4x128xf32>
    %93 = tpu.matmul %92, %1, %cst_46 {dimension_numbers = #tpu.dot_dimension_numbers<[1], [0], [0], [1], [0, 0, 1, 1], [], []>} : vector<4x32xbf16>, vector<32x128xbf16>, vector<4x128xf32> -> vector<4x128xf32>
    %94 = arith.addf %91, %93 : vector<4x128xf32>
    %95 = vector.extract_strided_slice %94 {offsets = [0, 0], sizes = [4, 96], strides = [1, 1]} : vector<4x128xf32> to vector<4x96xf32>
    %96 = arith.negf %95 : vector<4x96xf32>
    %97 = math.exp %96 : vector<4x96xf32>
    %cst_47 = arith.constant 1.000000e+00 : f32
    %98 = vector.broadcast %cst_47 : f32 to vector<4x96xf32>
    %99 = arith.addf %98, %97 : vector<4x96xf32>
    %100 = arith.divf %98, %99 : vector<4x96xf32>
    %101 = vector.extract_strided_slice %100 {offsets = [0, 0], sizes = [4, 32], strides = [1, 1]} : vector<4x96xf32> to vector<4x32xf32>
    %102 = vector.extract_strided_slice %100 {offsets = [0, 32], sizes = [4, 32], strides = [1, 1]} : vector<4x96xf32> to vector<4x32xf32>
    %103 = vector.extract_strided_slice %100 {offsets = [0, 64], sizes = [4, 32], strides = [1, 1]} : vector<4x96xf32> to vector<4x32xf32>
    %104 = vector.extract_strided_slice %94 {offsets = [0, 96], sizes = [4, 32], strides = [1, 1]} : vector<4x128xf32> to vector<4x32xf32>
    %105 = math.tanh %104 : vector<4x32xf32>
    %106 = arith.mulf %102, %61 : vector<4x32xf32>
    %107 = arith.mulf %101, %105 : vector<4x32xf32>
    %108 = arith.addf %106, %107 : vector<4x32xf32>
    %109 = math.tanh %108 : vector<4x32xf32>
    %110 = arith.mulf %103, %109 : vector<4x32xf32>
    %111 = arith.select %90, %110, %60 : vector<4x32xi1>, vector<4x32xf32>
    %112 = arith.select %90, %108, %61 : vector<4x32xi1>, vector<4x32xf32>
    %113 = tpu.concatenate %111, %82 in 1 : vector<4x32xf32>, vector<4x32xf32> -> vector<4x64xf32>
    %114 = arith.truncf %113 : vector<4x64xf32> to vector<4x64xbf16>
    %cst_48 = arith.constant dense<0.000000e+00> : vector<4x128xf32>
    %115 = tpu.matmul %114, %3, %cst_48 {dimension_numbers = #tpu.dot_dimension_numbers<[1], [0], [0], [1], [0, 0, 1, 1], [], []>} : vector<4x64xbf16>, vector<64x128xbf16>, vector<4x128xf32> -> vector<4x128xf32>
    %116 = arith.addf %115, %6 : vector<4x128xf32>
    %117 = vector.extract_strided_slice %116 {offsets = [0, 0], sizes = [4, 96], strides = [1, 1]} : vector<4x128xf32> to vector<4x96xf32>
    %118 = arith.negf %117 : vector<4x96xf32>
    %119 = math.exp %118 : vector<4x96xf32>
    %cst_49 = arith.constant 1.000000e+00 : f32
    %120 = vector.broadcast %cst_49 : f32 to vector<4x96xf32>
    %121 = arith.addf %120, %119 : vector<4x96xf32>
    %122 = arith.divf %120, %121 : vector<4x96xf32>
    %123 = vector.extract_strided_slice %122 {offsets = [0, 0], sizes = [4, 32], strides = [1, 1]} : vector<4x96xf32> to vector<4x32xf32>
    %124 = vector.extract_strided_slice %122 {offsets = [0, 32], sizes = [4, 32], strides = [1, 1]} : vector<4x96xf32> to vector<4x32xf32>
    %125 = vector.extract_strided_slice %122 {offsets = [0, 64], sizes = [4, 32], strides = [1, 1]} : vector<4x96xf32> to vector<4x32xf32>
    %126 = vector.extract_strided_slice %116 {offsets = [0, 96], sizes = [4, 32], strides = [1, 1]} : vector<4x128xf32> to vector<4x32xf32>
    %127 = math.tanh %126 : vector<4x32xf32>
    %128 = arith.mulf %124, %83 : vector<4x32xf32>
    %129 = arith.mulf %123, %127 : vector<4x32xf32>
    %130 = arith.addf %128, %129 : vector<4x32xf32>
    %131 = math.tanh %130 : vector<4x32xf32>
    %132 = arith.mulf %125, %131 : vector<4x32xf32>
    %133 = arith.select %90, %132, %82 : vector<4x32xi1>, vector<4x32xf32>
    %134 = arith.select %90, %130, %83 : vector<4x32xi1>, vector<4x32xf32>
    %cst_50 = arith.constant 0.000000e+00 : f32
    %135 = vector.broadcast %cst_50 : f32 to vector<4x32xf32>
    %136 = arith.select %90, %133, %135 : vector<4x32xi1>, vector<4x32xf32>
    %c1 = arith.constant 1 : index
    %c0_51 = arith.constant 0 : index
    %c0_52 = arith.constant 0 : index
    %137 = vector.load %arg18[%c1, %c0_51, %c0_52] : memref<8x4x32xf32, #tpu.memory_space<vmem>>, vector<1x4x32xf32>
    %138 = vector.shape_cast %137 : vector<1x4x32xf32> to vector<4x32xf32>
    %139 = vector.shape_cast %136 : vector<4x32xf32> to vector<1x4x32xf32>
    tpu.vector_store %arg18[%c1, %c0_51, %c0_52], %139 {strides = array<i32>} : memref<8x4x32xf32, #tpu.memory_space<vmem>>, vector<1x4x32xf32>,
    %c2_i32 = arith.constant 2 : i32
    %140 = vector.broadcast %c2_i32 : i32 to vector<4x32xi32>
    %141 = arith.cmpi sgt, %26, %140 : vector<4x32xi32>
    %142 = vector.extract_strided_slice %30 {offsets = [8, 0], sizes = [4, 128], strides = [1, 1]} : vector<32x128xf32> to vector<4x128xf32>
    %143 = arith.truncf %111 : vector<4x32xf32> to vector<4x32xbf16>
    %cst_53 = arith.constant dense<0.000000e+00> : vector<4x128xf32>
    %144 = tpu.matmul %143, %1, %cst_53 {dimension_numbers = #tpu.dot_dimension_numbers<[1], [0], [0], [1], [0, 0, 1, 1], [], []>} : vector<4x32xbf16>, vector<32x128xbf16>, vector<4x128xf32> -> vector<4x128xf32>
    %145 = arith.addf %142, %144 : vector<4x128xf32>
    %146 = vector.extract_strided_slice %145 {offsets = [0, 0], sizes = [4, 96], strides = [1, 1]} : vector<4x128xf32> to vector<4x96xf32>
    %147 = arith.negf %146 : vector<4x96xf32>
    %148 = math.exp %147 : vector<4x96xf32>
    %cst_54 = arith.constant 1.000000e+00 : f32
    %149 = vector.broadcast %cst_54 : f32 to vector<4x96xf32>
    %150 = arith.addf %149, %148 : vector<4x96xf32>
    %151 = arith.divf %149, %150 : vector<4x96xf32>
    %152 = vector.extract_strided_slice %151 {offsets = [0, 0], sizes = [4, 32], strides = [1, 1]} : vector<4x96xf32> to vector<4x32xf32>
    %153 = vector.extract_strided_slice %151 {offsets = [0, 32], sizes = [4, 32], strides = [1, 1]} : vector<4x96xf32> to vector<4x32xf32>
    %154 = vector.extract_strided_slice %151 {offsets = [0, 64], sizes = [4, 32], strides = [1, 1]} : vector<4x96xf32> to vector<4x32xf32>
    %155 = vector.extract_strided_slice %145 {offsets = [0, 96], sizes = [4, 32], strides = [1, 1]} : vector<4x128xf32> to vector<4x32xf32>
    %156 = math.tanh %155 : vector<4x32xf32>
    %157 = arith.mulf %153, %112 : vector<4x32xf32>
    %158 = arith.mulf %152, %156 : vector<4x32xf32>
    %159 = arith.addf %157, %158 : vector<4x32xf32>
    %160 = math.tanh %159 : vector<4x32xf32>
    %161 = arith.mulf %154, %160 : vector<4x32xf32>
    %162 = arith.select %141, %161, %111 : vector<4x32xi1>, vector<4x32xf32>
    %163 = arith.select %141, %159, %112 : vector<4x32xi1>, vector<4x32xf32>
    %164 = tpu.concatenate %162, %133 in 1 : vector<4x32xf32>, vector<4x32xf32> -> vector<4x64xf32>
    %165 = arith.truncf %164 : vector<4x64xf32> to vector<4x64xbf16>
    %cst_55 = arith.constant dense<0.000000e+00> : vector<4x128xf32>
    %166 = tpu.matmul %165, %3, %cst_55 {dimension_numbers = #tpu.dot_dimension_numbers<[1], [0], [0], [1], [0, 0, 1, 1], [], []>} : vector<4x64xbf16>, vector<64x128xbf16>, vector<4x128xf32> -> vector<4x128xf32>
    %167 = arith.addf %166, %6 : vector<4x128xf32>
    %168 = vector.extract_strided_slice %167 {offsets = [0, 0], sizes = [4, 96], strides = [1, 1]} : vector<4x128xf32> to vector<4x96xf32>
    %169 = arith.negf %168 : vector<4x96xf32>
    %170 = math.exp %169 : vector<4x96xf32>
    %cst_56 = arith.constant 1.000000e+00 : f32
    %171 = vector.broadcast %cst_56 : f32 to vector<4x96xf32>
    %172 = arith.addf %171, %170 : vector<4x96xf32>
    %173 = arith.divf %171, %172 : vector<4x96xf32>
    %174 = vector.extract_strided_slice %173 {offsets = [0, 0], sizes = [4, 32], strides = [1, 1]} : vector<4x96xf32> to vector<4x32xf32>
    %175 = vector.extract_strided_slice %173 {offsets = [0, 32], sizes = [4, 32], strides = [1, 1]} : vector<4x96xf32> to vector<4x32xf32>
    %176 = vector.extract_strided_slice %173 {offsets = [0, 64], sizes = [4, 32], strides = [1, 1]} : vector<4x96xf32> to vector<4x32xf32>
    %177 = vector.extract_strided_slice %167 {offsets = [0, 96], sizes = [4, 32], strides = [1, 1]} : vector<4x128xf32> to vector<4x32xf32>
    %178 = math.tanh %177 : vector<4x32xf32>
    %179 = arith.mulf %175, %134 : vector<4x32xf32>
    %180 = arith.mulf %174, %178 : vector<4x32xf32>
    %181 = arith.addf %179, %180 : vector<4x32xf32>
    %182 = math.tanh %181 : vector<4x32xf32>
    %183 = arith.mulf %176, %182 : vector<4x32xf32>
    %184 = arith.select %141, %183, %133 : vector<4x32xi1>, vector<4x32xf32>
    %185 = arith.select %141, %181, %134 : vector<4x32xi1>, vector<4x32xf32>
    %cst_57 = arith.constant 0.000000e+00 : f32
    %186 = vector.broadcast %cst_57 : f32 to vector<4x32xf32>
    %187 = arith.select %141, %184, %186 : vector<4x32xi1>, vector<4x32xf32>
    %c2 = arith.constant 2 : index
    %c0_58 = arith.constant 0 : index
    %c0_59 = arith.constant 0 : index
    %188 = vector.load %arg18[%c2, %c0_58, %c0_59] : memref<8x4x32xf32, #tpu.memory_space<vmem>>, vector<1x4x32xf32>
    %189 = vector.shape_cast %188 : vector<1x4x32xf32> to vector<4x32xf32>
    %190 = vector.shape_cast %187 : vector<4x32xf32> to vector<1x4x32xf32>
    tpu.vector_store %arg18[%c2, %c0_58, %c0_59], %190 {strides = array<i32>} : memref<8x4x32xf32, #tpu.memory_space<vmem>>, vector<1x4x32xf32>,
    %c3_i32 = arith.constant 3 : i32
    %191 = vector.broadcast %c3_i32 : i32 to vector<4x32xi32>
    %192 = arith.cmpi sgt, %26, %191 : vector<4x32xi32>
    %193 = vector.extract_strided_slice %30 {offsets = [12, 0], sizes = [4, 128], strides = [1, 1]} : vector<32x128xf32> to vector<4x128xf32>
    %194 = arith.truncf %162 : vector<4x32xf32> to vector<4x32xbf16>
    %cst_60 = arith.constant dense<0.000000e+00> : vector<4x128xf32>
    %195 = tpu.matmul %194, %1, %cst_60 {dimension_numbers = #tpu.dot_dimension_numbers<[1], [0], [0], [1], [0, 0, 1, 1], [], []>} : vector<4x32xbf16>, vector<32x128xbf16>, vector<4x128xf32> -> vector<4x128xf32>
    %196 = arith.addf %193, %195 : vector<4x128xf32>
    %197 = vector.extract_strided_slice %196 {offsets = [0, 0], sizes = [4, 96], strides = [1, 1]} : vector<4x128xf32> to vector<4x96xf32>
    %198 = arith.negf %197 : vector<4x96xf32>
    %199 = math.exp %198 : vector<4x96xf32>
    %cst_61 = arith.constant 1.000000e+00 : f32
    %200 = vector.broadcast %cst_61 : f32 to vector<4x96xf32>
    %201 = arith.addf %200, %199 : vector<4x96xf32>
    %202 = arith.divf %200, %201 : vector<4x96xf32>
    %203 = vector.extract_strided_slice %202 {offsets = [0, 0], sizes = [4, 32], strides = [1, 1]} : vector<4x96xf32> to vector<4x32xf32>
    %204 = vector.extract_strided_slice %202 {offsets = [0, 32], sizes = [4, 32], strides = [1, 1]} : vector<4x96xf32> to vector<4x32xf32>
    %205 = vector.extract_strided_slice %202 {offsets = [0, 64], sizes = [4, 32], strides = [1, 1]} : vector<4x96xf32> to vector<4x32xf32>
    %206 = vector.extract_strided_slice %196 {offsets = [0, 96], sizes = [4, 32], strides = [1, 1]} : vector<4x128xf32> to vector<4x32xf32>
    %207 = math.tanh %206 : vector<4x32xf32>
    %208 = arith.mulf %204, %163 : vector<4x32xf32>
    %209 = arith.mulf %203, %207 : vector<4x32xf32>
    %210 = arith.addf %208, %209 : vector<4x32xf32>
    %211 = math.tanh %210 : vector<4x32xf32>
    %212 = arith.mulf %205, %211 : vector<4x32xf32>
    %213 = arith.select %192, %212, %162 : vector<4x32xi1>, vector<4x32xf32>
    %214 = arith.select %192, %210, %163 : vector<4x32xi1>, vector<4x32xf32>
    %215 = tpu.concatenate %213, %184 in 1 : vector<4x32xf32>, vector<4x32xf32> -> vector<4x64xf32>
    %216 = arith.truncf %215 : vector<4x64xf32> to vector<4x64xbf16>
    %cst_62 = arith.constant dense<0.000000e+00> : vector<4x128xf32>
    %217 = tpu.matmul %216, %3, %cst_62 {dimension_numbers = #tpu.dot_dimension_numbers<[1], [0], [0], [1], [0, 0, 1, 1], [], []>} : vector<4x64xbf16>, vector<64x128xbf16>, vector<4x128xf32> -> vector<4x128xf32>
    %218 = arith.addf %217, %6 : vector<4x128xf32>
    %219 = vector.extract_strided_slice %218 {offsets = [0, 0], sizes = [4, 96], strides = [1, 1]} : vector<4x128xf32> to vector<4x96xf32>
    %220 = arith.negf %219 : vector<4x96xf32>
    %221 = math.exp %220 : vector<4x96xf32>
    %cst_63 = arith.constant 1.000000e+00 : f32
    %222 = vector.broadcast %cst_63 : f32 to vector<4x96xf32>
    %223 = arith.addf %222, %221 : vector<4x96xf32>
    %224 = arith.divf %222, %223 : vector<4x96xf32>
    %225 = vector.extract_strided_slice %224 {offsets = [0, 0], sizes = [4, 32], strides = [1, 1]} : vector<4x96xf32> to vector<4x32xf32>
    %226 = vector.extract_strided_slice %224 {offsets = [0, 32], sizes = [4, 32], strides = [1, 1]} : vector<4x96xf32> to vector<4x32xf32>
    %227 = vector.extract_strided_slice %224 {offsets = [0, 64], sizes = [4, 32], strides = [1, 1]} : vector<4x96xf32> to vector<4x32xf32>
    %228 = vector.extract_strided_slice %218 {offsets = [0, 96], sizes = [4, 32], strides = [1, 1]} : vector<4x128xf32> to vector<4x32xf32>
    %229 = math.tanh %228 : vector<4x32xf32>
    %230 = arith.mulf %226, %185 : vector<4x32xf32>
    %231 = arith.mulf %225, %229 : vector<4x32xf32>
    %232 = arith.addf %230, %231 : vector<4x32xf32>
    %233 = math.tanh %232 : vector<4x32xf32>
    %234 = arith.mulf %227, %233 : vector<4x32xf32>
    %235 = arith.select %192, %234, %184 : vector<4x32xi1>, vector<4x32xf32>
    %236 = arith.select %192, %232, %185 : vector<4x32xi1>, vector<4x32xf32>
    %cst_64 = arith.constant 0.000000e+00 : f32
    %237 = vector.broadcast %cst_64 : f32 to vector<4x32xf32>
    %238 = arith.select %192, %235, %237 : vector<4x32xi1>, vector<4x32xf32>
    %c3 = arith.constant 3 : index
    %c0_65 = arith.constant 0 : index
    %c0_66 = arith.constant 0 : index
    %239 = vector.load %arg18[%c3, %c0_65, %c0_66] : memref<8x4x32xf32, #tpu.memory_space<vmem>>, vector<1x4x32xf32>
    %240 = vector.shape_cast %239 : vector<1x4x32xf32> to vector<4x32xf32>
    %241 = vector.shape_cast %238 : vector<4x32xf32> to vector<1x4x32xf32>
    tpu.vector_store %arg18[%c3, %c0_65, %c0_66], %241 {strides = array<i32>} : memref<8x4x32xf32, #tpu.memory_space<vmem>>, vector<1x4x32xf32>,
    %c4_i32 = arith.constant 4 : i32
    %242 = vector.broadcast %c4_i32 : i32 to vector<4x32xi32>
    %243 = arith.cmpi sgt, %26, %242 : vector<4x32xi32>
    %244 = vector.extract_strided_slice %30 {offsets = [16, 0], sizes = [4, 128], strides = [1, 1]} : vector<32x128xf32> to vector<4x128xf32>
    %245 = arith.truncf %213 : vector<4x32xf32> to vector<4x32xbf16>
    %cst_67 = arith.constant dense<0.000000e+00> : vector<4x128xf32>
    %246 = tpu.matmul %245, %1, %cst_67 {dimension_numbers = #tpu.dot_dimension_numbers<[1], [0], [0], [1], [0, 0, 1, 1], [], []>} : vector<4x32xbf16>, vector<32x128xbf16>, vector<4x128xf32> -> vector<4x128xf32>
    %247 = arith.addf %244, %246 : vector<4x128xf32>
    %248 = vector.extract_strided_slice %247 {offsets = [0, 0], sizes = [4, 96], strides = [1, 1]} : vector<4x128xf32> to vector<4x96xf32>
    %249 = arith.negf %248 : vector<4x96xf32>
    %250 = math.exp %249 : vector<4x96xf32>
    %cst_68 = arith.constant 1.000000e+00 : f32
    %251 = vector.broadcast %cst_68 : f32 to vector<4x96xf32>
    %252 = arith.addf %251, %250 : vector<4x96xf32>
    %253 = arith.divf %251, %252 : vector<4x96xf32>
    %254 = vector.extract_strided_slice %253 {offsets = [0, 0], sizes = [4, 32], strides = [1, 1]} : vector<4x96xf32> to vector<4x32xf32>
    %255 = vector.extract_strided_slice %253 {offsets = [0, 32], sizes = [4, 32], strides = [1, 1]} : vector<4x96xf32> to vector<4x32xf32>
    %256 = vector.extract_strided_slice %253 {offsets = [0, 64], sizes = [4, 32], strides = [1, 1]} : vector<4x96xf32> to vector<4x32xf32>
    %257 = vector.extract_strided_slice %247 {offsets = [0, 96], sizes = [4, 32], strides = [1, 1]} : vector<4x128xf32> to vector<4x32xf32>
    %258 = math.tanh %257 : vector<4x32xf32>
    %259 = arith.mulf %255, %214 : vector<4x32xf32>
    %260 = arith.mulf %254, %258 : vector<4x32xf32>
    %261 = arith.addf %259, %260 : vector<4x32xf32>
    %262 = math.tanh %261 : vector<4x32xf32>
    %263 = arith.mulf %256, %262 : vector<4x32xf32>
    %264 = arith.select %243, %263, %213 : vector<4x32xi1>, vector<4x32xf32>
    %265 = arith.select %243, %261, %214 : vector<4x32xi1>, vector<4x32xf32>
    %266 = tpu.concatenate %264, %235 in 1 : vector<4x32xf32>, vector<4x32xf32> -> vector<4x64xf32>
    %267 = arith.truncf %266 : vector<4x64xf32> to vector<4x64xbf16>
    %cst_69 = arith.constant dense<0.000000e+00> : vector<4x128xf32>
    %268 = tpu.matmul %267, %3, %cst_69 {dimension_numbers = #tpu.dot_dimension_numbers<[1], [0], [0], [1], [0, 0, 1, 1], [], []>} : vector<4x64xbf16>, vector<64x128xbf16>, vector<4x128xf32> -> vector<4x128xf32>
    %269 = arith.addf %268, %6 : vector<4x128xf32>
    %270 = vector.extract_strided_slice %269 {offsets = [0, 0], sizes = [4, 96], strides = [1, 1]} : vector<4x128xf32> to vector<4x96xf32>
    %271 = arith.negf %270 : vector<4x96xf32>
    %272 = math.exp %271 : vector<4x96xf32>
    %cst_70 = arith.constant 1.000000e+00 : f32
    %273 = vector.broadcast %cst_70 : f32 to vector<4x96xf32>
    %274 = arith.addf %273, %272 : vector<4x96xf32>
    %275 = arith.divf %273, %274 : vector<4x96xf32>
    %276 = vector.extract_strided_slice %275 {offsets = [0, 0], sizes = [4, 32], strides = [1, 1]} : vector<4x96xf32> to vector<4x32xf32>
    %277 = vector.extract_strided_slice %275 {offsets = [0, 32], sizes = [4, 32], strides = [1, 1]} : vector<4x96xf32> to vector<4x32xf32>
    %278 = vector.extract_strided_slice %275 {offsets = [0, 64], sizes = [4, 32], strides = [1, 1]} : vector<4x96xf32> to vector<4x32xf32>
    %279 = vector.extract_strided_slice %269 {offsets = [0, 96], sizes = [4, 32], strides = [1, 1]} : vector<4x128xf32> to vector<4x32xf32>
    %280 = math.tanh %279 : vector<4x32xf32>
    %281 = arith.mulf %277, %236 : vector<4x32xf32>
    %282 = arith.mulf %276, %280 : vector<4x32xf32>
    %283 = arith.addf %281, %282 : vector<4x32xf32>
    %284 = math.tanh %283 : vector<4x32xf32>
    %285 = arith.mulf %278, %284 : vector<4x32xf32>
    %286 = arith.select %243, %285, %235 : vector<4x32xi1>, vector<4x32xf32>
    %287 = arith.select %243, %283, %236 : vector<4x32xi1>, vector<4x32xf32>
    %cst_71 = arith.constant 0.000000e+00 : f32
    %288 = vector.broadcast %cst_71 : f32 to vector<4x32xf32>
    %289 = arith.select %243, %286, %288 : vector<4x32xi1>, vector<4x32xf32>
    %c4 = arith.constant 4 : index
    %c0_72 = arith.constant 0 : index
    %c0_73 = arith.constant 0 : index
    %290 = vector.load %arg18[%c4, %c0_72, %c0_73] : memref<8x4x32xf32, #tpu.memory_space<vmem>>, vector<1x4x32xf32>
    %291 = vector.shape_cast %290 : vector<1x4x32xf32> to vector<4x32xf32>
    %292 = vector.shape_cast %289 : vector<4x32xf32> to vector<1x4x32xf32>
    tpu.vector_store %arg18[%c4, %c0_72, %c0_73], %292 {strides = array<i32>} : memref<8x4x32xf32, #tpu.memory_space<vmem>>, vector<1x4x32xf32>,
    %c5_i32 = arith.constant 5 : i32
    %293 = vector.broadcast %c5_i32 : i32 to vector<4x32xi32>
    %294 = arith.cmpi sgt, %26, %293 : vector<4x32xi32>
    %295 = vector.extract_strided_slice %30 {offsets = [20, 0], sizes = [4, 128], strides = [1, 1]} : vector<32x128xf32> to vector<4x128xf32>
    %296 = arith.truncf %264 : vector<4x32xf32> to vector<4x32xbf16>
    %cst_74 = arith.constant dense<0.000000e+00> : vector<4x128xf32>
    %297 = tpu.matmul %296, %1, %cst_74 {dimension_numbers = #tpu.dot_dimension_numbers<[1], [0], [0], [1], [0, 0, 1, 1], [], []>} : vector<4x32xbf16>, vector<32x128xbf16>, vector<4x128xf32> -> vector<4x128xf32>
    %298 = arith.addf %295, %297 : vector<4x128xf32>
    %299 = vector.extract_strided_slice %298 {offsets = [0, 0], sizes = [4, 96], strides = [1, 1]} : vector<4x128xf32> to vector<4x96xf32>
    %300 = arith.negf %299 : vector<4x96xf32>
    %301 = math.exp %300 : vector<4x96xf32>
    %cst_75 = arith.constant 1.000000e+00 : f32
    %302 = vector.broadcast %cst_75 : f32 to vector<4x96xf32>
    %303 = arith.addf %302, %301 : vector<4x96xf32>
    %304 = arith.divf %302, %303 : vector<4x96xf32>
    %305 = vector.extract_strided_slice %304 {offsets = [0, 0], sizes = [4, 32], strides = [1, 1]} : vector<4x96xf32> to vector<4x32xf32>
    %306 = vector.extract_strided_slice %304 {offsets = [0, 32], sizes = [4, 32], strides = [1, 1]} : vector<4x96xf32> to vector<4x32xf32>
    %307 = vector.extract_strided_slice %304 {offsets = [0, 64], sizes = [4, 32], strides = [1, 1]} : vector<4x96xf32> to vector<4x32xf32>
    %308 = vector.extract_strided_slice %298 {offsets = [0, 96], sizes = [4, 32], strides = [1, 1]} : vector<4x128xf32> to vector<4x32xf32>
    %309 = math.tanh %308 : vector<4x32xf32>
    %310 = arith.mulf %306, %265 : vector<4x32xf32>
    %311 = arith.mulf %305, %309 : vector<4x32xf32>
    %312 = arith.addf %310, %311 : vector<4x32xf32>
    %313 = math.tanh %312 : vector<4x32xf32>
    %314 = arith.mulf %307, %313 : vector<4x32xf32>
    %315 = arith.select %294, %314, %264 : vector<4x32xi1>, vector<4x32xf32>
    %316 = arith.select %294, %312, %265 : vector<4x32xi1>, vector<4x32xf32>
    %317 = tpu.concatenate %315, %286 in 1 : vector<4x32xf32>, vector<4x32xf32> -> vector<4x64xf32>
    %318 = arith.truncf %317 : vector<4x64xf32> to vector<4x64xbf16>
    %cst_76 = arith.constant dense<0.000000e+00> : vector<4x128xf32>
    %319 = tpu.matmul %318, %3, %cst_76 {dimension_numbers = #tpu.dot_dimension_numbers<[1], [0], [0], [1], [0, 0, 1, 1], [], []>} : vector<4x64xbf16>, vector<64x128xbf16>, vector<4x128xf32> -> vector<4x128xf32>
    %320 = arith.addf %319, %6 : vector<4x128xf32>
    %321 = vector.extract_strided_slice %320 {offsets = [0, 0], sizes = [4, 96], strides = [1, 1]} : vector<4x128xf32> to vector<4x96xf32>
    %322 = arith.negf %321 : vector<4x96xf32>
    %323 = math.exp %322 : vector<4x96xf32>
    %cst_77 = arith.constant 1.000000e+00 : f32
    %324 = vector.broadcast %cst_77 : f32 to vector<4x96xf32>
    %325 = arith.addf %324, %323 : vector<4x96xf32>
    %326 = arith.divf %324, %325 : vector<4x96xf32>
    %327 = vector.extract_strided_slice %326 {offsets = [0, 0], sizes = [4, 32], strides = [1, 1]} : vector<4x96xf32> to vector<4x32xf32>
    %328 = vector.extract_strided_slice %326 {offsets = [0, 32], sizes = [4, 32], strides = [1, 1]} : vector<4x96xf32> to vector<4x32xf32>
    %329 = vector.extract_strided_slice %326 {offsets = [0, 64], sizes = [4, 32], strides = [1, 1]} : vector<4x96xf32> to vector<4x32xf32>
    %330 = vector.extract_strided_slice %320 {offsets = [0, 96], sizes = [4, 32], strides = [1, 1]} : vector<4x128xf32> to vector<4x32xf32>
    %331 = math.tanh %330 : vector<4x32xf32>
    %332 = arith.mulf %328, %287 : vector<4x32xf32>
    %333 = arith.mulf %327, %331 : vector<4x32xf32>
    %334 = arith.addf %332, %333 : vector<4x32xf32>
    %335 = math.tanh %334 : vector<4x32xf32>
    %336 = arith.mulf %329, %335 : vector<4x32xf32>
    %337 = arith.select %294, %336, %286 : vector<4x32xi1>, vector<4x32xf32>
    %338 = arith.select %294, %334, %287 : vector<4x32xi1>, vector<4x32xf32>
    %cst_78 = arith.constant 0.000000e+00 : f32
    %339 = vector.broadcast %cst_78 : f32 to vector<4x32xf32>
    %340 = arith.select %294, %337, %339 : vector<4x32xi1>, vector<4x32xf32>
    %c5 = arith.constant 5 : index
    %c0_79 = arith.constant 0 : index
    %c0_80 = arith.constant 0 : index
    %341 = vector.load %arg18[%c5, %c0_79, %c0_80] : memref<8x4x32xf32, #tpu.memory_space<vmem>>, vector<1x4x32xf32>
    %342 = vector.shape_cast %341 : vector<1x4x32xf32> to vector<4x32xf32>
    %343 = vector.shape_cast %340 : vector<4x32xf32> to vector<1x4x32xf32>
    tpu.vector_store %arg18[%c5, %c0_79, %c0_80], %343 {strides = array<i32>} : memref<8x4x32xf32, #tpu.memory_space<vmem>>, vector<1x4x32xf32>,
    %c6_i32 = arith.constant 6 : i32
    %344 = vector.broadcast %c6_i32 : i32 to vector<4x32xi32>
    %345 = arith.cmpi sgt, %26, %344 : vector<4x32xi32>
    %346 = vector.extract_strided_slice %30 {offsets = [24, 0], sizes = [4, 128], strides = [1, 1]} : vector<32x128xf32> to vector<4x128xf32>
    %347 = arith.truncf %315 : vector<4x32xf32> to vector<4x32xbf16>
    %cst_81 = arith.constant dense<0.000000e+00> : vector<4x128xf32>
    %348 = tpu.matmul %347, %1, %cst_81 {dimension_numbers = #tpu.dot_dimension_numbers<[1], [0], [0], [1], [0, 0, 1, 1], [], []>} : vector<4x32xbf16>, vector<32x128xbf16>, vector<4x128xf32> -> vector<4x128xf32>
    %349 = arith.addf %346, %348 : vector<4x128xf32>
    %350 = vector.extract_strided_slice %349 {offsets = [0, 0], sizes = [4, 96], strides = [1, 1]} : vector<4x128xf32> to vector<4x96xf32>
    %351 = arith.negf %350 : vector<4x96xf32>
    %352 = math.exp %351 : vector<4x96xf32>
    %cst_82 = arith.constant 1.000000e+00 : f32
    %353 = vector.broadcast %cst_82 : f32 to vector<4x96xf32>
    %354 = arith.addf %353, %352 : vector<4x96xf32>
    %355 = arith.divf %353, %354 : vector<4x96xf32>
    %356 = vector.extract_strided_slice %355 {offsets = [0, 0], sizes = [4, 32], strides = [1, 1]} : vector<4x96xf32> to vector<4x32xf32>
    %357 = vector.extract_strided_slice %355 {offsets = [0, 32], sizes = [4, 32], strides = [1, 1]} : vector<4x96xf32> to vector<4x32xf32>
    %358 = vector.extract_strided_slice %355 {offsets = [0, 64], sizes = [4, 32], strides = [1, 1]} : vector<4x96xf32> to vector<4x32xf32>
    %359 = vector.extract_strided_slice %349 {offsets = [0, 96], sizes = [4, 32], strides = [1, 1]} : vector<4x128xf32> to vector<4x32xf32>
    %360 = math.tanh %359 : vector<4x32xf32>
    %361 = arith.mulf %357, %316 : vector<4x32xf32>
    %362 = arith.mulf %356, %360 : vector<4x32xf32>
    %363 = arith.addf %361, %362 : vector<4x32xf32>
    %364 = math.tanh %363 : vector<4x32xf32>
    %365 = arith.mulf %358, %364 : vector<4x32xf32>
    %366 = arith.select %345, %365, %315 : vector<4x32xi1>, vector<4x32xf32>
    %367 = arith.select %345, %363, %316 : vector<4x32xi1>, vector<4x32xf32>
    %368 = tpu.concatenate %366, %337 in 1 : vector<4x32xf32>, vector<4x32xf32> -> vector<4x64xf32>
    %369 = arith.truncf %368 : vector<4x64xf32> to vector<4x64xbf16>
    %cst_83 = arith.constant dense<0.000000e+00> : vector<4x128xf32>
    %370 = tpu.matmul %369, %3, %cst_83 {dimension_numbers = #tpu.dot_dimension_numbers<[1], [0], [0], [1], [0, 0, 1, 1], [], []>} : vector<4x64xbf16>, vector<64x128xbf16>, vector<4x128xf32> -> vector<4x128xf32>
    %371 = arith.addf %370, %6 : vector<4x128xf32>
    %372 = vector.extract_strided_slice %371 {offsets = [0, 0], sizes = [4, 96], strides = [1, 1]} : vector<4x128xf32> to vector<4x96xf32>
    %373 = arith.negf %372 : vector<4x96xf32>
    %374 = math.exp %373 : vector<4x96xf32>
    %cst_84 = arith.constant 1.000000e+00 : f32
    %375 = vector.broadcast %cst_84 : f32 to vector<4x96xf32>
    %376 = arith.addf %375, %374 : vector<4x96xf32>
    %377 = arith.divf %375, %376 : vector<4x96xf32>
    %378 = vector.extract_strided_slice %377 {offsets = [0, 0], sizes = [4, 32], strides = [1, 1]} : vector<4x96xf32> to vector<4x32xf32>
    %379 = vector.extract_strided_slice %377 {offsets = [0, 32], sizes = [4, 32], strides = [1, 1]} : vector<4x96xf32> to vector<4x32xf32>
    %380 = vector.extract_strided_slice %377 {offsets = [0, 64], sizes = [4, 32], strides = [1, 1]} : vector<4x96xf32> to vector<4x32xf32>
    %381 = vector.extract_strided_slice %371 {offsets = [0, 96], sizes = [4, 32], strides = [1, 1]} : vector<4x128xf32> to vector<4x32xf32>
    %382 = math.tanh %381 : vector<4x32xf32>
    %383 = arith.mulf %379, %338 : vector<4x32xf32>
    %384 = arith.mulf %378, %382 : vector<4x32xf32>
    %385 = arith.addf %383, %384 : vector<4x32xf32>
    %386 = math.tanh %385 : vector<4x32xf32>
    %387 = arith.mulf %380, %386 : vector<4x32xf32>
    %388 = arith.select %345, %387, %337 : vector<4x32xi1>, vector<4x32xf32>
    %389 = arith.select %345, %385, %338 : vector<4x32xi1>, vector<4x32xf32>
    %cst_85 = arith.constant 0.000000e+00 : f32
    %390 = vector.broadcast %cst_85 : f32 to vector<4x32xf32>
    %391 = arith.select %345, %388, %390 : vector<4x32xi1>, vector<4x32xf32>
    %c6 = arith.constant 6 : index
    %c0_86 = arith.constant 0 : index
    %c0_87 = arith.constant 0 : index
    %392 = vector.load %arg18[%c6, %c0_86, %c0_87] : memref<8x4x32xf32, #tpu.memory_space<vmem>>, vector<1x4x32xf32>
    %393 = vector.shape_cast %392 : vector<1x4x32xf32> to vector<4x32xf32>
    %394 = vector.shape_cast %391 : vector<4x32xf32> to vector<1x4x32xf32>
    tpu.vector_store %arg18[%c6, %c0_86, %c0_87], %394 {strides = array<i32>} : memref<8x4x32xf32, #tpu.memory_space<vmem>>, vector<1x4x32xf32>,
    %c7_i32 = arith.constant 7 : i32
    %395 = vector.broadcast %c7_i32 : i32 to vector<4x32xi32>
    %396 = arith.cmpi sgt, %26, %395 : vector<4x32xi32>
    %397 = vector.extract_strided_slice %30 {offsets = [28, 0], sizes = [4, 128], strides = [1, 1]} : vector<32x128xf32> to vector<4x128xf32>
    %398 = arith.truncf %366 : vector<4x32xf32> to vector<4x32xbf16>
    %cst_88 = arith.constant dense<0.000000e+00> : vector<4x128xf32>
    %399 = tpu.matmul %398, %1, %cst_88 {dimension_numbers = #tpu.dot_dimension_numbers<[1], [0], [0], [1], [0, 0, 1, 1], [], []>} : vector<4x32xbf16>, vector<32x128xbf16>, vector<4x128xf32> -> vector<4x128xf32>
    %400 = arith.addf %397, %399 : vector<4x128xf32>
    %401 = vector.extract_strided_slice %400 {offsets = [0, 0], sizes = [4, 96], strides = [1, 1]} : vector<4x128xf32> to vector<4x96xf32>
    %402 = arith.negf %401 : vector<4x96xf32>
    %403 = math.exp %402 : vector<4x96xf32>
    %cst_89 = arith.constant 1.000000e+00 : f32
    %404 = vector.broadcast %cst_89 : f32 to vector<4x96xf32>
    %405 = arith.addf %404, %403 : vector<4x96xf32>
    %406 = arith.divf %404, %405 : vector<4x96xf32>
    %407 = vector.extract_strided_slice %406 {offsets = [0, 0], sizes = [4, 32], strides = [1, 1]} : vector<4x96xf32> to vector<4x32xf32>
    %408 = vector.extract_strided_slice %406 {offsets = [0, 32], sizes = [4, 32], strides = [1, 1]} : vector<4x96xf32> to vector<4x32xf32>
    %409 = vector.extract_strided_slice %406 {offsets = [0, 64], sizes = [4, 32], strides = [1, 1]} : vector<4x96xf32> to vector<4x32xf32>
    %410 = vector.extract_strided_slice %400 {offsets = [0, 96], sizes = [4, 32], strides = [1, 1]} : vector<4x128xf32> to vector<4x32xf32>
    %411 = math.tanh %410 : vector<4x32xf32>
    %412 = arith.mulf %408, %367 : vector<4x32xf32>
    %413 = arith.mulf %407, %411 : vector<4x32xf32>
    %414 = arith.addf %412, %413 : vector<4x32xf32>
    %415 = math.tanh %414 : vector<4x32xf32>
    %416 = arith.mulf %409, %415 : vector<4x32xf32>
    %417 = arith.select %396, %416, %366 : vector<4x32xi1>, vector<4x32xf32>
    %418 = arith.select %396, %414, %367 : vector<4x32xi1>, vector<4x32xf32>
    %419 = tpu.concatenate %417, %388 in 1 : vector<4x32xf32>, vector<4x32xf32> -> vector<4x64xf32>
    %420 = arith.truncf %419 : vector<4x64xf32> to vector<4x64xbf16>
    %cst_90 = arith.constant dense<0.000000e+00> : vector<4x128xf32>
    %421 = tpu.matmul %420, %3, %cst_90 {dimension_numbers = #tpu.dot_dimension_numbers<[1], [0], [0], [1], [0, 0, 1, 1], [], []>} : vector<4x64xbf16>, vector<64x128xbf16>, vector<4x128xf32> -> vector<4x128xf32>
    %422 = arith.addf %421, %6 : vector<4x128xf32>
    %423 = vector.extract_strided_slice %422 {offsets = [0, 0], sizes = [4, 96], strides = [1, 1]} : vector<4x128xf32> to vector<4x96xf32>
    %424 = arith.negf %423 : vector<4x96xf32>
    %425 = math.exp %424 : vector<4x96xf32>
    %cst_91 = arith.constant 1.000000e+00 : f32
    %426 = vector.broadcast %cst_91 : f32 to vector<4x96xf32>
    %427 = arith.addf %426, %425 : vector<4x96xf32>
    %428 = arith.divf %426, %427 : vector<4x96xf32>
    %429 = vector.extract_strided_slice %428 {offsets = [0, 0], sizes = [4, 32], strides = [1, 1]} : vector<4x96xf32> to vector<4x32xf32>
    %430 = vector.extract_strided_slice %428 {offsets = [0, 32], sizes = [4, 32], strides = [1, 1]} : vector<4x96xf32> to vector<4x32xf32>
    %431 = vector.extract_strided_slice %428 {offsets = [0, 64], sizes = [4, 32], strides = [1, 1]} : vector<4x96xf32> to vector<4x32xf32>
    %432 = vector.extract_strided_slice %422 {offsets = [0, 96], sizes = [4, 32], strides = [1, 1]} : vector<4x128xf32> to vector<4x32xf32>
    %433 = math.tanh %432 : vector<4x32xf32>
    %434 = arith.mulf %430, %389 : vector<4x32xf32>
    %435 = arith.mulf %429, %433 : vector<4x32xf32>
    %436 = arith.addf %434, %435 : vector<4x32xf32>
    %437 = math.tanh %436 : vector<4x32xf32>
    %438 = arith.mulf %431, %437 : vector<4x32xf32>
    %439 = arith.select %396, %438, %388 : vector<4x32xi1>, vector<4x32xf32>
    %440 = arith.select %396, %436, %389 : vector<4x32xi1>, vector<4x32xf32>
    %cst_92 = arith.constant 0.000000e+00 : f32
    %441 = vector.broadcast %cst_92 : f32 to vector<4x32xf32>
    %442 = arith.select %396, %439, %441 : vector<4x32xi1>, vector<4x32xf32>
    %c7 = arith.constant 7 : index
    %c0_93 = arith.constant 0 : index
    %c0_94 = arith.constant 0 : index
    %443 = vector.load %arg18[%c7, %c0_93, %c0_94] : memref<8x4x32xf32, #tpu.memory_space<vmem>>, vector<1x4x32xf32>
    %444 = vector.shape_cast %443 : vector<1x4x32xf32> to vector<4x32xf32>
    %445 = vector.shape_cast %442 : vector<4x32xf32> to vector<1x4x32xf32>
    tpu.vector_store %arg18[%c7, %c0_93, %c0_94], %445 {strides = array<i32>} : memref<8x4x32xf32, #tpu.memory_space<vmem>>, vector<1x4x32xf32>,
    %446 = vector.extract_strided_slice %33 {offsets = [28, 0], sizes = [4, 128], strides = [1, 1]} : vector<32x128xf32> to vector<4x128xf32>
    %447 = arith.truncf %417 : vector<4x32xf32> to vector<4x32xbf16>
    %cst_95 = arith.constant dense<0.000000e+00> : vector<4x128xf32>
    %448 = tpu.matmul %447, %8, %cst_95 {dimension_numbers = #tpu.dot_dimension_numbers<[1], [0], [0], [1], [0, 0, 1, 1], [], []>} : vector<4x32xbf16>, vector<32x128xbf16>, vector<4x128xf32> -> vector<4x128xf32>
    %449 = arith.addf %446, %448 : vector<4x128xf32>
    %450 = vector.extract_strided_slice %449 {offsets = [0, 0], sizes = [4, 96], strides = [1, 1]} : vector<4x128xf32> to vector<4x96xf32>
    %451 = arith.negf %450 : vector<4x96xf32>
    %452 = math.exp %451 : vector<4x96xf32>
    %cst_96 = arith.constant 1.000000e+00 : f32
    %453 = vector.broadcast %cst_96 : f32 to vector<4x96xf32>
    %454 = arith.addf %453, %452 : vector<4x96xf32>
    %455 = arith.divf %453, %454 : vector<4x96xf32>
    %456 = vector.extract_strided_slice %455 {offsets = [0, 0], sizes = [4, 32], strides = [1, 1]} : vector<4x96xf32> to vector<4x32xf32>
    %457 = vector.extract_strided_slice %455 {offsets = [0, 32], sizes = [4, 32], strides = [1, 1]} : vector<4x96xf32> to vector<4x32xf32>
    %458 = vector.extract_strided_slice %455 {offsets = [0, 64], sizes = [4, 32], strides = [1, 1]} : vector<4x96xf32> to vector<4x32xf32>
    %459 = vector.extract_strided_slice %449 {offsets = [0, 96], sizes = [4, 32], strides = [1, 1]} : vector<4x128xf32> to vector<4x32xf32>
    %460 = math.tanh %459 : vector<4x32xf32>
    %461 = arith.mulf %457, %418 : vector<4x32xf32>
    %462 = arith.mulf %456, %460 : vector<4x32xf32>
    %463 = arith.addf %461, %462 : vector<4x32xf32>
    %464 = math.tanh %463 : vector<4x32xf32>
    %465 = arith.mulf %458, %464 : vector<4x32xf32>
    %466 = tpu.concatenate %465, %439 in 1 : vector<4x32xf32>, vector<4x32xf32> -> vector<4x64xf32>
    %467 = arith.truncf %466 : vector<4x64xf32> to vector<4x64xbf16>
    %cst_97 = arith.constant dense<0.000000e+00> : vector<4x128xf32>
    %468 = tpu.matmul %467, %10, %cst_97 {dimension_numbers = #tpu.dot_dimension_numbers<[1], [0], [0], [1], [0, 0, 1, 1], [], []>} : vector<4x64xbf16>, vector<64x128xbf16>, vector<4x128xf32> -> vector<4x128xf32>
    %469 = arith.addf %468, %13 : vector<4x128xf32>
    %470 = vector.extract_strided_slice %469 {offsets = [0, 0], sizes = [4, 96], strides = [1, 1]} : vector<4x128xf32> to vector<4x96xf32>
    %471 = arith.negf %470 : vector<4x96xf32>
    %472 = math.exp %471 : vector<4x96xf32>
    %cst_98 = arith.constant 1.000000e+00 : f32
    %473 = vector.broadcast %cst_98 : f32 to vector<4x96xf32>
    %474 = arith.addf %473, %472 : vector<4x96xf32>
    %475 = arith.divf %473, %474 : vector<4x96xf32>
    %476 = vector.extract_strided_slice %475 {offsets = [0, 0], sizes = [4, 32], strides = [1, 1]} : vector<4x96xf32> to vector<4x32xf32>
    %477 = vector.extract_strided_slice %475 {offsets = [0, 32], sizes = [4, 32], strides = [1, 1]} : vector<4x96xf32> to vector<4x32xf32>
    %478 = vector.extract_strided_slice %475 {offsets = [0, 64], sizes = [4, 32], strides = [1, 1]} : vector<4x96xf32> to vector<4x32xf32>
    %479 = vector.extract_strided_slice %469 {offsets = [0, 96], sizes = [4, 32], strides = [1, 1]} : vector<4x128xf32> to vector<4x32xf32>
    %480 = math.tanh %479 : vector<4x32xf32>
    %481 = arith.mulf %477, %440 : vector<4x32xf32>
    %482 = arith.mulf %476, %480 : vector<4x32xf32>
    %483 = arith.addf %481, %482 : vector<4x32xf32>
    %484 = math.tanh %483 : vector<4x32xf32>
    %485 = arith.mulf %478, %484 : vector<4x32xf32>
    %cst_99 = arith.constant dense<0.000000e+00> : vector<4x8xf32>
    %486 = tpu.matmul %485, %18, %cst_99 {dimension_numbers = #tpu.dot_dimension_numbers<[1], [0], [0], [1], [0, 0, 1, 1], [], []>} : vector<4x32xf32>, vector<32x8xf32>, vector<4x8xf32> -> vector<4x8xf32>
    %487 = arith.addf %486, %21 : vector<4x8xf32>
    %c0_100 = arith.constant 0 : index
    %c0_101 = arith.constant 0 : index
    %c0_102 = arith.constant 0 : index
    %488 = vector.load %arg17[%c0_100, %c0_101, %c0_102] : memref<8x4x8xf32, #tpu.memory_space<vmem>>, vector<1x4x8xf32>
    %489 = vector.shape_cast %488 : vector<1x4x8xf32> to vector<4x8xf32>
    %490 = vector.shape_cast %487 : vector<4x8xf32> to vector<1x4x8xf32>
    tpu.vector_store %arg17[%c0_100, %c0_101, %c0_102], %490 {strides = array<i32>} : memref<8x4x8xf32, #tpu.memory_space<vmem>>, vector<1x4x8xf32>,
    %491 = arith.truncf %485 : vector<4x32xf32> to vector<4x32xbf16>
    %cst_103 = arith.constant dense<0.000000e+00> : vector<4x128xf32>
    %492 = tpu.matmul %491, %14, %cst_103 {dimension_numbers = #tpu.dot_dimension_numbers<[1], [0], [0], [1], [0, 0, 1, 1], [], []>} : vector<4x32xbf16>, vector<32x128xbf16>, vector<4x128xf32> -> vector<4x128xf32>
    %493 = arith.addf %492, %17 : vector<4x128xf32>
    %494 = vector.extract_strided_slice %27 {offsets = [0, 0], sizes = [4, 128], strides = [1, 1]} : vector<32x128xf32> to vector<4x128xf32>
    %cst_104 = arith.constant 5.000000e-01 : f32
    %495 = vector.broadcast %cst_104 : f32 to vector<4x128xf32>
    %496 = arith.cmpf ogt, %494, %495 : vector<4x128xf32>
    %497 = vector.extract_strided_slice %33 {offsets = [0, 0], sizes = [4, 128], strides = [1, 1]} : vector<32x128xf32> to vector<4x128xf32>
    %498 = arith.select %496, %497, %493 : vector<4x128xi1>, vector<4x128xf32>
    %499 = arith.truncf %465 : vector<4x32xf32> to vector<4x32xbf16>
    %cst_105 = arith.constant dense<0.000000e+00> : vector<4x128xf32>
    %500 = tpu.matmul %499, %8, %cst_105 {dimension_numbers = #tpu.dot_dimension_numbers<[1], [0], [0], [1], [0, 0, 1, 1], [], []>} : vector<4x32xbf16>, vector<32x128xbf16>, vector<4x128xf32> -> vector<4x128xf32>
    %501 = arith.addf %498, %500 : vector<4x128xf32>
    %502 = vector.extract_strided_slice %501 {offsets = [0, 0], sizes = [4, 96], strides = [1, 1]} : vector<4x128xf32> to vector<4x96xf32>
    %503 = arith.negf %502 : vector<4x96xf32>
    %504 = math.exp %503 : vector<4x96xf32>
    %cst_106 = arith.constant 1.000000e+00 : f32
    %505 = vector.broadcast %cst_106 : f32 to vector<4x96xf32>
    %506 = arith.addf %505, %504 : vector<4x96xf32>
    %507 = arith.divf %505, %506 : vector<4x96xf32>
    %508 = vector.extract_strided_slice %507 {offsets = [0, 0], sizes = [4, 32], strides = [1, 1]} : vector<4x96xf32> to vector<4x32xf32>
    %509 = vector.extract_strided_slice %507 {offsets = [0, 32], sizes = [4, 32], strides = [1, 1]} : vector<4x96xf32> to vector<4x32xf32>
    %510 = vector.extract_strided_slice %507 {offsets = [0, 64], sizes = [4, 32], strides = [1, 1]} : vector<4x96xf32> to vector<4x32xf32>
    %511 = vector.extract_strided_slice %501 {offsets = [0, 96], sizes = [4, 32], strides = [1, 1]} : vector<4x128xf32> to vector<4x32xf32>
    %512 = math.tanh %511 : vector<4x32xf32>
    %513 = arith.mulf %509, %463 : vector<4x32xf32>
    %514 = arith.mulf %508, %512 : vector<4x32xf32>
    %515 = arith.addf %513, %514 : vector<4x32xf32>
    %516 = math.tanh %515 : vector<4x32xf32>
    %517 = arith.mulf %510, %516 : vector<4x32xf32>
    %518 = tpu.concatenate %517, %485 in 1 : vector<4x32xf32>, vector<4x32xf32> -> vector<4x64xf32>
    %519 = arith.truncf %518 : vector<4x64xf32> to vector<4x64xbf16>
    %cst_107 = arith.constant dense<0.000000e+00> : vector<4x128xf32>
    %520 = tpu.matmul %519, %10, %cst_107 {dimension_numbers = #tpu.dot_dimension_numbers<[1], [0], [0], [1], [0, 0, 1, 1], [], []>} : vector<4x64xbf16>, vector<64x128xbf16>, vector<4x128xf32> -> vector<4x128xf32>
    %521 = arith.addf %520, %13 : vector<4x128xf32>
    %522 = vector.extract_strided_slice %521 {offsets = [0, 0], sizes = [4, 96], strides = [1, 1]} : vector<4x128xf32> to vector<4x96xf32>
    %523 = arith.negf %522 : vector<4x96xf32>
    %524 = math.exp %523 : vector<4x96xf32>
    %cst_108 = arith.constant 1.000000e+00 : f32
    %525 = vector.broadcast %cst_108 : f32 to vector<4x96xf32>
    %526 = arith.addf %525, %524 : vector<4x96xf32>
    %527 = arith.divf %525, %526 : vector<4x96xf32>
    %528 = vector.extract_strided_slice %527 {offsets = [0, 0], sizes = [4, 32], strides = [1, 1]} : vector<4x96xf32> to vector<4x32xf32>
    %529 = vector.extract_strided_slice %527 {offsets = [0, 32], sizes = [4, 32], strides = [1, 1]} : vector<4x96xf32> to vector<4x32xf32>
    %530 = vector.extract_strided_slice %527 {offsets = [0, 64], sizes = [4, 32], strides = [1, 1]} : vector<4x96xf32> to vector<4x32xf32>
    %531 = vector.extract_strided_slice %521 {offsets = [0, 96], sizes = [4, 32], strides = [1, 1]} : vector<4x128xf32> to vector<4x32xf32>
    %532 = math.tanh %531 : vector<4x32xf32>
    %533 = arith.mulf %529, %483 : vector<4x32xf32>
    %534 = arith.mulf %528, %532 : vector<4x32xf32>
    %535 = arith.addf %533, %534 : vector<4x32xf32>
    %536 = math.tanh %535 : vector<4x32xf32>
    %537 = arith.mulf %530, %536 : vector<4x32xf32>
    %cst_109 = arith.constant dense<0.000000e+00> : vector<4x8xf32>
    %538 = tpu.matmul %537, %18, %cst_109 {dimension_numbers = #tpu.dot_dimension_numbers<[1], [0], [0], [1], [0, 0, 1, 1], [], []>} : vector<4x32xf32>, vector<32x8xf32>, vector<4x8xf32> -> vector<4x8xf32>
    %539 = arith.addf %538, %21 : vector<4x8xf32>
    %c1_110 = arith.constant 1 : index
    %c0_111 = arith.constant 0 : index
    %c0_112 = arith.constant 0 : index
    %540 = vector.load %arg17[%c1_110, %c0_111, %c0_112] : memref<8x4x8xf32, #tpu.memory_space<vmem>>, vector<1x4x8xf32>
    %541 = vector.shape_cast %540 : vector<1x4x8xf32> to vector<4x8xf32>
    %542 = vector.shape_cast %539 : vector<4x8xf32> to vector<1x4x8xf32>
    tpu.vector_store %arg17[%c1_110, %c0_111, %c0_112], %542 {strides = array<i32>} : memref<8x4x8xf32, #tpu.memory_space<vmem>>, vector<1x4x8xf32>,
    %543 = arith.truncf %537 : vector<4x32xf32> to vector<4x32xbf16>
    %cst_113 = arith.constant dense<0.000000e+00> : vector<4x128xf32>
    %544 = tpu.matmul %543, %14, %cst_113 {dimension_numbers = #tpu.dot_dimension_numbers<[1], [0], [0], [1], [0, 0, 1, 1], [], []>} : vector<4x32xbf16>, vector<32x128xbf16>, vector<4x128xf32> -> vector<4x128xf32>
    %545 = arith.addf %544, %17 : vector<4x128xf32>
    %546 = vector.extract_strided_slice %27 {offsets = [4, 0], sizes = [4, 128], strides = [1, 1]} : vector<32x128xf32> to vector<4x128xf32>
    %cst_114 = arith.constant 5.000000e-01 : f32
    %547 = vector.broadcast %cst_114 : f32 to vector<4x128xf32>
    %548 = arith.cmpf ogt, %546, %547 : vector<4x128xf32>
    %549 = vector.extract_strided_slice %33 {offsets = [4, 0], sizes = [4, 128], strides = [1, 1]} : vector<32x128xf32> to vector<4x128xf32>
    %550 = arith.select %548, %549, %545 : vector<4x128xi1>, vector<4x128xf32>
    %551 = arith.truncf %517 : vector<4x32xf32> to vector<4x32xbf16>
    %cst_115 = arith.constant dense<0.000000e+00> : vector<4x128xf32>
    %552 = tpu.matmul %551, %8, %cst_115 {dimension_numbers = #tpu.dot_dimension_numbers<[1], [0], [0], [1], [0, 0, 1, 1], [], []>} : vector<4x32xbf16>, vector<32x128xbf16>, vector<4x128xf32> -> vector<4x128xf32>
    %553 = arith.addf %550, %552 : vector<4x128xf32>
    %554 = vector.extract_strided_slice %553 {offsets = [0, 0], sizes = [4, 96], strides = [1, 1]} : vector<4x128xf32> to vector<4x96xf32>
    %555 = arith.negf %554 : vector<4x96xf32>
    %556 = math.exp %555 : vector<4x96xf32>
    %cst_116 = arith.constant 1.000000e+00 : f32
    %557 = vector.broadcast %cst_116 : f32 to vector<4x96xf32>
    %558 = arith.addf %557, %556 : vector<4x96xf32>
    %559 = arith.divf %557, %558 : vector<4x96xf32>
    %560 = vector.extract_strided_slice %559 {offsets = [0, 0], sizes = [4, 32], strides = [1, 1]} : vector<4x96xf32> to vector<4x32xf32>
    %561 = vector.extract_strided_slice %559 {offsets = [0, 32], sizes = [4, 32], strides = [1, 1]} : vector<4x96xf32> to vector<4x32xf32>
    %562 = vector.extract_strided_slice %559 {offsets = [0, 64], sizes = [4, 32], strides = [1, 1]} : vector<4x96xf32> to vector<4x32xf32>
    %563 = vector.extract_strided_slice %553 {offsets = [0, 96], sizes = [4, 32], strides = [1, 1]} : vector<4x128xf32> to vector<4x32xf32>
    %564 = math.tanh %563 : vector<4x32xf32>
    %565 = arith.mulf %561, %515 : vector<4x32xf32>
    %566 = arith.mulf %560, %564 : vector<4x32xf32>
    %567 = arith.addf %565, %566 : vector<4x32xf32>
    %568 = math.tanh %567 : vector<4x32xf32>
    %569 = arith.mulf %562, %568 : vector<4x32xf32>
    %570 = tpu.concatenate %569, %537 in 1 : vector<4x32xf32>, vector<4x32xf32> -> vector<4x64xf32>
    %571 = arith.truncf %570 : vector<4x64xf32> to vector<4x64xbf16>
    %cst_117 = arith.constant dense<0.000000e+00> : vector<4x128xf32>
    %572 = tpu.matmul %571, %10, %cst_117 {dimension_numbers = #tpu.dot_dimension_numbers<[1], [0], [0], [1], [0, 0, 1, 1], [], []>} : vector<4x64xbf16>, vector<64x128xbf16>, vector<4x128xf32> -> vector<4x128xf32>
    %573 = arith.addf %572, %13 : vector<4x128xf32>
    %574 = vector.extract_strided_slice %573 {offsets = [0, 0], sizes = [4, 96], strides = [1, 1]} : vector<4x128xf32> to vector<4x96xf32>
    %575 = arith.negf %574 : vector<4x96xf32>
    %576 = math.exp %575 : vector<4x96xf32>
    %cst_118 = arith.constant 1.000000e+00 : f32
    %577 = vector.broadcast %cst_118 : f32 to vector<4x96xf32>
    %578 = arith.addf %577, %576 : vector<4x96xf32>
    %579 = arith.divf %577, %578 : vector<4x96xf32>
    %580 = vector.extract_strided_slice %579 {offsets = [0, 0], sizes = [4, 32], strides = [1, 1]} : vector<4x96xf32> to vector<4x32xf32>
    %581 = vector.extract_strided_slice %579 {offsets = [0, 32], sizes = [4, 32], strides = [1, 1]} : vector<4x96xf32> to vector<4x32xf32>
    %582 = vector.extract_strided_slice %579 {offsets = [0, 64], sizes = [4, 32], strides = [1, 1]} : vector<4x96xf32> to vector<4x32xf32>
    %583 = vector.extract_strided_slice %573 {offsets = [0, 96], sizes = [4, 32], strides = [1, 1]} : vector<4x128xf32> to vector<4x32xf32>
    %584 = math.tanh %583 : vector<4x32xf32>
    %585 = arith.mulf %581, %535 : vector<4x32xf32>
    %586 = arith.mulf %580, %584 : vector<4x32xf32>
    %587 = arith.addf %585, %586 : vector<4x32xf32>
    %588 = math.tanh %587 : vector<4x32xf32>
    %589 = arith.mulf %582, %588 : vector<4x32xf32>
    %cst_119 = arith.constant dense<0.000000e+00> : vector<4x8xf32>
    %590 = tpu.matmul %589, %18, %cst_119 {dimension_numbers = #tpu.dot_dimension_numbers<[1], [0], [0], [1], [0, 0, 1, 1], [], []>} : vector<4x32xf32>, vector<32x8xf32>, vector<4x8xf32> -> vector<4x8xf32>
    %591 = arith.addf %590, %21 : vector<4x8xf32>
    %c2_120 = arith.constant 2 : index
    %c0_121 = arith.constant 0 : index
    %c0_122 = arith.constant 0 : index
    %592 = vector.load %arg17[%c2_120, %c0_121, %c0_122] : memref<8x4x8xf32, #tpu.memory_space<vmem>>, vector<1x4x8xf32>
    %593 = vector.shape_cast %592 : vector<1x4x8xf32> to vector<4x8xf32>
    %594 = vector.shape_cast %591 : vector<4x8xf32> to vector<1x4x8xf32>
    tpu.vector_store %arg17[%c2_120, %c0_121, %c0_122], %594 {strides = array<i32>} : memref<8x4x8xf32, #tpu.memory_space<vmem>>, vector<1x4x8xf32>,
    %595 = arith.truncf %589 : vector<4x32xf32> to vector<4x32xbf16>
    %cst_123 = arith.constant dense<0.000000e+00> : vector<4x128xf32>
    %596 = tpu.matmul %595, %14, %cst_123 {dimension_numbers = #tpu.dot_dimension_numbers<[1], [0], [0], [1], [0, 0, 1, 1], [], []>} : vector<4x32xbf16>, vector<32x128xbf16>, vector<4x128xf32> -> vector<4x128xf32>
    %597 = arith.addf %596, %17 : vector<4x128xf32>
    %598 = vector.extract_strided_slice %27 {offsets = [8, 0], sizes = [4, 128], strides = [1, 1]} : vector<32x128xf32> to vector<4x128xf32>
    %cst_124 = arith.constant 5.000000e-01 : f32
    %599 = vector.broadcast %cst_124 : f32 to vector<4x128xf32>
    %600 = arith.cmpf ogt, %598, %599 : vector<4x128xf32>
    %601 = vector.extract_strided_slice %33 {offsets = [8, 0], sizes = [4, 128], strides = [1, 1]} : vector<32x128xf32> to vector<4x128xf32>
    %602 = arith.select %600, %601, %597 : vector<4x128xi1>, vector<4x128xf32>
    %603 = arith.truncf %569 : vector<4x32xf32> to vector<4x32xbf16>
    %cst_125 = arith.constant dense<0.000000e+00> : vector<4x128xf32>
    %604 = tpu.matmul %603, %8, %cst_125 {dimension_numbers = #tpu.dot_dimension_numbers<[1], [0], [0], [1], [0, 0, 1, 1], [], []>} : vector<4x32xbf16>, vector<32x128xbf16>, vector<4x128xf32> -> vector<4x128xf32>
    %605 = arith.addf %602, %604 : vector<4x128xf32>
    %606 = vector.extract_strided_slice %605 {offsets = [0, 0], sizes = [4, 96], strides = [1, 1]} : vector<4x128xf32> to vector<4x96xf32>
    %607 = arith.negf %606 : vector<4x96xf32>
    %608 = math.exp %607 : vector<4x96xf32>
    %cst_126 = arith.constant 1.000000e+00 : f32
    %609 = vector.broadcast %cst_126 : f32 to vector<4x96xf32>
    %610 = arith.addf %609, %608 : vector<4x96xf32>
    %611 = arith.divf %609, %610 : vector<4x96xf32>
    %612 = vector.extract_strided_slice %611 {offsets = [0, 0], sizes = [4, 32], strides = [1, 1]} : vector<4x96xf32> to vector<4x32xf32>
    %613 = vector.extract_strided_slice %611 {offsets = [0, 32], sizes = [4, 32], strides = [1, 1]} : vector<4x96xf32> to vector<4x32xf32>
    %614 = vector.extract_strided_slice %611 {offsets = [0, 64], sizes = [4, 32], strides = [1, 1]} : vector<4x96xf32> to vector<4x32xf32>
    %615 = vector.extract_strided_slice %605 {offsets = [0, 96], sizes = [4, 32], strides = [1, 1]} : vector<4x128xf32> to vector<4x32xf32>
    %616 = math.tanh %615 : vector<4x32xf32>
    %617 = arith.mulf %613, %567 : vector<4x32xf32>
    %618 = arith.mulf %612, %616 : vector<4x32xf32>
    %619 = arith.addf %617, %618 : vector<4x32xf32>
    %620 = math.tanh %619 : vector<4x32xf32>
    %621 = arith.mulf %614, %620 : vector<4x32xf32>
    %622 = tpu.concatenate %621, %589 in 1 : vector<4x32xf32>, vector<4x32xf32> -> vector<4x64xf32>
    %623 = arith.truncf %622 : vector<4x64xf32> to vector<4x64xbf16>
    %cst_127 = arith.constant dense<0.000000e+00> : vector<4x128xf32>
    %624 = tpu.matmul %623, %10, %cst_127 {dimension_numbers = #tpu.dot_dimension_numbers<[1], [0], [0], [1], [0, 0, 1, 1], [], []>} : vector<4x64xbf16>, vector<64x128xbf16>, vector<4x128xf32> -> vector<4x128xf32>
    %625 = arith.addf %624, %13 : vector<4x128xf32>
    %626 = vector.extract_strided_slice %625 {offsets = [0, 0], sizes = [4, 96], strides = [1, 1]} : vector<4x128xf32> to vector<4x96xf32>
    %627 = arith.negf %626 : vector<4x96xf32>
    %628 = math.exp %627 : vector<4x96xf32>
    %cst_128 = arith.constant 1.000000e+00 : f32
    %629 = vector.broadcast %cst_128 : f32 to vector<4x96xf32>
    %630 = arith.addf %629, %628 : vector<4x96xf32>
    %631 = arith.divf %629, %630 : vector<4x96xf32>
    %632 = vector.extract_strided_slice %631 {offsets = [0, 0], sizes = [4, 32], strides = [1, 1]} : vector<4x96xf32> to vector<4x32xf32>
    %633 = vector.extract_strided_slice %631 {offsets = [0, 32], sizes = [4, 32], strides = [1, 1]} : vector<4x96xf32> to vector<4x32xf32>
    %634 = vector.extract_strided_slice %631 {offsets = [0, 64], sizes = [4, 32], strides = [1, 1]} : vector<4x96xf32> to vector<4x32xf32>
    %635 = vector.extract_strided_slice %625 {offsets = [0, 96], sizes = [4, 32], strides = [1, 1]} : vector<4x128xf32> to vector<4x32xf32>
    %636 = math.tanh %635 : vector<4x32xf32>
    %637 = arith.mulf %633, %587 : vector<4x32xf32>
    %638 = arith.mulf %632, %636 : vector<4x32xf32>
    %639 = arith.addf %637, %638 : vector<4x32xf32>
    %640 = math.tanh %639 : vector<4x32xf32>
    %641 = arith.mulf %634, %640 : vector<4x32xf32>
    %cst_129 = arith.constant dense<0.000000e+00> : vector<4x8xf32>
    %642 = tpu.matmul %641, %18, %cst_129 {dimension_numbers = #tpu.dot_dimension_numbers<[1], [0], [0], [1], [0, 0, 1, 1], [], []>} : vector<4x32xf32>, vector<32x8xf32>, vector<4x8xf32> -> vector<4x8xf32>
    %643 = arith.addf %642, %21 : vector<4x8xf32>
    %c3_130 = arith.constant 3 : index
    %c0_131 = arith.constant 0 : index
    %c0_132 = arith.constant 0 : index
    %644 = vector.load %arg17[%c3_130, %c0_131, %c0_132] : memref<8x4x8xf32, #tpu.memory_space<vmem>>, vector<1x4x8xf32>
    %645 = vector.shape_cast %644 : vector<1x4x8xf32> to vector<4x8xf32>
    %646 = vector.shape_cast %643 : vector<4x8xf32> to vector<1x4x8xf32>
    tpu.vector_store %arg17[%c3_130, %c0_131, %c0_132], %646 {strides = array<i32>} : memref<8x4x8xf32, #tpu.memory_space<vmem>>, vector<1x4x8xf32>,
    %647 = arith.truncf %641 : vector<4x32xf32> to vector<4x32xbf16>
    %cst_133 = arith.constant dense<0.000000e+00> : vector<4x128xf32>
    %648 = tpu.matmul %647, %14, %cst_133 {dimension_numbers = #tpu.dot_dimension_numbers<[1], [0], [0], [1], [0, 0, 1, 1], [], []>} : vector<4x32xbf16>, vector<32x128xbf16>, vector<4x128xf32> -> vector<4x128xf32>
    %649 = arith.addf %648, %17 : vector<4x128xf32>
    %650 = vector.extract_strided_slice %27 {offsets = [12, 0], sizes = [4, 128], strides = [1, 1]} : vector<32x128xf32> to vector<4x128xf32>
    %cst_134 = arith.constant 5.000000e-01 : f32
    %651 = vector.broadcast %cst_134 : f32 to vector<4x128xf32>
    %652 = arith.cmpf ogt, %650, %651 : vector<4x128xf32>
    %653 = vector.extract_strided_slice %33 {offsets = [12, 0], sizes = [4, 128], strides = [1, 1]} : vector<32x128xf32> to vector<4x128xf32>
    %654 = arith.select %652, %653, %649 : vector<4x128xi1>, vector<4x128xf32>
    %655 = arith.truncf %621 : vector<4x32xf32> to vector<4x32xbf16>
    %cst_135 = arith.constant dense<0.000000e+00> : vector<4x128xf32>
    %656 = tpu.matmul %655, %8, %cst_135 {dimension_numbers = #tpu.dot_dimension_numbers<[1], [0], [0], [1], [0, 0, 1, 1], [], []>} : vector<4x32xbf16>, vector<32x128xbf16>, vector<4x128xf32> -> vector<4x128xf32>
    %657 = arith.addf %654, %656 : vector<4x128xf32>
    %658 = vector.extract_strided_slice %657 {offsets = [0, 0], sizes = [4, 96], strides = [1, 1]} : vector<4x128xf32> to vector<4x96xf32>
    %659 = arith.negf %658 : vector<4x96xf32>
    %660 = math.exp %659 : vector<4x96xf32>
    %cst_136 = arith.constant 1.000000e+00 : f32
    %661 = vector.broadcast %cst_136 : f32 to vector<4x96xf32>
    %662 = arith.addf %661, %660 : vector<4x96xf32>
    %663 = arith.divf %661, %662 : vector<4x96xf32>
    %664 = vector.extract_strided_slice %663 {offsets = [0, 0], sizes = [4, 32], strides = [1, 1]} : vector<4x96xf32> to vector<4x32xf32>
    %665 = vector.extract_strided_slice %663 {offsets = [0, 32], sizes = [4, 32], strides = [1, 1]} : vector<4x96xf32> to vector<4x32xf32>
    %666 = vector.extract_strided_slice %663 {offsets = [0, 64], sizes = [4, 32], strides = [1, 1]} : vector<4x96xf32> to vector<4x32xf32>
    %667 = vector.extract_strided_slice %657 {offsets = [0, 96], sizes = [4, 32], strides = [1, 1]} : vector<4x128xf32> to vector<4x32xf32>
    %668 = math.tanh %667 : vector<4x32xf32>
    %669 = arith.mulf %665, %619 : vector<4x32xf32>
    %670 = arith.mulf %664, %668 : vector<4x32xf32>
    %671 = arith.addf %669, %670 : vector<4x32xf32>
    %672 = math.tanh %671 : vector<4x32xf32>
    %673 = arith.mulf %666, %672 : vector<4x32xf32>
    %674 = tpu.concatenate %673, %641 in 1 : vector<4x32xf32>, vector<4x32xf32> -> vector<4x64xf32>
    %675 = arith.truncf %674 : vector<4x64xf32> to vector<4x64xbf16>
    %cst_137 = arith.constant dense<0.000000e+00> : vector<4x128xf32>
    %676 = tpu.matmul %675, %10, %cst_137 {dimension_numbers = #tpu.dot_dimension_numbers<[1], [0], [0], [1], [0, 0, 1, 1], [], []>} : vector<4x64xbf16>, vector<64x128xbf16>, vector<4x128xf32> -> vector<4x128xf32>
    %677 = arith.addf %676, %13 : vector<4x128xf32>
    %678 = vector.extract_strided_slice %677 {offsets = [0, 0], sizes = [4, 96], strides = [1, 1]} : vector<4x128xf32> to vector<4x96xf32>
    %679 = arith.negf %678 : vector<4x96xf32>
    %680 = math.exp %679 : vector<4x96xf32>
    %cst_138 = arith.constant 1.000000e+00 : f32
    %681 = vector.broadcast %cst_138 : f32 to vector<4x96xf32>
    %682 = arith.addf %681, %680 : vector<4x96xf32>
    %683 = arith.divf %681, %682 : vector<4x96xf32>
    %684 = vector.extract_strided_slice %683 {offsets = [0, 0], sizes = [4, 32], strides = [1, 1]} : vector<4x96xf32> to vector<4x32xf32>
    %685 = vector.extract_strided_slice %683 {offsets = [0, 32], sizes = [4, 32], strides = [1, 1]} : vector<4x96xf32> to vector<4x32xf32>
    %686 = vector.extract_strided_slice %683 {offsets = [0, 64], sizes = [4, 32], strides = [1, 1]} : vector<4x96xf32> to vector<4x32xf32>
    %687 = vector.extract_strided_slice %677 {offsets = [0, 96], sizes = [4, 32], strides = [1, 1]} : vector<4x128xf32> to vector<4x32xf32>
    %688 = math.tanh %687 : vector<4x32xf32>
    %689 = arith.mulf %685, %639 : vector<4x32xf32>
    %690 = arith.mulf %684, %688 : vector<4x32xf32>
    %691 = arith.addf %689, %690 : vector<4x32xf32>
    %692 = math.tanh %691 : vector<4x32xf32>
    %693 = arith.mulf %686, %692 : vector<4x32xf32>
    %cst_139 = arith.constant dense<0.000000e+00> : vector<4x8xf32>
    %694 = tpu.matmul %693, %18, %cst_139 {dimension_numbers = #tpu.dot_dimension_numbers<[1], [0], [0], [1], [0, 0, 1, 1], [], []>} : vector<4x32xf32>, vector<32x8xf32>, vector<4x8xf32> -> vector<4x8xf32>
    %695 = arith.addf %694, %21 : vector<4x8xf32>
    %c4_140 = arith.constant 4 : index
    %c0_141 = arith.constant 0 : index
    %c0_142 = arith.constant 0 : index
    %696 = vector.load %arg17[%c4_140, %c0_141, %c0_142] : memref<8x4x8xf32, #tpu.memory_space<vmem>>, vector<1x4x8xf32>
    %697 = vector.shape_cast %696 : vector<1x4x8xf32> to vector<4x8xf32>
    %698 = vector.shape_cast %695 : vector<4x8xf32> to vector<1x4x8xf32>
    tpu.vector_store %arg17[%c4_140, %c0_141, %c0_142], %698 {strides = array<i32>} : memref<8x4x8xf32, #tpu.memory_space<vmem>>, vector<1x4x8xf32>,
    %699 = arith.truncf %693 : vector<4x32xf32> to vector<4x32xbf16>
    %cst_143 = arith.constant dense<0.000000e+00> : vector<4x128xf32>
    %700 = tpu.matmul %699, %14, %cst_143 {dimension_numbers = #tpu.dot_dimension_numbers<[1], [0], [0], [1], [0, 0, 1, 1], [], []>} : vector<4x32xbf16>, vector<32x128xbf16>, vector<4x128xf32> -> vector<4x128xf32>
    %701 = arith.addf %700, %17 : vector<4x128xf32>
    %702 = vector.extract_strided_slice %27 {offsets = [16, 0], sizes = [4, 128], strides = [1, 1]} : vector<32x128xf32> to vector<4x128xf32>
    %cst_144 = arith.constant 5.000000e-01 : f32
    %703 = vector.broadcast %cst_144 : f32 to vector<4x128xf32>
    %704 = arith.cmpf ogt, %702, %703 : vector<4x128xf32>
    %705 = vector.extract_strided_slice %33 {offsets = [16, 0], sizes = [4, 128], strides = [1, 1]} : vector<32x128xf32> to vector<4x128xf32>
    %706 = arith.select %704, %705, %701 : vector<4x128xi1>, vector<4x128xf32>
    %707 = arith.truncf %673 : vector<4x32xf32> to vector<4x32xbf16>
    %cst_145 = arith.constant dense<0.000000e+00> : vector<4x128xf32>
    %708 = tpu.matmul %707, %8, %cst_145 {dimension_numbers = #tpu.dot_dimension_numbers<[1], [0], [0], [1], [0, 0, 1, 1], [], []>} : vector<4x32xbf16>, vector<32x128xbf16>, vector<4x128xf32> -> vector<4x128xf32>
    %709 = arith.addf %706, %708 : vector<4x128xf32>
    %710 = vector.extract_strided_slice %709 {offsets = [0, 0], sizes = [4, 96], strides = [1, 1]} : vector<4x128xf32> to vector<4x96xf32>
    %711 = arith.negf %710 : vector<4x96xf32>
    %712 = math.exp %711 : vector<4x96xf32>
    %cst_146 = arith.constant 1.000000e+00 : f32
    %713 = vector.broadcast %cst_146 : f32 to vector<4x96xf32>
    %714 = arith.addf %713, %712 : vector<4x96xf32>
    %715 = arith.divf %713, %714 : vector<4x96xf32>
    %716 = vector.extract_strided_slice %715 {offsets = [0, 0], sizes = [4, 32], strides = [1, 1]} : vector<4x96xf32> to vector<4x32xf32>
    %717 = vector.extract_strided_slice %715 {offsets = [0, 32], sizes = [4, 32], strides = [1, 1]} : vector<4x96xf32> to vector<4x32xf32>
    %718 = vector.extract_strided_slice %715 {offsets = [0, 64], sizes = [4, 32], strides = [1, 1]} : vector<4x96xf32> to vector<4x32xf32>
    %719 = vector.extract_strided_slice %709 {offsets = [0, 96], sizes = [4, 32], strides = [1, 1]} : vector<4x128xf32> to vector<4x32xf32>
    %720 = math.tanh %719 : vector<4x32xf32>
    %721 = arith.mulf %717, %671 : vector<4x32xf32>
    %722 = arith.mulf %716, %720 : vector<4x32xf32>
    %723 = arith.addf %721, %722 : vector<4x32xf32>
    %724 = math.tanh %723 : vector<4x32xf32>
    %725 = arith.mulf %718, %724 : vector<4x32xf32>
    %726 = tpu.concatenate %725, %693 in 1 : vector<4x32xf32>, vector<4x32xf32> -> vector<4x64xf32>
    %727 = arith.truncf %726 : vector<4x64xf32> to vector<4x64xbf16>
    %cst_147 = arith.constant dense<0.000000e+00> : vector<4x128xf32>
    %728 = tpu.matmul %727, %10, %cst_147 {dimension_numbers = #tpu.dot_dimension_numbers<[1], [0], [0], [1], [0, 0, 1, 1], [], []>} : vector<4x64xbf16>, vector<64x128xbf16>, vector<4x128xf32> -> vector<4x128xf32>
    %729 = arith.addf %728, %13 : vector<4x128xf32>
    %730 = vector.extract_strided_slice %729 {offsets = [0, 0], sizes = [4, 96], strides = [1, 1]} : vector<4x128xf32> to vector<4x96xf32>
    %731 = arith.negf %730 : vector<4x96xf32>
    %732 = math.exp %731 : vector<4x96xf32>
    %cst_148 = arith.constant 1.000000e+00 : f32
    %733 = vector.broadcast %cst_148 : f32 to vector<4x96xf32>
    %734 = arith.addf %733, %732 : vector<4x96xf32>
    %735 = arith.divf %733, %734 : vector<4x96xf32>
    %736 = vector.extract_strided_slice %735 {offsets = [0, 0], sizes = [4, 32], strides = [1, 1]} : vector<4x96xf32> to vector<4x32xf32>
    %737 = vector.extract_strided_slice %735 {offsets = [0, 32], sizes = [4, 32], strides = [1, 1]} : vector<4x96xf32> to vector<4x32xf32>
    %738 = vector.extract_strided_slice %735 {offsets = [0, 64], sizes = [4, 32], strides = [1, 1]} : vector<4x96xf32> to vector<4x32xf32>
    %739 = vector.extract_strided_slice %729 {offsets = [0, 96], sizes = [4, 32], strides = [1, 1]} : vector<4x128xf32> to vector<4x32xf32>
    %740 = math.tanh %739 : vector<4x32xf32>
    %741 = arith.mulf %737, %691 : vector<4x32xf32>
    %742 = arith.mulf %736, %740 : vector<4x32xf32>
    %743 = arith.addf %741, %742 : vector<4x32xf32>
    %744 = math.tanh %743 : vector<4x32xf32>
    %745 = arith.mulf %738, %744 : vector<4x32xf32>
    %cst_149 = arith.constant dense<0.000000e+00> : vector<4x8xf32>
    %746 = tpu.matmul %745, %18, %cst_149 {dimension_numbers = #tpu.dot_dimension_numbers<[1], [0], [0], [1], [0, 0, 1, 1], [], []>} : vector<4x32xf32>, vector<32x8xf32>, vector<4x8xf32> -> vector<4x8xf32>
    %747 = arith.addf %746, %21 : vector<4x8xf32>
    %c5_150 = arith.constant 5 : index
    %c0_151 = arith.constant 0 : index
    %c0_152 = arith.constant 0 : index
    %748 = vector.load %arg17[%c5_150, %c0_151, %c0_152] : memref<8x4x8xf32, #tpu.memory_space<vmem>>, vector<1x4x8xf32>
    %749 = vector.shape_cast %748 : vector<1x4x8xf32> to vector<4x8xf32>
    %750 = vector.shape_cast %747 : vector<4x8xf32> to vector<1x4x8xf32>
    tpu.vector_store %arg17[%c5_150, %c0_151, %c0_152], %750 {strides = array<i32>} : memref<8x4x8xf32, #tpu.memory_space<vmem>>, vector<1x4x8xf32>,
    %751 = arith.truncf %745 : vector<4x32xf32> to vector<4x32xbf16>
    %cst_153 = arith.constant dense<0.000000e+00> : vector<4x128xf32>
    %752 = tpu.matmul %751, %14, %cst_153 {dimension_numbers = #tpu.dot_dimension_numbers<[1], [0], [0], [1], [0, 0, 1, 1], [], []>} : vector<4x32xbf16>, vector<32x128xbf16>, vector<4x128xf32> -> vector<4x128xf32>
    %753 = arith.addf %752, %17 : vector<4x128xf32>
    %754 = vector.extract_strided_slice %27 {offsets = [20, 0], sizes = [4, 128], strides = [1, 1]} : vector<32x128xf32> to vector<4x128xf32>
    %cst_154 = arith.constant 5.000000e-01 : f32
    %755 = vector.broadcast %cst_154 : f32 to vector<4x128xf32>
    %756 = arith.cmpf ogt, %754, %755 : vector<4x128xf32>
    %757 = vector.extract_strided_slice %33 {offsets = [20, 0], sizes = [4, 128], strides = [1, 1]} : vector<32x128xf32> to vector<4x128xf32>
    %758 = arith.select %756, %757, %753 : vector<4x128xi1>, vector<4x128xf32>
    %759 = arith.truncf %725 : vector<4x32xf32> to vector<4x32xbf16>
    %cst_155 = arith.constant dense<0.000000e+00> : vector<4x128xf32>
    %760 = tpu.matmul %759, %8, %cst_155 {dimension_numbers = #tpu.dot_dimension_numbers<[1], [0], [0], [1], [0, 0, 1, 1], [], []>} : vector<4x32xbf16>, vector<32x128xbf16>, vector<4x128xf32> -> vector<4x128xf32>
    %761 = arith.addf %758, %760 : vector<4x128xf32>
    %762 = vector.extract_strided_slice %761 {offsets = [0, 0], sizes = [4, 96], strides = [1, 1]} : vector<4x128xf32> to vector<4x96xf32>
    %763 = arith.negf %762 : vector<4x96xf32>
    %764 = math.exp %763 : vector<4x96xf32>
    %cst_156 = arith.constant 1.000000e+00 : f32
    %765 = vector.broadcast %cst_156 : f32 to vector<4x96xf32>
    %766 = arith.addf %765, %764 : vector<4x96xf32>
    %767 = arith.divf %765, %766 : vector<4x96xf32>
    %768 = vector.extract_strided_slice %767 {offsets = [0, 0], sizes = [4, 32], strides = [1, 1]} : vector<4x96xf32> to vector<4x32xf32>
    %769 = vector.extract_strided_slice %767 {offsets = [0, 32], sizes = [4, 32], strides = [1, 1]} : vector<4x96xf32> to vector<4x32xf32>
    %770 = vector.extract_strided_slice %767 {offsets = [0, 64], sizes = [4, 32], strides = [1, 1]} : vector<4x96xf32> to vector<4x32xf32>
    %771 = vector.extract_strided_slice %761 {offsets = [0, 96], sizes = [4, 32], strides = [1, 1]} : vector<4x128xf32> to vector<4x32xf32>
    %772 = math.tanh %771 : vector<4x32xf32>
    %773 = arith.mulf %769, %723 : vector<4x32xf32>
    %774 = arith.mulf %768, %772 : vector<4x32xf32>
    %775 = arith.addf %773, %774 : vector<4x32xf32>
    %776 = math.tanh %775 : vector<4x32xf32>
    %777 = arith.mulf %770, %776 : vector<4x32xf32>
    %778 = tpu.concatenate %777, %745 in 1 : vector<4x32xf32>, vector<4x32xf32> -> vector<4x64xf32>
    %779 = arith.truncf %778 : vector<4x64xf32> to vector<4x64xbf16>
    %cst_157 = arith.constant dense<0.000000e+00> : vector<4x128xf32>
    %780 = tpu.matmul %779, %10, %cst_157 {dimension_numbers = #tpu.dot_dimension_numbers<[1], [0], [0], [1], [0, 0, 1, 1], [], []>} : vector<4x64xbf16>, vector<64x128xbf16>, vector<4x128xf32> -> vector<4x128xf32>
    %781 = arith.addf %780, %13 : vector<4x128xf32>
    %782 = vector.extract_strided_slice %781 {offsets = [0, 0], sizes = [4, 96], strides = [1, 1]} : vector<4x128xf32> to vector<4x96xf32>
    %783 = arith.negf %782 : vector<4x96xf32>
    %784 = math.exp %783 : vector<4x96xf32>
    %cst_158 = arith.constant 1.000000e+00 : f32
    %785 = vector.broadcast %cst_158 : f32 to vector<4x96xf32>
    %786 = arith.addf %785, %784 : vector<4x96xf32>
    %787 = arith.divf %785, %786 : vector<4x96xf32>
    %788 = vector.extract_strided_slice %787 {offsets = [0, 0], sizes = [4, 32], strides = [1, 1]} : vector<4x96xf32> to vector<4x32xf32>
    %789 = vector.extract_strided_slice %787 {offsets = [0, 32], sizes = [4, 32], strides = [1, 1]} : vector<4x96xf32> to vector<4x32xf32>
    %790 = vector.extract_strided_slice %787 {offsets = [0, 64], sizes = [4, 32], strides = [1, 1]} : vector<4x96xf32> to vector<4x32xf32>
    %791 = vector.extract_strided_slice %781 {offsets = [0, 96], sizes = [4, 32], strides = [1, 1]} : vector<4x128xf32> to vector<4x32xf32>
    %792 = math.tanh %791 : vector<4x32xf32>
    %793 = arith.mulf %789, %743 : vector<4x32xf32>
    %794 = arith.mulf %788, %792 : vector<4x32xf32>
    %795 = arith.addf %793, %794 : vector<4x32xf32>
    %796 = math.tanh %795 : vector<4x32xf32>
    %797 = arith.mulf %790, %796 : vector<4x32xf32>
    %cst_159 = arith.constant dense<0.000000e+00> : vector<4x8xf32>
    %798 = tpu.matmul %797, %18, %cst_159 {dimension_numbers = #tpu.dot_dimension_numbers<[1], [0], [0], [1], [0, 0, 1, 1], [], []>} : vector<4x32xf32>, vector<32x8xf32>, vector<4x8xf32> -> vector<4x8xf32>
    %799 = arith.addf %798, %21 : vector<4x8xf32>
    %c6_160 = arith.constant 6 : index
    %c0_161 = arith.constant 0 : index
    %c0_162 = arith.constant 0 : index
    %800 = vector.load %arg17[%c6_160, %c0_161, %c0_162] : memref<8x4x8xf32, #tpu.memory_space<vmem>>, vector<1x4x8xf32>
    %801 = vector.shape_cast %800 : vector<1x4x8xf32> to vector<4x8xf32>
    %802 = vector.shape_cast %799 : vector<4x8xf32> to vector<1x4x8xf32>
    tpu.vector_store %arg17[%c6_160, %c0_161, %c0_162], %802 {strides = array<i32>} : memref<8x4x8xf32, #tpu.memory_space<vmem>>, vector<1x4x8xf32>,
    %803 = arith.truncf %797 : vector<4x32xf32> to vector<4x32xbf16>
    %cst_163 = arith.constant dense<0.000000e+00> : vector<4x128xf32>
    %804 = tpu.matmul %803, %14, %cst_163 {dimension_numbers = #tpu.dot_dimension_numbers<[1], [0], [0], [1], [0, 0, 1, 1], [], []>} : vector<4x32xbf16>, vector<32x128xbf16>, vector<4x128xf32> -> vector<4x128xf32>
    %805 = arith.addf %804, %17 : vector<4x128xf32>
    %806 = vector.extract_strided_slice %27 {offsets = [24, 0], sizes = [4, 128], strides = [1, 1]} : vector<32x128xf32> to vector<4x128xf32>
    %cst_164 = arith.constant 5.000000e-01 : f32
    %807 = vector.broadcast %cst_164 : f32 to vector<4x128xf32>
    %808 = arith.cmpf ogt, %806, %807 : vector<4x128xf32>
    %809 = vector.extract_strided_slice %33 {offsets = [24, 0], sizes = [4, 128], strides = [1, 1]} : vector<32x128xf32> to vector<4x128xf32>
    %810 = arith.select %808, %809, %805 : vector<4x128xi1>, vector<4x128xf32>
    %811 = arith.truncf %777 : vector<4x32xf32> to vector<4x32xbf16>
    %cst_165 = arith.constant dense<0.000000e+00> : vector<4x128xf32>
    %812 = tpu.matmul %811, %8, %cst_165 {dimension_numbers = #tpu.dot_dimension_numbers<[1], [0], [0], [1], [0, 0, 1, 1], [], []>} : vector<4x32xbf16>, vector<32x128xbf16>, vector<4x128xf32> -> vector<4x128xf32>
    %813 = arith.addf %810, %812 : vector<4x128xf32>
    %814 = vector.extract_strided_slice %813 {offsets = [0, 0], sizes = [4, 96], strides = [1, 1]} : vector<4x128xf32> to vector<4x96xf32>
    %815 = arith.negf %814 : vector<4x96xf32>
    %816 = math.exp %815 : vector<4x96xf32>
    %cst_166 = arith.constant 1.000000e+00 : f32
    %817 = vector.broadcast %cst_166 : f32 to vector<4x96xf32>
    %818 = arith.addf %817, %816 : vector<4x96xf32>
    %819 = arith.divf %817, %818 : vector<4x96xf32>
    %820 = vector.extract_strided_slice %819 {offsets = [0, 0], sizes = [4, 32], strides = [1, 1]} : vector<4x96xf32> to vector<4x32xf32>
    %821 = vector.extract_strided_slice %819 {offsets = [0, 32], sizes = [4, 32], strides = [1, 1]} : vector<4x96xf32> to vector<4x32xf32>
    %822 = vector.extract_strided_slice %819 {offsets = [0, 64], sizes = [4, 32], strides = [1, 1]} : vector<4x96xf32> to vector<4x32xf32>
    %823 = vector.extract_strided_slice %813 {offsets = [0, 96], sizes = [4, 32], strides = [1, 1]} : vector<4x128xf32> to vector<4x32xf32>
    %824 = math.tanh %823 : vector<4x32xf32>
    %825 = arith.mulf %821, %775 : vector<4x32xf32>
    %826 = arith.mulf %820, %824 : vector<4x32xf32>
    %827 = arith.addf %825, %826 : vector<4x32xf32>
    %828 = math.tanh %827 : vector<4x32xf32>
    %829 = arith.mulf %822, %828 : vector<4x32xf32>
    %830 = tpu.concatenate %829, %797 in 1 : vector<4x32xf32>, vector<4x32xf32> -> vector<4x64xf32>
    %831 = arith.truncf %830 : vector<4x64xf32> to vector<4x64xbf16>
    %cst_167 = arith.constant dense<0.000000e+00> : vector<4x128xf32>
    %832 = tpu.matmul %831, %10, %cst_167 {dimension_numbers = #tpu.dot_dimension_numbers<[1], [0], [0], [1], [0, 0, 1, 1], [], []>} : vector<4x64xbf16>, vector<64x128xbf16>, vector<4x128xf32> -> vector<4x128xf32>
    %833 = arith.addf %832, %13 : vector<4x128xf32>
    %834 = vector.extract_strided_slice %833 {offsets = [0, 0], sizes = [4, 96], strides = [1, 1]} : vector<4x128xf32> to vector<4x96xf32>
    %835 = arith.negf %834 : vector<4x96xf32>
    %836 = math.exp %835 : vector<4x96xf32>
    %cst_168 = arith.constant 1.000000e+00 : f32
    %837 = vector.broadcast %cst_168 : f32 to vector<4x96xf32>
    %838 = arith.addf %837, %836 : vector<4x96xf32>
    %839 = arith.divf %837, %838 : vector<4x96xf32>
    %840 = vector.extract_strided_slice %839 {offsets = [0, 0], sizes = [4, 32], strides = [1, 1]} : vector<4x96xf32> to vector<4x32xf32>
    %841 = vector.extract_strided_slice %839 {offsets = [0, 32], sizes = [4, 32], strides = [1, 1]} : vector<4x96xf32> to vector<4x32xf32>
    %842 = vector.extract_strided_slice %839 {offsets = [0, 64], sizes = [4, 32], strides = [1, 1]} : vector<4x96xf32> to vector<4x32xf32>
    %843 = vector.extract_strided_slice %833 {offsets = [0, 96], sizes = [4, 32], strides = [1, 1]} : vector<4x128xf32> to vector<4x32xf32>
    %844 = math.tanh %843 : vector<4x32xf32>
    %845 = arith.mulf %841, %795 : vector<4x32xf32>
    %846 = arith.mulf %840, %844 : vector<4x32xf32>
    %847 = arith.addf %845, %846 : vector<4x32xf32>
    %848 = math.tanh %847 : vector<4x32xf32>
    %849 = arith.mulf %842, %848 : vector<4x32xf32>
    %cst_169 = arith.constant dense<0.000000e+00> : vector<4x8xf32>
    %850 = tpu.matmul %849, %18, %cst_169 {dimension_numbers = #tpu.dot_dimension_numbers<[1], [0], [0], [1], [0, 0, 1, 1], [], []>} : vector<4x32xf32>, vector<32x8xf32>, vector<4x8xf32> -> vector<4x8xf32>
    %851 = arith.addf %850, %21 : vector<4x8xf32>
    %c7_170 = arith.constant 7 : index
    %c0_171 = arith.constant 0 : index
    %c0_172 = arith.constant 0 : index
    %852 = vector.load %arg17[%c7_170, %c0_171, %c0_172] : memref<8x4x8xf32, #tpu.memory_space<vmem>>, vector<1x4x8xf32>
    %853 = vector.shape_cast %852 : vector<1x4x8xf32> to vector<4x8xf32>
    %854 = vector.shape_cast %851 : vector<4x8xf32> to vector<1x4x8xf32>
    tpu.vector_store %arg17[%c7_170, %c0_171, %c0_172], %854 {strides = array<i32>} : memref<8x4x8xf32, #tpu.memory_space<vmem>>, vector<1x4x8xf32>,
    return
  }
}

</mosaic_0001>

<bundles_post_ra>
// kernel: tpu_custom_call.1
= control target key start
LH: loop header
LB: loop body
LE: loop exit
PB: predicated region body
PF: predicated region fallthrough
CT: control target
= control target key end

     0   :  { %s4688_s0 = inlined_call_operand.vmem [shape: f32[32,8], index: 0, kind: input, shape index: {}]   ;;  %s4689_s1 = inlined_call_operand.vmem [shape: s32[4,1], index: 1, kind: input, shape index: {}]   ;;  %s4690_s2 = inlined_call_operand.vmem [shape: f32[32,128], index: 2, kind: input, shape index: {}]   ;;  %s4691_s3 = inlined_call_operand.hbm [shape: bf16[8,128], index: 3, kind: input, shape index: {}]   ;;  %s4692_s4 = inlined_call_operand.vmem [shape: bf16[32,128], index: 4, kind: input, shape index: {}]   ;;  %s4693_s5 = inlined_call_operand.hbm [shape: f32[1,128], index: 5, kind: input, shape index: {}]   ;;  %s4694_s6 = inlined_call_operand.vmem [shape: bf16[64,128], index: 6, kind: input, shape index: {}]   ;;  %s4695_s7 = inlined_call_operand.hbm [shape: f32[1,128], index: 7, kind: input, shape index: {}]   ;;  %s4696_s8 = inlined_call_operand.vmem [shape: bf16[8,128], index: 8, kind: input, shape index: {}]   ;;  %s4697_s9 = inlined_call_operand.hbm [shape: bf16[32,128], index: 9, kind: input, shape index: {}]   ;;  %s4698_s10 = inlined_call_operand.vmem [shape: f32[1,128], index: 10, kind: input, shape index: {}]   ;;  %s4699_s11 = inlined_call_operand.hbm [shape: bf16[64,128], index: 11, kind: input, shape index: {}]   ;;  %s4700_s12 = inlined_call_operand.vmem [shape: f32[1,128], index: 12, kind: input, shape index: {}]   ;;  %s4701_s13 = inlined_call_operand.hbm [shape: bf16[32,128], index: 13, kind: input, shape index: {}]   ;;  %s4702_s14 = inlined_call_operand.vmem [shape: f32[1,128], index: 14, kind: input, shape index: {}]   ;;  %s4703_s15 = inlined_call_operand.vmem [shape: f32[32,8], index: 15, kind: input, shape index: {}]   ;;  %s4704_s16 = inlined_call_operand.vmem [shape: f32[1,8], index: 16, kind: input, shape index: {}]   ;;  %s4705_s17 = inlined_call_operand.hbm [shape: f32[8,4,8], index: 17, kind: output, shape index: {0}]   ;;  %s4706_s18 = inlined_call_operand.hbm [shape: f32[8,4,32], index: 18, kind: output, shape index: {1}]  }
   0x1   :  { %4709 = sst [smem:[#allocation22_spill]] %s4688_s0 }
   0x2   :  { %4710 = sst [smem:[#allocation23_spill]] %s4689_s1 }
   0x3   :  { %4711 = sst [smem:[#allocation24_spill]] %s4690_s2 }
   0x4   :  { %24 = vsyncpa [#allocation3], 0 }
   0x5   :  { %25 = vsyncpa [#allocation6], 0 }
   0x6   :  { %26 = vsyncpa [#allocation9], 0 }
   0x7   :  { %27 = vsyncpa [#allocation12], 0 }
   0x8   :  { %28 = vsyncpa [#allocation4], 0  ;;  %s54_s29 = sshll.u32 %s4693_s5, 4  ;;  %s55_s29 = int_to_ptr.hbm [resolvable:$true] %s54_s29 }
   0x9   :  { %29 = vsyncpa [#allocation15], 0  ;;  %s3562_s30 = smov [#allocation5]   ;;  %s79_s20 = sshll.u32 %s4697_s9, 4  ;;  %s80_s20 = int_to_ptr.hbm [resolvable:$true] %s79_s20 }
   0xa   :  { %s56_s0 = sshll.u32 %s3562_s30, 4  ;;  %s3563_s21 = smov [#allocation8]   ;;  %s57_s0 = int_to_ptr.vmem [resolvable:$true] %s56_s0 }
   0xb   :  { %59 = dma.hbm_to_vmem [thread:$0]  %s55_s29, 16, %s57_s0, [#allocation6]  }
   0xc   :  { %s81_s22 = sshll.u32 %s3563_s21, 4  ;;  %s3564_s2 = smov 64   ;;  %s82_s22 = int_to_ptr.vmem [resolvable:$true] %s81_s22 }
   0xd   :  { %s3565_s23 = smov 4   ;;  %s41_s25 = sshll.u32 %s4691_s3, 4  ;;  %s42_s25 = int_to_ptr.hbm [resolvable:$true] %s41_s25 }
   0xe   :  { %87 = dma.hbm_to_vmem [thread:$0]  %s80_s20, 256, %s82_s22, [#allocation9], %s3564_s2, %s3564_s2, %s3565_s23  }
   0xf   :  { %s3566_s26 = smov [#allocation2]   ;;  %s67_s29 = sshll.u32 %s4695_s7, 4  ;;  %s68_s29 = int_to_ptr.hbm [resolvable:$true] %s67_s29 }
  0x10   :  { %s43_s27 = sshll.u32 %s3566_s26, 4  ;;  %s3567_s30 = smov [#allocation7]   ;;  %s44_s27 = int_to_ptr.vmem [resolvable:$true] %s43_s27 }
  0x11   :  { %46 = dma.hbm_to_vmem [thread:$0]  %s42_s25, 64, %s44_s27, [#allocation3]  }
  0x12   :  { %s69_s0 = sshll.u32 %s3567_s30, 4  ;;  %s94_s20 = sshll.u32 %s4699_s11, 4  ;;  %s70_s0 = int_to_ptr.vmem [resolvable:$true] %s69_s0  ;;  %s95_s20 = int_to_ptr.hbm [resolvable:$true] %s94_s20 }
  0x13   :  { %72 = dma.hbm_to_vmem [thread:$0]  %s68_s29, 16, %s70_s0, [#allocation6]  }
  0x14   :  { %s109_s22 = sshll.u32 %s4701_s13, 4  ;;  %s3568_s5 = smov [#allocation10]   ;;  %s110_s22 = int_to_ptr.hbm [resolvable:$true] %s109_s22 }
  0x15   :  { %s96_s24 = sshll.u32 %s3568_s5, 4  ;;  %s3569_s7 = smov [#allocation11]   ;;  %s97_s24 = int_to_ptr.vmem [resolvable:$true] %s96_s24 }
  0x16   :  { %102 = dma.hbm_to_vmem [thread:$0]  %s95_s20, 512, %s97_s24, [#allocation9], %s3564_s2, %s3564_s2, %s3565_s23  }
  0x17   :  { %s111_s25 = sshll.u32 %s3569_s7, 4  ;;  %s112_s25 = int_to_ptr.vmem [resolvable:$true] %s111_s25 }
  0x18   :  { %117 = dma.hbm_to_vmem [thread:$0]  %s110_s22, 256, %s112_s25, [#allocation12], %s3564_s2, %s3564_s2, %s3565_s23  }
  0x19   :  { %3550 = dma.done.wait [#allocation3], 64  }
  0x1a   :  { %3551 = vsyncadd [#allocation3], 4294967232 }
  0x1b   :  { %3552 = dma.done.wait [#allocation6], 32  }
  0x1c   :  { %3553 = vsyncadd [#allocation6], 4294967264 }
  0x1d   :  { %3554 = dma.done.wait [#allocation9], 768  }
  0x1e   :  { %3555 = vsyncadd [#allocation9], 4294966528 }
  0x1f   :  { %3556 = dma.done.wait [#allocation12], 256  }
  0x20   :  { %3557 = vsyncadd [#allocation12], 4294967040  ;;  %v3570_v0 = vmov 0   ;;  %vm225_vm0 = vcmask 1043456   ;;  %v149_v1 = vld [vmem:[#allocation2] sm:$0xf] }
  0x21   :  { %3081 = vset.pattern.permute.xlu1 %v3570_v0  ;;  %3082 = vset.pattern.permute.xlu0 %v3570_v0  ;;  %v3700_v2 = vld [vmem:[%s4692_s4 + $0x8] sm:$0xff]  ;;  %s4712_s9 = sld [smem:[#allocation22_spill]]  ;;  %v227_v4 = vsel %vm225_vm0, %v149_v1, 0  ;;  %vm218_vm1 = vcmask 64512   ;;  %v3715_v7 = vld [vmem:[%s4692_s4] sm:$0xff]  ;;  %s3571_s4 = smov 32  }
  0x22   :  { %236 = vmatpush.bf16.msra.mxu0 %v227_v4  ;;  %296 = vmatpush.bf16.msra.mxu2 %v3700_v2  ;;  %v3728_v8 = vld [vmem:[#allocation5] ss:$0 sm:$0xff]  ;;  %s4713_s20 = sld [smem:[#allocation23_spill]]  ;;  %v3746_v35 = vld [vmem:[%s4694_s6 + $0x18] sm:$0xff]  ;;  %v3759_v41 = vld [vmem:[%s4694_s6 + $0x10] sm:$0xff]  ;;  %vm286_vm7 = vcmask 261120  }
  0x23   :  { %381 = vmatpush.bf16.msra.mxu3 %v3746_v35  ;;  %v3765_v42 = vld [vmem:[%s4694_s6 + $0x8] sm:$0xff]  ;;  %v3771_v43 = vld [vmem:[%s4694_s6] sm:$0xff]  ;;  %vm373_vm8 = vcmask 523264   ;;  %s3572_s6 = smov 96   ;;  %s4714_s27 = sld [smem:[#allocation24_spill]] }
  0x24   :  { %v3791_v52 = vld [vmem:[#allocation7] ss:$0 sm:$0xff]  ;;  %s2895_s21 = sshll.u32 %s4706_s18, 4  ;;  %s3574_s22 = smov [#allocation13]   ;;  %s2896_s21 = int_to_ptr.hbm [resolvable:$true] %s2895_s21 }
  0x25   :  { %s2880_s5 = sshll.u32 %s3574_s22, 4  ;;  %s2882_s7 = sshll.u32 %s4705_s17, 4  ;;  %s2881_s5 = int_to_ptr.vmem [resolvable:$true] %s2880_s5  ;;  %s2883_s7 = int_to_ptr.hbm [resolvable:$true] %s2882_s7 }
  0x26   :  { %593 = vmatpush.bf16.msrb.mxu0 %v3700_v2  ;;  %297 = vmatpush.bf16.msra.mxu2 %v3715_v7 }
  0x27   :  { %v201_v3 = vld [vmem:[%s4712_s9] sm:$0xff]  ;;  %v202_v5 = vld [vmem:[%s4712_s9 + $0x8] sm:$0xff]  ;;  %382 = vmatpush.bf16.msra.mxu3 %v3759_v41 }
  0x28   :  { %v3710_v6 = vpack.c.bf16 %v202_v5, %v201_v3  ;;  %v207_v34 = vld [vmem:[%s4713_s20] sm:$0xf] }
  0x29   :  { %298 = vmatmul.bf16.vlgmr.msra.gmra.mxu2 %v3570_v0 }
  0x2a   :  { %2916 = vmatmul.msk.bf16.vlgmr.msra.gmra.mxu0 %vm218_vm1, %v3710_v6  ;;  %449 = vmatpush.bf16.msrb.mxu2 %v3700_v2 }
  0x2b   :  { %594 = vmatpush.bf16.msrb.mxu0 %v3715_v7  ;;  %383 = vmatpush.bf16.msra.mxu3 %v3765_v42 }
  0x2e   :  { %450 = vmatpush.bf16.msrb.mxu2 %v3715_v7 }
  0x2f   :  { %879 = vmatpush.bf16.msra.mxu0 %v3700_v2  ;;  %384 = vmatpush.bf16.msra.mxu3 %v3771_v43 }
  0x32   :  { %734 = vmatpush.bf16.msra.mxu2 %v3700_v2 }
  0x33   :  { %880 = vmatpush.bf16.msra.mxu0 %v3715_v7  ;;  %527 = vmatpush.bf16.msrb.mxu3 %v3746_v35 }
  0x36   :  { %735 = vmatpush.bf16.msra.mxu2 %v3715_v7 }
  0x37   :  { %528 = vmatpush.bf16.msrb.mxu3 %v3759_v41 }
  0x3b   :  { %529 = vmatpush.bf16.msrb.mxu3 %v3765_v42 }
  0x3f   :  { %530 = vmatpush.bf16.msrb.mxu3 %v3771_v43 }
  0xa7   :  { %v238_v9 = vpop.f32.mrf.mxu0 }
  0xa8   :  { %v3731_v10 = vadd.f32 %v3728_v8, %v238_v9 }
  0xac   :  { %v299_v11 = vpop.f32.mrf.mxu2 }
  0xad   :  { %v303_v12 = vadd.f32 %v299_v11, %v3731_v10 }
  0xaf   :  { %3089 = vtanh.f32 %v303_v12  ;;  %v2928_v15 = vmul.f32 -1.442695, %v303_v12 }
  0xb1   :  { %3091 = vpow2.f32 %v2928_v15 }
  0xb4   :  { %v301_v13 = vpop.f32.mrf.mxu2 }
  0xb5   :  { %v3090_v14 = vpop.eup %3089 }
  0xb6   :  { %326 = vrot.lane.b32.xlu0 %v3090_v14, %s3571_s4 }
  0xb7   :  { %v3092_v16 = vpop.eup %3091 }
  0xb8   :  { %v307_v17 = vadd.f32 1.0, %v3092_v16 }
  0xba   :  { %3093 = vrcp.f32 %v307_v17  ;;  %v319_v23 = vand.u32 2147483648, %v307_v17  ;;  %vm313_vm3 = vweird.f32 %v307_v17  ;;  %v317_v24 = vand.u32 2147483647, %v307_v17 }
  0xbc   :  { %v320_v26 = vor.u32 1.1754944e-38, %v319_v23  ;;  %vm318_vm5 = vcmp.eq.f32.partialorder %v317_v24, 8.507059e+37 }
  0xc0   :  { %v3094_v18 = vpop.eup %3093 }
  0xc1   :  { %v309_v19 = vmul.f32 %v3094_v18, %v307_v17  ;;  %vm314_vm2 = vweird.f32 %v3094_v18 }
  0xc2   :  { %vm315_vm4 = vmor %vm313_vm3, %vm314_vm2 }
  0xc3   :  { %v310_v20 = vsub.f32 1.0, %v309_v19 }
  0xc5   :  { %v311_v21 = vmul.f32 %v3094_v18, %v310_v20 }
  0xc7   :  { %v312_v22 = vadd.f32 %v3094_v18, %v311_v21 }
  0xc9   :  { %v316_v25 = vsel %vm315_vm4, %v3094_v18, %v312_v22 }
  0xca   :  { %v321_v28 = vsel %vm318_vm5, %v320_v26, %v316_v25 }
  0xcb   :  { %v324_v30 = vmul.f32 0.0, %v321_v28 }
 0x128   :  { %v327_v27 = vpop.permute.xlu0 %326 }
 0x129   :  { %v329_v29 = vmul.f32 %v327_v27, %v321_v28 }
 0x12b   :  { %331 = vrot.lane.b32.xlu0 %v329_v29, %s3571_s4 }
 0x19d   :  { %v332_v31 = vpop.permute.xlu0 %331 }
 0x19e   :  { %v3736_v32 = vadd.f32 %v332_v31, %v324_v30 }
 0x1a0   :  { %3095 = vtanh.f32 %v3736_v32 }
 0x1a6   :  { %v3096_v33 = vpop.eup %3095 }
 0x1a7   :  { %337 = vrot.lane.b32.xlu1 %v3096_v33, %s3571_s4 }
 0x1af   :  { %209 = vperm.xlu1 %3081, %v207_v34  }
 0x219   :  { %v338_v36 = vpop.permute.xlu1 %337 }
 0x21a   :  { %v340_v37 = vmul.f32 %v338_v36, %v321_v28 }
 0x221   :  { %v3749_v38 = vpop.permute.xlu1 %209 }
 0x222   :  { %vm273_vm6 = vcmp.gt.s32.totalorder %v3749_v38, 0  ;;  %vm435_vm3 = vcmp.gt.s32.totalorder %v3749_v38, 1 }
 0x223   :  { %v341_v39 = vsel %vm273_vm6, %v340_v37, 0.0  ;;  %v342_v28 = vsel %vm273_vm6, %v3736_v32, 0.0  ;;  %v203_v32 = vld [vmem:[%s4712_s9 + $0x10] sm:$0xff] }
 0x224   :  { %v436_v40 = vpack.c.bf16 %v341_v39, %v341_v39  ;;  %v481_v29 = vrot.slane %v342_v28, 4 }
 0x226   :  { %438 = vrot.lane.b32.xlu2 %v436_v40, %s3564_s2 }
 0x22e   :  { %344 = vrot.lane.b32.xlu2 %v341_v39, %s3564_s2 }
 0x280   :  { %v439_v44 = vpop.permute.xlu2 %438 }
 0x281   :  { %2947 = vmatmul.msk.bf16.vlgmr.msrb.gmra.mxu2 %vm286_vm7, %v439_v44 }
 0x282   :  { %1020 = vmatpush.bf16.msrb.mxu2 %v3700_v2 }
 0x286   :  { %1021 = vmatpush.bf16.msrb.mxu2 %v3715_v7 }
 0x288   :  { %v3781_v45 = vpop.permute.xlu2 %344 }
 0x289   :  { %v347_v46 = vsel %vm286_vm7, %v3781_v45, 0.0 }
 0x28a   :  { %v348_v47 = vpack.c.bf16 %v347_v46, %v347_v46  ;;  %v204_v46 = vld [vmem:[%s4712_s9 + $0x18] sm:$0xff] }
 0x28c   :  { %2945 = vmatmul.msk.bf16.vlgmr.msra.gmra.mxu3 %vm373_vm8, %v348_v47  ;;  %v3813_v47 = vpack.c.bf16 %v204_v46, %v203_v32 }
 0x28d   :  { %813 = vmatpush.bf16.msra.mxu3 %v3746_v35 }
 0x28e   :  { %2917 = vmatmul.msk.bf16.gmra.mxu0 %vm218_vm1, %v3813_v47 }
 0x291   :  { %814 = vmatpush.bf16.msra.mxu3 %v3759_v41 }
 0x295   :  { %815 = vmatpush.bf16.msra.mxu3 %v3765_v42 }
 0x299   :  { %816 = vmatpush.bf16.msra.mxu3 %v3771_v43 }
 0x304   :  { %v452_v48 = vpop.f32.mrf.mxu2 }
 0x305   :  { %v457_v49 = vrot.slane %v452_v48, 4 }
 0x307   :  { %v459_v50 = vadd.f32 %v457_v49, %v3731_v10 }
 0x309   :  { %3097 = vtanh.f32 %v459_v50  ;;  %v2948_v58 = vmul.f32 -1.442695, %v459_v50 }
 0x30c   :  { %v454_v51 = vpop.f32.mrf.mxu2 }
 0x30f   :  { %v3098_v53 = vpop.eup %3097  ;;  %v386_v54 = vpop.f32.mrf.mxu3 }
 0x310   :  { %v387_v55 = vadd.f32 %v3791_v52, %v386_v54  ;;  %485 = vrot.lane.b32.xlu0 %v3098_v53, %s3571_s4 }
 0x312   :  { %3099 = vtanh.f32 %v387_v55  ;;  %v2946_v59 = vmul.f32 -1.442695, %v387_v55 }
 0x313   :  { %3101 = vpow2.f32 %v2948_v58 }
 0x314   :  { %3103 = vpow2.f32 %v2946_v59 }
 0x317   :  { %v388_v56 = vpop.f32.mrf.mxu3 }
 0x318   :  { %v3100_v57 = vpop.eup %3099 }
 0x319   :  { %412 = vrot.lane.b32.xlu1 %v3100_v57, %s3571_s4  ;;  %v3102_v60 = vpop.eup %3101 }
 0x31a   :  { %v463_v61 = vadd.f32 1.0, %v3102_v60  ;;  %v3104_v62 = vpop.eup %3103 }
 0x31b   :  { %v393_v63 = vadd.f32 1.0, %v3104_v62 }
 0x31c   :  { %3105 = vrcp.f32 %v463_v61  ;;  %v475_v11 = vand.u32 2147483648, %v463_v61  ;;  %vm469_vm10 = vweird.f32 %v463_v61  ;;  %v473_v13 = vand.u32 2147483647, %v463_v61 }
 0x31d   :  { %3107 = vrcp.f32 %v393_v63  ;;  %v405_v21 = vand.u32 2147483648, %v393_v63  ;;  %vm399_vm14 = vweird.f32 %v393_v63  ;;  %v403_v22 = vand.u32 2147483647, %v393_v63 }
 0x31e   :  { %v476_v15 = vor.u32 1.1754944e-38, %v475_v11  ;;  %vm474_vm12 = vcmp.eq.f32.partialorder %v473_v13, 8.507059e+37 }
 0x31f   :  { %v406_v24 = vor.u32 1.1754944e-38, %v405_v21  ;;  %vm404_vm2 = vcmp.eq.f32.partialorder %v403_v22, 8.507059e+37 }
 0x322   :  { %v3106_v0 = vpop.eup %3105 }
 0x323   :  { %v465_v1 = vmul.f32 %v3106_v0, %v463_v61  ;;  %v3108_v4 = vpop.eup %3107  ;;  %vm470_vm9 = vweird.f32 %v3106_v0 }
 0x324   :  { %v395_v9 = vmul.f32 %v3108_v4, %v393_v63  ;;  %vm471_vm11 = vmor %vm469_vm10, %vm470_vm9  ;;  %vm400_vm13 = vweird.f32 %v3108_v4  ;;  %v240_v63 = vpop.f32.mrf.mxu0 }
 0x325   :  { %v466_v3 = vsub.f32 1.0, %v465_v1  ;;  %vm401_vm15 = vmor %vm399_vm14, %vm400_vm13 }
 0x326   :  { %v396_v12 = vsub.f32 1.0, %v395_v9 }
 0x327   :  { %v467_v5 = vmul.f32 %v3106_v0, %v466_v3  ;;  %v3851_v3 = vadd.f32 %v3728_v8, %v240_v63 }
 0x328   :  { %v397_v16 = vmul.f32 %v3108_v4, %v396_v12 }
 0x329   :  { %v468_v10 = vadd.f32 %v3106_v0, %v467_v5 }
 0x32a   :  { %v398_v20 = vadd.f32 %v3108_v4, %v397_v16 }
 0x32b   :  { %v472_v14 = vsel %vm471_vm11, %v3106_v0, %v468_v10 }
 0x32c   :  { %v477_v18 = vsel %vm474_vm12, %v476_v15, %v472_v14  ;;  %v402_v23 = vsel %vm401_vm15, %v3108_v4, %v398_v20  ;;  %v3846_v0 = vpop.f32.mrf.mxu0 }
 0x32d   :  { %v407_v26 = vsel %vm404_vm2, %v406_v24, %v402_v23  ;;  %v483_v30 = vmul.f32 %v481_v29, %v477_v18 }
 0x32e   :  { %v410_v36 = vmul.f32 0.0, %v407_v26 }
 0x334   :  { %v3848_v1 = vpop.f32.mrf.mxu0 }
 0x382   :  { %v486_v17 = vpop.permute.xlu0 %485 }
 0x383   :  { %v488_v19 = vmul.f32 %v486_v17, %v477_v18 }
 0x385   :  { %490 = vrot.lane.b32.xlu2 %v488_v19, %s3571_s4 }
 0x38b   :  { %v413_v25 = vpop.permute.xlu1 %412 }
 0x38c   :  { %v415_v27 = vmul.f32 %v413_v25, %v407_v26 }
 0x38e   :  { %417 = vrot.lane.b32.xlu0 %v415_v27, %s3571_s4 }
 0x3df   :  { %v491_v31 = vpop.permute.xlu2 %490 }
 0x3e0   :  { %v493_v33 = vadd.f32 %v491_v31, %v483_v30 }
 0x3e2   :  { %3109 = vtanh.f32 %v493_v33  ;;  %v507_v44 = vrot.slane %v493_v33, 4 }
 0x3e8   :  { %v3110_v34 = vpop.eup %3109 }
 0x3e9   :  { %496 = vrot.lane.b32.xlu1 %v3110_v34, %s3571_s4 }
 0x400   :  { %v418_v37 = vpop.permute.xlu0 %417 }
 0x401   :  { %v3802_v39 = vadd.f32 %v418_v37, %v410_v36 }
 0x403   :  { %3111 = vtanh.f32 %v3802_v39 }
 0x409   :  { %v3112_v40 = vpop.eup %3111 }
 0x40a   :  { %423 = vrot.lane.b32.xlu2 %v3112_v40, %s3571_s4 }
 0x412   :  { %508 = vrot.lane.b32.xlu2 %v507_v44, %s3572_s6 }
 0x45b   :  { %v497_v48 = vpop.permute.xlu1 %496 }
 0x45c   :  { %v499_v49 = vmul.f32 %v497_v48, %v477_v18 }
 0x45e   :  { %v501_v50 = vrot.slane %v499_v49, 4 }
 0x460   :  { %502 = vrot.lane.b32.xlu0 %v501_v50, %s3564_s2 }
 0x464   :  { %v424_v51 = vpop.permute.xlu2 %423 }
 0x465   :  { %v426_v53 = vmul.f32 %v424_v51, %v407_v26 }
 0x467   :  { %v3820_v54 = vsel %vm273_vm6, %v426_v53, 0.0 }
 0x468   :  { %511 = vrot.lane.b32.xlu0 %v342_v28, %s3572_s6  ;;  %515 = vrot.lane.b32.xlu1 %v3820_v54, %s3572_s6 }
 0x46c   :  { %v509_v58 = vpop.permute.xlu2 %508 }
 0x4d2   :  { %v503_v55 = vpop.permute.xlu0 %502 }
 0x4d3   :  { %v3829_v56 = vsel %vm435_vm3, %v503_v55, %v3781_v45  ;;  %v3864_v55 = vsel %vm273_vm6, %v3802_v39, 0.0  ;;  %vm582_vm6 = vcmp.gt.s32.totalorder %v3749_v38, 2 }
 0x4d4   :  { %v583_v57 = vpack.c.bf16 %v3829_v56, %v3829_v56 }
 0x4d6   :  { %2951 = vmatmul.msk.bf16.vlgmr.msrb.gmra.mxu0 %vm286_vm7, %v583_v57 }
 0x4d7   :  { %1165 = vmatpush.bf16.msrb.mxu0 %v3700_v2 }
 0x4da   :  { %v512_v59 = vpop.permute.xlu0 %511  ;;  %v516_v60 = vpop.permute.xlu1 %515 }
 0x4db   :  { %v518_v61 = vsel %vm286_vm7, %v3829_v56, %v516_v60  ;;  %v514_v62 = vsel %vm435_vm3, %v509_v58, %v512_v59  ;;  %1166 = vmatpush.bf16.msrb.mxu0 %v3715_v7 }
 0x4dc   :  { %v519_v45 = vpack.c.bf16 %v518_v61, %v518_v61  ;;  %622 = vrot.lane.b32.xlu0 %v514_v62, %s3571_s4 }
 0x4de   :  { %2949 = vmatmul.msk.bf16.vlgmr.msrb.gmra.mxu3 %vm373_vm8, %v519_v45 }
 0x4df   :  { %1099 = vmatpush.bf16.msrb.mxu3 %v3746_v35 }
 0x4e3   :  { %1100 = vmatpush.bf16.msrb.mxu3 %v3759_v41 }
 0x4e7   :  { %1101 = vmatpush.bf16.msrb.mxu3 %v3765_v42 }
 0x4eb   :  { %1102 = vmatpush.bf16.msrb.mxu3 %v3771_v43 }
 0x54e   :  { %v3871_v61 = vpop.permute.xlu0 %622 }
 0x553   :  { %v596_v4 = vpop.f32.mrf.mxu0 }
 0x554   :  { %v600_v5 = vadd.f32 %v596_v4, %v3851_v3 }
 0x556   :  { %3113 = vtanh.f32 %v600_v5  ;;  %v2952_v17 = vmul.f32 -1.442695, %v600_v5 }
 0x55b   :  { %v598_v9 = vpop.f32.mrf.mxu0 }
 0x55c   :  { %v3114_v10 = vpop.eup %3113 }
 0x55d   :  { %627 = vrot.lane.b32.xlu1 %v3114_v10, %s3571_s4 }
 0x561   :  { %v532_v11 = vpop.f32.mrf.mxu3 }
 0x562   :  { %v533_v12 = vadd.f32 %v3791_v52, %v532_v11 }
 0x564   :  { %3115 = vtanh.f32 %v533_v12  ;;  %v2950_v15 = vmul.f32 -1.442695, %v533_v12 }
 0x566   :  { %3117 = vpow2.f32 %v2950_v15 }
 0x567   :  { %3119 = vpow2.f32 %v2952_v17 }
 0x569   :  { %v534_v13 = vpop.f32.mrf.mxu3 }
 0x56a   :  { %v3116_v14 = vpop.eup %3115 }
 0x56b   :  { %558 = vrot.lane.b32.xlu2 %v3116_v14, %s3571_s4  ;;  %v167_v14 = vld [vmem:[%s4696_s8] sm:$0xf] }
 0x56c   :  { %v3118_v16 = vpop.eup %3117  ;;  %v252_v15 = vsel %vm225_vm0, %v167_v14, 0 }
 0x56d   :  { %v539_v18 = vadd.f32 1.0, %v3118_v16  ;;  %v3120_v19 = vpop.eup %3119  ;;  %261 = vmatpush.bf16.msra.mxu1 %v252_v15 }
 0x56e   :  { %v604_v21 = vadd.f32 1.0, %v3120_v19 }
 0x56f   :  { %3121 = vrcp.f32 %v539_v18  ;;  %v551_v28 = vand.u32 2147483648, %v539_v18  ;;  %vm545_vm5 = vweird.f32 %v539_v18  ;;  %v549_v29 = vand.u32 2147483647, %v539_v18 }
 0x570   :  { %3123 = vrcp.f32 %v604_v21  ;;  %v616_v32 = vand.u32 2147483648, %v604_v21  ;;  %vm610_vm12 = vweird.f32 %v604_v21  ;;  %v614_v46 = vand.u32 2147483647, %v604_v21  ;;  %2918 = vmatmul.msk.bf16.vlgmr.msra.gmra.mxu1 %vm218_vm1, %v3710_v6 }
 0x571   :  { %v552_v33 = vor.u32 1.1754944e-38, %v551_v28  ;;  %vm550_vm10 = vcmp.eq.f32.partialorder %v549_v29, 8.507059e+37  ;;  %665 = vmatpush.bf16.msrb.mxu1 %v3746_v35 }
 0x572   :  { %v617_v49 = vor.u32 1.1754944e-38, %v616_v32  ;;  %vm615_vm14 = vcmp.eq.f32.partialorder %v614_v46, 8.507059e+37 }
 0x575   :  { %v3122_v20 = vpop.eup %3121  ;;  %666 = vmatpush.bf16.msrb.mxu1 %v3759_v41 }
 0x576   :  { %v541_v22 = vmul.f32 %v3122_v20, %v539_v18  ;;  %v3124_v24 = vpop.eup %3123  ;;  %vm546_vm4 = vweird.f32 %v3122_v20 }
 0x577   :  { %v606_v26 = vmul.f32 %v3124_v24, %v604_v21  ;;  %vm547_vm9 = vmor %vm545_vm5, %vm546_vm4  ;;  %vm611_vm11 = vweird.f32 %v3124_v24 }
 0x578   :  { %v542_v23 = vsub.f32 1.0, %v541_v22  ;;  %vm612_vm13 = vmor %vm610_vm12, %vm611_vm11  ;;  %vm720_vm11 = vcmp.gt.s32.totalorder %v3749_v38, 3 }
 0x579   :  { %v607_v30 = vsub.f32 1.0, %v606_v26  ;;  %667 = vmatpush.bf16.msrb.mxu1 %v3765_v42 }
 0x57a   :  { %v543_v25 = vmul.f32 %v3122_v20, %v542_v23 }
 0x57b   :  { %v608_v34 = vmul.f32 %v3124_v24, %v607_v30 }
 0x57c   :  { %v544_v27 = vadd.f32 %v3122_v20, %v543_v25 }
 0x57d   :  { %v609_v44 = vadd.f32 %v3124_v24, %v608_v34  ;;  %668 = vmatpush.bf16.msrb.mxu1 %v3771_v43 }
 0x57e   :  { %v548_v31 = vsel %vm547_vm9, %v3122_v20, %v544_v27 }
 0x57f   :  { %v553_v36 = vsel %vm550_vm10, %v552_v33, %v548_v31  ;;  %v613_v48 = vsel %vm612_vm13, %v3124_v24, %v609_v44 }
 0x580   :  { %v618_v50 = vsel %vm615_vm14, %v617_v49, %v613_v48  ;;  %v556_v57 = vmul.f32 %v553_v36, %v3864_v55  ;;  %2919 = vmatmul.msk.bf16.gmra.mxu1 %vm218_vm1, %v3813_v47  ;;  %v3922_v47 = vld [vmem:[%s4698_s10] ss:$0 sm:$0xff] }
 0x581   :  { %v625_v62 = vmul.f32 %v3871_v61, %v618_v50  ;;  %951 = vmatpush.bf16.msra.mxu1 %v3746_v35 }
 0x585   :  { %952 = vmatpush.bf16.msra.mxu1 %v3759_v41 }
 0x589   :  { %953 = vmatpush.bf16.msra.mxu1 %v3765_v42 }
 0x58d   :  { %954 = vmatpush.bf16.msra.mxu1 %v3771_v43 }
 0x5c5   :  { %v559_v37 = vpop.permute.xlu2 %558 }
 0x5c6   :  { %v561_v40 = vmul.f32 %v559_v37, %v553_v36 }
 0x5c8   :  { %563 = vrot.lane.b32.xlu2 %v561_v40, %s3571_s4 }
 0x5cf   :  { %v628_v51 = vpop.permute.xlu1 %627 }
 0x5d0   :  { %v630_v53 = vmul.f32 %v628_v51, %v618_v50 }
 0x5d2   :  { %632 = vrot.lane.b32.xlu1 %v630_v53, %s3571_s4 }
 0x5da   :  { %643 = vrot.lane.b32.xlu1 %v3829_v56, %s3564_s2 }
 0x5ed   :  { %v263_v20 = vpop.f32.mrf.mxu1 }
 0x5ee   :  { %v3926_v21 = vadd.f32 %v3922_v47, %v263_v20 }
 0x622   :  { %v564_v58 = vpop.permute.xlu2 %563 }
 0x623   :  { %v3867_v59 = vadd.f32 %v564_v58, %v556_v57 }
 0x625   :  { %3125 = vtanh.f32 %v3867_v59 }
 0x62b   :  { %v3126_v60 = vpop.eup %3125 }
 0x62c   :  { %569 = vrot.lane.b32.xlu2 %v3126_v60, %s3571_s4 }
 0x644   :  { %v633_v56 = vpop.permute.xlu1 %632 }
 0x645   :  { %v3874_v45 = vadd.f32 %v633_v56, %v625_v62 }
 0x647   :  { %3127 = vtanh.f32 %v3874_v45  ;;  %v647_v20 = vsel %vm582_vm6, %v3874_v45, %v3871_v61 }
 0x64c   :  { %v644_v11 = vpop.permute.xlu1 %643 }
 0x64d   :  { %v3128_v39 = vpop.eup %3127 }
 0x64e   :  { %638 = vrot.lane.b32.xlu0 %v3128_v39, %s3571_s4 }
 0x686   :  { %v570_v63 = vpop.permute.xlu2 %569 }
 0x687   :  { %v3878_v4 = vmul.f32 %v570_v63, %v553_v36 }
 0x689   :  { %v3884_v5 = vsel %vm435_vm3, %v3878_v4, %v3820_v54 }
 0x68a   :  { %653 = vrot.lane.b32.xlu2 %v3884_v5, %s3572_s6 }
 0x6c0   :  { %v639_v9 = vpop.permute.xlu0 %638 }
 0x6c1   :  { %v641_v10 = vmul.f32 %v639_v9, %v618_v50 }
 0x6c3   :  { %v646_v12 = vsel %vm582_vm6, %v641_v10, %v644_v11 }
 0x6c4   :  { %649 = vrot.lane.b32.xlu1 %v646_v12, %s3564_s2  ;;  %v721_v13 = vpack.c.bf16 %v646_v12, %v646_v12 }
 0x6c6   :  { %723 = vrot.lane.b32.xlu0 %v721_v13, %s3564_s2 }
 0x6e4   :  { %v654_v16 = vpop.permute.xlu2 %653 }
 0x736   :  { %v3909_v17 = vpop.permute.xlu1 %649 }
 0x737   :  { %v656_v6 = vsel %vm286_vm7, %v3909_v17, %v654_v16 }
 0x738   :  { %v657_v18 = vpack.c.bf16 %v656_v6, %v656_v6  ;;  %v724_v19 = vpop.permute.xlu0 %723 }
 0x739   :  { %2955 = vmatmul.msk.bf16.vlgmr.msra.gmra.mxu2 %vm286_vm7, %v724_v19 }
 0x73a   :  { %2953 = vmatmul.msk.bf16.vlgmr.msrb.gmra.mxu1 %vm373_vm8, %v657_v18  ;;  %1306 = vmatpush.bf16.msra.mxu2 %v3700_v2  ;;  %v265_v2 = vpop.f32.mrf.mxu1 }
 0x73b   :  { %1237 = vmatpush.bf16.msrb.mxu1 %v3746_v35  ;;  %v3930_v22 = vadd.f32 %v3922_v47, %v265_v2  ;;  %v766_v2 = vrot.slane %v647_v20, 4 }
 0x73e   :  { %1307 = vmatpush.bf16.msra.mxu2 %v3715_v7 }
 0x73f   :  { %1238 = vmatpush.bf16.msrb.mxu1 %v3759_v41 }
 0x742   :  { %v268_v7 = vpop.f32.mrf.mxu1 }
 0x743   :  { %1239 = vmatpush.bf16.msrb.mxu1 %v3765_v42  ;;  %v3933_v23 = vadd.f32 %v3922_v47, %v268_v7 }
 0x747   :  { %1240 = vmatpush.bf16.msrb.mxu1 %v3771_v43 }
 0x74a   :  { %v3935_v24 = vpop.f32.mrf.mxu1 }
 0x7b7   :  { %v670_v25 = vpop.f32.mrf.mxu1 }
 0x7b8   :  { %v671_v26 = vadd.f32 %v3791_v52, %v670_v25 }
 0x7ba   :  { %3129 = vtanh.f32 %v671_v26  ;;  %v2954_v36 = vmul.f32 -1.442695, %v671_v26 }
 0x7bc   :  { %v737_v27 = vpop.f32.mrf.mxu2 }
 0x7bd   :  { %v742_v28 = vrot.slane %v737_v27, 4 }
 0x7bf   :  { %v744_v29 = vadd.f32 %v742_v28, %v3851_v3  ;;  %v672_v30 = vpop.f32.mrf.mxu1  ;;  %v3952_v28 = vsel %vm435_vm3, %v3867_v59, %v3864_v55 }
 0x7c0   :  { %v3130_v31 = vpop.eup %3129 }
 0x7c1   :  { %3131 = vtanh.f32 %v744_v29  ;;  %696 = vrot.lane.b32.xlu1 %v3130_v31, %s3571_s4  ;;  %v2956_v37 = vmul.f32 -1.442695, %v744_v29 }
 0x7c2   :  { %3133 = vpow2.f32 %v2954_v36 }
 0x7c3   :  { %3135 = vpow2.f32 %v2956_v37 }
 0x7c4   :  { %v739_v33 = vpop.f32.mrf.mxu2 }
 0x7c7   :  { %v3132_v34 = vpop.eup %3131 }
 0x7c8   :  { %770 = vrot.lane.b32.xlu0 %v3132_v34, %s3571_s4  ;;  %v3134_v40 = vpop.eup %3133 }
 0x7c9   :  { %v677_v44 = vadd.f32 1.0, %v3134_v40  ;;  %v3136_v32 = vpop.eup %3135 }
 0x7ca   :  { %v748_v46 = vadd.f32 1.0, %v3136_v32 }
 0x7cb   :  { %3137 = vrcp.f32 %v677_v44  ;;  %v689_v60 = vand.u32 2147483648, %v677_v44  ;;  %vm683_vm1 = vweird.f32 %v677_v44  ;;  %v687_v62 = vand.u32 2147483647, %v677_v44 }
 0x7cc   :  { %3139 = vrcp.f32 %v748_v46  ;;  %v760_v13 = vand.u32 2147483648, %v748_v46  ;;  %vm754_vm5 = vweird.f32 %v748_v46  ;;  %v758_v14 = vand.u32 2147483647, %v748_v46 }
 0x7cd   :  { %v690_v63 = vor.u32 1.1754944e-38, %v689_v60  ;;  %vm688_vm2 = vcmp.eq.f32.partialorder %v687_v62, 8.507059e+37 }
 0x7ce   :  { %v761_v16 = vor.u32 1.1754944e-38, %v760_v13  ;;  %vm759_vm10 = vcmp.eq.f32.partialorder %v758_v14, 8.507059e+37 }
 0x7d1   :  { %v3138_v48 = vpop.eup %3137 }
 0x7d2   :  { %v679_v3 = vmul.f32 %v3138_v48, %v677_v44  ;;  %v3140_v49 = vpop.eup %3139  ;;  %vm684_vm0 = vweird.f32 %v3138_v48 }
 0x7d3   :  { %v750_v51 = vmul.f32 %v3140_v49, %v748_v46  ;;  %vm685_vm15 = vmor %vm683_vm1, %vm684_vm0  ;;  %vm755_vm4 = vweird.f32 %v3140_v49 }
 0x7d4   :  { %v680_v50 = vsub.f32 1.0, %v679_v3  ;;  %vm756_vm9 = vmor %vm754_vm5, %vm755_vm4  ;;  %vm868_vm5 = vcmp.gt.s32.totalorder %v3749_v38, 4 }
 0x7d5   :  { %v751_v57 = vsub.f32 1.0, %v750_v51 }
 0x7d6   :  { %v681_v53 = vmul.f32 %v3138_v48, %v680_v50 }
 0x7d7   :  { %v752_v56 = vmul.f32 %v3140_v49, %v751_v57 }
 0x7d8   :  { %v682_v58 = vadd.f32 %v3138_v48, %v681_v53 }
 0x7d9   :  { %v753_v11 = vadd.f32 %v3140_v49, %v752_v56 }
 0x7da   :  { %v686_v39 = vsel %vm685_vm15, %v3138_v48, %v682_v58 }
 0x7db   :  { %v691_v10 = vsel %vm688_vm2, %v690_v63, %v686_v39  ;;  %v757_v15 = vsel %vm756_vm9, %v3140_v49, %v753_v11 }
 0x7dc   :  { %v762_v18 = vsel %vm759_vm10, %v761_v16, %v757_v15  ;;  %v694_v29 = vmul.f32 %v691_v10, %v3952_v28 }
 0x7dd   :  { %v768_v7 = vmul.f32 %v766_v2, %v762_v18 }
 0x833   :  { %v697_v9 = vpop.permute.xlu1 %696 }
 0x834   :  { %v699_v12 = vmul.f32 %v697_v9, %v691_v10 }
 0x836   :  { %701 = vrot.lane.b32.xlu0 %v699_v12, %s3571_s4 }
 0x83a   :  { %v771_v6 = vpop.permute.xlu0 %770 }
 0x83b   :  { %v773_v19 = vmul.f32 %v771_v6, %v762_v18 }
 0x83d   :  { %775 = vrot.lane.b32.xlu2 %v773_v19, %s3571_s4 }
 0x897   :  { %v776_v25 = vpop.permute.xlu2 %775 }
 0x898   :  { %v778_v26 = vadd.f32 %v776_v25, %v768_v7 }
 0x89a   :  { %3141 = vtanh.f32 %v778_v26  ;;  %v792_v45 = vrot.slane %v778_v26, 4 }
 0x8a0   :  { %v3142_v27 = vpop.eup %3141 }
 0x8a1   :  { %781 = vrot.lane.b32.xlu1 %v3142_v27, %s3571_s4 }
 0x8a8   :  { %v702_v30 = vpop.permute.xlu0 %701 }
 0x8a9   :  { %v3955_v31 = vadd.f32 %v702_v30, %v694_v29 }
 0x8ab   :  { %3143 = vtanh.f32 %v3955_v31 }
 0x8b1   :  { %v3144_v61 = vpop.eup %3143 }
 0x8b2   :  { %707 = vrot.lane.b32.xlu2 %v3144_v61, %s3571_s4 }
 0x8ba   :  { %793 = vrot.lane.b32.xlu2 %v792_v45, %s3572_s6 }
 0x90c   :  { %v708_v33 = vpop.permute.xlu2 %707 }
 0x90d   :  { %v3960_v34 = vmul.f32 %v708_v33, %v691_v10 }
 0x90f   :  { %v3966_v55 = vsel %vm582_vm6, %v3960_v34, %v3884_v5 }
 0x910   :  { %801 = vrot.lane.b32.xlu1 %v3966_v55, %s3572_s6 }
 0x913   :  { %v782_v59 = vpop.permute.xlu1 %781 }
 0x914   :  { %v784_v36 = vmul.f32 %v782_v59, %v762_v18  ;;  %v794_v3 = vpop.permute.xlu2 %793 }
 0x916   :  { %v786_v37 = vrot.slane %v784_v36, 4  ;;  %v4007_v36 = vsel %vm582_vm6, %v3955_v31, %v3952_v28 }
 0x918   :  { %787 = vrot.lane.b32.xlu0 %v786_v37, %s3564_s2 }
 0x920   :  { %796 = vrot.lane.b32.xlu0 %v647_v20, %s3572_s6 }
 0x982   :  { %v802_v44 = vpop.permute.xlu1 %801 }
 0x98a   :  { %v788_v40 = vpop.permute.xlu0 %787 }
 0x98b   :  { %v3976_v32 = vsel %vm720_vm11, %v788_v40, %v3909_v17  ;;  %v3993_v17 = vadd.f32 %v3728_v8, %v3846_v0 }
 0x98c   :  { %v804_v5 = vsel %vm286_vm7, %v3976_v32, %v802_v44  ;;  %v869_v46 = vpack.c.bf16 %v3976_v32, %v3976_v32 }
 0x98d   :  { %v805_v48 = vpack.c.bf16 %v804_v5, %v804_v5 }
 0x98e   :  { %2959 = vmatmul.msk.bf16.vlgmr.msra.gmra.mxu0 %vm286_vm7, %v869_v46 }
 0x98f   :  { %2957 = vmatmul.msk.bf16.vlgmr.msra.gmra.mxu3 %vm373_vm8, %v805_v48 }
 0x990   :  { %1385 = vmatpush.bf16.msra.mxu3 %v3746_v35 }
 0x992   :  { %v797_v49 = vpop.permute.xlu0 %796 }
 0x993   :  { %v799_v50 = vsel %vm720_vm11, %v794_v3, %v797_v49 }
 0x994   :  { %908 = vrot.lane.b32.xlu0 %v799_v50, %s3571_s4  ;;  %1386 = vmatpush.bf16.msra.mxu3 %v3759_v41 }
 0x998   :  { %1387 = vmatpush.bf16.msra.mxu3 %v3765_v42 }
 0x99c   :  { %1388 = vmatpush.bf16.msra.mxu3 %v3771_v43 }
 0xa06   :  { %v4014_v46 = vpop.permute.xlu0 %908 }
 0xa0b   :  { %v882_v51 = vpop.f32.mrf.mxu0 }
 0xa0c   :  { %v886_v35 = vadd.f32 %v882_v51, %v3993_v17 }
 0xa0e   :  { %3145 = vtanh.f32 %v886_v35  ;;  %v2960_v62 = vmul.f32 -1.442695, %v886_v35 }
 0xa12   :  { %v818_v53 = vpop.f32.mrf.mxu3 }
 0xa13   :  { %v819_v57 = vadd.f32 %v3791_v52, %v818_v53  ;;  %v884_v58 = vpop.f32.mrf.mxu0 }
 0xa14   :  { %v3146_v60 = vpop.eup %3145 }
 0xa15   :  { %3147 = vtanh.f32 %v819_v57  ;;  %913 = vrot.lane.b32.xlu1 %v3146_v60, %s3571_s4  ;;  %v2958_v43 = vmul.f32 -1.442695, %v819_v57 }
 0xa17   :  { %3149 = vpow2.f32 %v2958_v43 }
 0xa1a   :  { %v820_v41 = vpop.f32.mrf.mxu3 }
 0xa1b   :  { %v3148_v42 = vpop.eup %3147 }
 0xa1c   :  { %844 = vrot.lane.b32.xlu2 %v3148_v42, %s3571_s4 }
 0xa1d   :  { %v3150_v8 = vpop.eup %3149 }
 0xa1e   :  { %v825_v0 = vadd.f32 1.0, %v3150_v8 }
 0xa20   :  { %3151 = vrcp.f32 %v825_v0  ;;  %v837_v13 = vand.u32 2147483648, %v825_v0  ;;  %vm831_vm13 = vweird.f32 %v825_v0  ;;  %v835_v15 = vand.u32 2147483647, %v825_v0 }
 0xa21   :  { %3153 = vpow2.f32 %v2960_v62 }
 0xa22   :  { %v838_v6 = vor.u32 1.1754944e-38, %v837_v13  ;;  %vm836_vm0 = vcmp.eq.f32.partialorder %v835_v15, 8.507059e+37 }
 0xa26   :  { %v3152_v56 = vpop.eup %3151 }
 0xa27   :  { %v827_v39 = vmul.f32 %v3152_v56, %v825_v0  ;;  %v3154_v63 = vpop.eup %3153  ;;  %vm832_vm12 = vweird.f32 %v3152_v56 }
 0xa28   :  { %v890_v9 = vadd.f32 1.0, %v3154_v63  ;;  %vm833_vm14 = vmor %vm831_vm13, %vm832_vm12 }
 0xa29   :  { %v828_v10 = vsub.f32 1.0, %v827_v39 }
 0xa2a   :  { %3155 = vrcp.f32 %v890_v9  ;;  %v902_v27 = vand.u32 2147483648, %v890_v9  ;;  %vm896_vm15 = vweird.f32 %v890_v9  ;;  %v900_v29 = vand.u32 2147483647, %v890_v9 }
 0xa2b   :  { %v829_v11 = vmul.f32 %v3152_v56, %v828_v10 }
 0xa2c   :  { %v903_v61 = vor.u32 1.1754944e-38, %v902_v27  ;;  %vm901_vm4 = vcmp.eq.f32.partialorder %v900_v29, 8.507059e+37 }
 0xa2d   :  { %v830_v12 = vadd.f32 %v3152_v56, %v829_v11 }
 0xa2f   :  { %v834_v16 = vsel %vm833_vm14, %v3152_v56, %v830_v12 }
 0xa30   :  { %v3156_v14 = vpop.eup %3155  ;;  %v839_v19 = vsel %vm836_vm0, %v838_v6, %v834_v16 }
 0xa31   :  { %v892_v18 = vmul.f32 %v3156_v14, %v890_v9  ;;  %vm897_vm1 = vweird.f32 %v3156_v14  ;;  %v842_v37 = vmul.f32 %v839_v19, %v4007_v36 }
 0xa32   :  { %vm898_vm2 = vmor %vm896_vm15, %vm897_vm1 }
 0xa33   :  { %v893_v7 = vsub.f32 1.0, %v892_v18 }
 0xa35   :  { %v894_v25 = vmul.f32 %v3156_v14, %v893_v7 }
 0xa37   :  { %v895_v26 = vadd.f32 %v3156_v14, %v894_v25 }
 0xa39   :  { %v899_v30 = vsel %vm898_vm2, %v3156_v14, %v895_v26  ;;  %vm1006_vm2 = vcmp.gt.s32.totalorder %v3749_v38, 5 }
 0xa3a   :  { %v904_v45 = vsel %vm901_vm4, %v903_v61, %v899_v30 }
 0xa76   :  { %v845_v20 = vpop.permute.xlu2 %844 }
 0xa77   :  { %v847_v2 = vmul.f32 %v845_v20, %v839_v19 }
 0xa79   :  { %849 = vrot.lane.b32.xlu2 %v847_v2, %s3571_s4 }
 0xa87   :  { %v914_v33 = vpop.permute.xlu1 %913 }
 0xa88   :  { %v916_v59 = vmul.f32 %v914_v33, %v904_v45 }
 0xa8a   :  { %918 = vrot.lane.b32.xlu1 %v916_v59, %s3571_s4 }
 0xa92   :  { %929 = vrot.lane.b32.xlu1 %v3976_v32, %s3564_s2  ;;  %v911_v32 = vmul.f32 %v4014_v46, %v904_v45 }
 0xad3   :  { %v850_v40 = vpop.permute.xlu2 %849 }
 0xad4   :  { %v4010_v44 = vadd.f32 %v850_v40, %v842_v37 }
 0xad6   :  { %3157 = vtanh.f32 %v4010_v44 }
 0xadc   :  { %v3158_v5 = vpop.eup %3157 }
 0xadd   :  { %855 = vrot.lane.b32.xlu2 %v3158_v5, %s3571_s4 }
 0xafc   :  { %v919_v48 = vpop.permute.xlu1 %918 }
 0xafd   :  { %v4017_v3 = vadd.f32 %v919_v48, %v911_v32 }
 0xaff   :  { %3159 = vtanh.f32 %v4017_v3 }
 0xb04   :  { %v930_v53 = vpop.permute.xlu1 %929 }
 0xb05   :  { %v3160_v28 = vpop.eup %3159 }
 0xb06   :  { %924 = vrot.lane.b32.xlu0 %v3160_v28, %s3571_s4 }
 0xb37   :  { %v856_v31 = vpop.permute.xlu2 %855 }
 0xb38   :  { %v4021_v49 = vmul.f32 %v856_v31, %v839_v19 }
 0xb3a   :  { %v4027_v50 = vsel %vm720_vm11, %v4021_v49, %v3966_v55 }
 0xb3b   :  { %939 = vrot.lane.b32.xlu2 %v4027_v50, %s3572_s6 }
 0xb78   :  { %v925_v51 = vpop.permute.xlu0 %924 }
 0xb79   :  { %v927_v35 = vmul.f32 %v925_v51, %v904_v45 }
 0xb7b   :  { %v932_v57 = vsel %vm868_vm5, %v927_v35, %v930_v53  ;;  %v933_v35 = vsel %vm868_vm5, %v4017_v3, %v4014_v46 }
 0xb7c   :  { %935 = vrot.lane.b32.xlu1 %v932_v57, %s3564_s2  ;;  %v1007_v58 = vpack.c.bf16 %v932_v57, %v932_v57  ;;  %v1052_v53 = vrot.slane %v933_v35, 4 }
 0xb7e   :  { %1009 = vrot.lane.b32.xlu0 %v1007_v58, %s3564_s2 }
 0xb95   :  { %v940_v60 = vpop.permute.xlu2 %939 }
 0xbee   :  { %v4036_v41 = vpop.permute.xlu1 %935 }
 0xbef   :  { %v942_v55 = vsel %vm286_vm7, %v4036_v41, %v940_v60 }
 0xbf0   :  { %v943_v42 = vpack.c.bf16 %v942_v55, %v942_v55  ;;  %v1010_v43 = vpop.permute.xlu0 %1009 }
 0xbf1   :  { %2963 = vmatmul.msk.bf16.vlgmr.msrb.gmra.mxu2 %vm286_vm7, %v1010_v43 }
 0xbf2   :  { %2961 = vmatmul.msk.bf16.vlgmr.msra.gmra.mxu1 %vm373_vm8, %v943_v42  ;;  %v4057_v42 = vsel %vm720_vm11, %v4010_v44, %v4007_v36 }
 0xc6f   :  { %v956_v8 = vpop.f32.mrf.mxu1 }
 0xc70   :  { %v957_v0 = vadd.f32 %v3791_v52, %v956_v8 }
 0xc72   :  { %3161 = vtanh.f32 %v957_v0  ;;  %v2962_v12 = vmul.f32 -1.442695, %v957_v0 }
 0xc74   :  { %v1023_v62 = vpop.f32.mrf.mxu2 }
 0xc75   :  { %v1028_v56 = vrot.slane %v1023_v62, 4 }
 0xc77   :  { %v1030_v39 = vadd.f32 %v1028_v56, %v3993_v17  ;;  %v958_v63 = vpop.f32.mrf.mxu1 }
 0xc78   :  { %v3162_v9 = vpop.eup %3161 }
 0xc79   :  { %3163 = vtanh.f32 %v1030_v39  ;;  %982 = vrot.lane.b32.xlu1 %v3162_v9, %s3571_s4  ;;  %v2964_v13 = vmul.f32 -1.442695, %v1030_v39 }
 0xc7a   :  { %3165 = vpow2.f32 %v2962_v12 }
 0xc7b   :  { %3167 = vpow2.f32 %v2964_v13 }
 0xc7c   :  { %v1025_v10 = vpop.f32.mrf.mxu2 }
 0xc7f   :  { %v3164_v11 = vpop.eup %3163 }
 0xc80   :  { %1056 = vrot.lane.b32.xlu0 %v3164_v11, %s3571_s4  ;;  %v3166_v14 = vpop.eup %3165 }
 0xc81   :  { %v963_v52 = vadd.f32 1.0, %v3166_v14  ;;  %v3168_v15 = vpop.eup %3167 }
 0xc82   :  { %v1034_v16 = vadd.f32 1.0, %v3168_v15 }
 0xc83   :  { %3169 = vrcp.f32 %v963_v52  ;;  %v975_v26 = vand.u32 2147483648, %v963_v52  ;;  %vm969_vm10 = vweird.f32 %v963_v52  ;;  %v973_v27 = vand.u32 2147483647, %v963_v52 }
 0xc84   :  { %3171 = vrcp.f32 %v1034_v16  ;;  %v1046_v40 = vand.u32 2147483648, %v1034_v16  ;;  %vm1040_vm0 = vweird.f32 %v1034_v16  ;;  %v1044_v5 = vand.u32 2147483647, %v1034_v16 }
 0xc85   :  { %v976_v61 = vor.u32 1.1754944e-38, %v975_v26  ;;  %vm974_vm13 = vcmp.eq.f32.partialorder %v973_v27, 8.507059e+37 }
 0xc86   :  { %v1047_v48 = vor.u32 1.1754944e-38, %v1046_v40  ;;  %vm1045_vm15 = vcmp.eq.f32.partialorder %v1044_v5, 8.507059e+37 }
 0xc89   :  { %v3170_v6 = vpop.eup %3169 }
 0xc8a   :  { %v965_v17 = vmul.f32 %v3170_v6, %v963_v52  ;;  %v3172_v18 = vpop.eup %3171  ;;  %vm970_vm9 = vweird.f32 %v3170_v6 }
 0xc8b   :  { %v1036_v20 = vmul.f32 %v3172_v18, %v1034_v16  ;;  %vm971_vm12 = vmor %vm969_vm10, %vm970_vm9  ;;  %vm1041_vm14 = vweird.f32 %v3172_v18 }
 0xc8c   :  { %v966_v19 = vsub.f32 1.0, %v965_v17  ;;  %vm1042_vm1 = vmor %vm1040_vm0, %vm1041_vm14 }
 0xc8d   :  { %v1037_v7 = vsub.f32 1.0, %v1036_v20 }
 0xc8e   :  { %v967_v2 = vmul.f32 %v3170_v6, %v966_v19  ;;  %v4096_v19 = vld [vmem:[#allocation7] ss:$0 sm:$0xff] }
 0xc8f   :  { %v1038_v29 = vmul.f32 %v3172_v18, %v1037_v7 }
 0xc90   :  { %v968_v25 = vadd.f32 %v3170_v6, %v967_v2 }
 0xc91   :  { %v1039_v59 = vadd.f32 %v3172_v18, %v1038_v29 }
 0xc92   :  { %v972_v30 = vsel %vm971_vm12, %v3170_v6, %v968_v25 }
 0xc93   :  { %v977_v33 = vsel %vm974_vm13, %v976_v61, %v972_v30  ;;  %v1043_v32 = vsel %vm1042_vm1, %v3172_v18, %v1039_v59 }
 0xc94   :  { %v1048_v31 = vsel %vm1045_vm15, %v1047_v48, %v1043_v32  ;;  %v980_v43 = vmul.f32 %v977_v33, %v4057_v42  ;;  %vm1154_vm15 = vcmp.gt.s32.totalorder %v3749_v38, 6 }
 0xc95   :  { %v1054_v57 = vmul.f32 %v1052_v53, %v1048_v31 }
 0xceb   :  { %v983_v45 = vpop.permute.xlu1 %982 }
 0xcec   :  { %v985_v37 = vmul.f32 %v983_v45, %v977_v33 }
 0xcee   :  { %987 = vrot.lane.b32.xlu0 %v985_v37, %s3571_s4 }
 0xcf2   :  { %v1057_v28 = vpop.permute.xlu0 %1056 }
 0xcf3   :  { %v1059_v51 = vmul.f32 %v1057_v28, %v1048_v31 }
 0xcf5   :  { %1061 = vrot.lane.b32.xlu2 %v1059_v51, %s3571_s4 }
 0xd4f   :  { %v1062_v58 = vpop.permute.xlu2 %1061 }
 0xd50   :  { %v1064_v60 = vadd.f32 %v1062_v58, %v1054_v57 }
 0xd52   :  { %3173 = vtanh.f32 %v1064_v60  ;;  %v1078_v3 = vrot.slane %v1064_v60, 4 }
 0xd58   :  { %v3174_v55 = vpop.eup %3173 }
 0xd59   :  { %1067 = vrot.lane.b32.xlu1 %v3174_v55, %s3571_s4 }
 0xd60   :  { %v988_v8 = vpop.permute.xlu0 %987 }
 0xd61   :  { %v4060_v0 = vadd.f32 %v988_v8, %v980_v43 }
 0xd63   :  { %3175 = vtanh.f32 %v4060_v0 }
 0xd69   :  { %v3176_v46 = vpop.eup %3175 }
 0xd6a   :  { %993 = vrot.lane.b32.xlu2 %v3176_v46, %s3571_s4 }
 0xd72   :  { %1079 = vrot.lane.b32.xlu2 %v1078_v3, %s3572_s6 }
 0xdc4   :  { %v994_v62 = vpop.permute.xlu2 %993 }
 0xdc5   :  { %v4065_v56 = vmul.f32 %v994_v62, %v977_v33 }
 0xdc7   :  { %v4071_v36 = vsel %vm868_vm5, %v4065_v56, %v4027_v50 }
 0xdc8   :  { %1087 = vrot.lane.b32.xlu1 %v4071_v36, %s3572_s6 }
 0xdcb   :  { %v1068_v44 = vpop.permute.xlu1 %1067 }
 0xdcc   :  { %v1070_v39 = vmul.f32 %v1068_v44, %v1048_v31  ;;  %v1080_v14 = vpop.permute.xlu2 %1079 }
 0xdce   :  { %v1072_v63 = vrot.slane %v1070_v39, 4 }
 0xdd0   :  { %1073 = vrot.lane.b32.xlu0 %v1072_v63, %s3564_s2 }
 0xdd8   :  { %1082 = vrot.lane.b32.xlu0 %v933_v35, %s3572_s6 }
 0xe3a   :  { %v1088_v10 = vpop.permute.xlu1 %1087 }
 0xe42   :  { %v1074_v9 = vpop.permute.xlu0 %1073 }
 0xe43   :  { %v4081_v11 = vsel %vm1006_vm2, %v1074_v9, %v4036_v41  ;;  %v3345_v41 = vld [vmem:[#allocation5] ss:$0 sm:$0xff]  ;;  %v4109_v9 = vsel %vm868_vm5, %v4060_v0, %v4057_v42 }
 0xe44   :  { %v1090_v50 = vsel %vm286_vm7, %v4081_v11, %v1088_v10  ;;  %v1155_v12 = vpack.c.bf16 %v4081_v11, %v4081_v11  ;;  %v4093_v16 = vadd.f32 %v3345_v41, %v3848_v1 }
 0xe45   :  { %v1091_v13 = vpack.c.bf16 %v1090_v50, %v1090_v50 }
 0xe46   :  { %2967 = vmatmul.msk.bf16.vlgmr.msrb.gmra.mxu0 %vm286_vm7, %v1155_v12 }
 0xe47   :  { %2965 = vmatmul.msk.bf16.vlgmr.msrb.gmra.mxu3 %vm373_vm8, %v1091_v13 }
 0xe4a   :  { %v1083_v52 = vpop.permute.xlu0 %1082 }
 0xe4b   :  { %v1085_v15 = vsel %vm1006_vm2, %v1080_v14, %v1083_v52 }
 0xe4c   :  { %1194 = vrot.lane.b32.xlu0 %v1085_v15, %s3571_s4 }
 0xebe   :  { %v4116_v14 = vpop.permute.xlu0 %1194 }
 0xec3   :  { %v1168_v6 = vpop.f32.mrf.mxu0 }
 0xec4   :  { %v1172_v17 = vadd.f32 %v1168_v6, %v4093_v16 }
 0xec6   :  { %3177 = vtanh.f32 %v1172_v17  ;;  %v2968_v30 = vmul.f32 -1.442695, %v1172_v17 }
 0xeca   :  { %v1104_v18 = vpop.f32.mrf.mxu3 }
 0xecb   :  { %v1105_v20 = vadd.f32 %v4096_v19, %v1104_v18  ;;  %v1170_v2 = vpop.f32.mrf.mxu0 }
 0xecc   :  { %v3178_v7 = vpop.eup %3177 }
 0xecd   :  { %3179 = vtanh.f32 %v1105_v20  ;;  %1199 = vrot.lane.b32.xlu1 %v3178_v7, %s3571_s4  ;;  %v2966_v1 = vmul.f32 -1.442695, %v1105_v20 }
 0xecf   :  { %3181 = vpow2.f32 %v2966_v1 }
 0xed2   :  { %v1106_v25 = vpop.f32.mrf.mxu3 }
 0xed3   :  { %v3180_v26 = vpop.eup %3179 }
 0xed4   :  { %1130 = vrot.lane.b32.xlu2 %v3180_v26, %s3571_s4 }
 0xed5   :  { %v3182_v27 = vpop.eup %3181 }
 0xed6   :  { %v1111_v29 = vadd.f32 1.0, %v3182_v27 }
 0xed8   :  { %3183 = vrcp.f32 %v1111_v29  ;;  %v1123_v32 = vand.u32 2147483648, %v1111_v29  ;;  %vm1117_vm9 = vweird.f32 %v1111_v29  ;;  %v1121_v28 = vand.u32 2147483647, %v1111_v29 }
 0xed9   :  { %3185 = vpow2.f32 %v2968_v30 }
 0xeda   :  { %v1124_v51 = vor.u32 1.1754944e-38, %v1123_v32  ;;  %vm1122_vm12 = vcmp.eq.f32.partialorder %v1121_v28, 8.507059e+37 }
 0xede   :  { %v3184_v61 = vpop.eup %3183 }
 0xedf   :  { %v1113_v45 = vmul.f32 %v3184_v61, %v1111_v29  ;;  %v3186_v33 = vpop.eup %3185  ;;  %vm1118_vm4 = vweird.f32 %v3184_v61 }
 0xee0   :  { %v1176_v59 = vadd.f32 1.0, %v3186_v33  ;;  %vm1119_vm10 = vmor %vm1117_vm9, %vm1118_vm4 }
 0xee1   :  { %v1114_v37 = vsub.f32 1.0, %v1113_v45 }
 0xee2   :  { %3187 = vrcp.f32 %v1176_v59  ;;  %v1188_v8 = vand.u32 2147483648, %v1176_v59  ;;  %vm1182_vm14 = vweird.f32 %v1176_v59  ;;  %v1186_v46 = vand.u32 2147483647, %v1176_v59 }
 0xee3   :  { %v1115_v40 = vmul.f32 %v3184_v61, %v1114_v37 }
 0xee4   :  { %v1189_v62 = vor.u32 1.1754944e-38, %v1188_v8  ;;  %vm1187_vm1 = vcmp.eq.f32.partialorder %v1186_v46, 8.507059e+37 }
 0xee5   :  { %v1116_v5 = vadd.f32 %v3184_v61, %v1115_v40 }
 0xee7   :  { %v1120_v31 = vsel %vm1119_vm10, %v3184_v61, %v1116_v5 }
 0xee8   :  { %v3188_v48 = vpop.eup %3187  ;;  %v1125_v53 = vsel %vm1122_vm12, %v1124_v51, %v1120_v31 }
 0xee9   :  { %v1178_v35 = vmul.f32 %v3188_v48, %v1176_v59  ;;  %vm1183_vm13 = vweird.f32 %v3188_v48  ;;  %v1128_v10 = vmul.f32 %v1125_v53, %v4109_v9 }
 0xeea   :  { %vm1184_vm0 = vmor %vm1182_vm14, %vm1183_vm13 }
 0xeeb   :  { %v1179_v60 = vsub.f32 1.0, %v1178_v35 }
 0xeed   :  { %v1180_v55 = vmul.f32 %v3188_v48, %v1179_v60 }
 0xeef   :  { %v1181_v43 = vadd.f32 %v3188_v48, %v1180_v55 }
 0xef1   :  { %v1185_v3 = vsel %vm1184_vm0, %v3188_v48, %v1181_v43 }
 0xef2   :  { %v1190_v44 = vsel %vm1187_vm1, %v1189_v62, %v1185_v3 }
 0xf2e   :  { %v1131_v57 = vpop.permute.xlu2 %1130 }
 0xf2f   :  { %v1133_v58 = vmul.f32 %v1131_v57, %v1125_v53 }
 0xf31   :  { %1135 = vrot.lane.b32.xlu2 %v1133_v58, %s3571_s4 }
 0xf3f   :  { %v1200_v39 = vpop.permute.xlu1 %1199 }
 0xf40   :  { %v1202_v63 = vmul.f32 %v1200_v39, %v1190_v44 }
 0xf42   :  { %1204 = vrot.lane.b32.xlu1 %v1202_v63, %s3571_s4 }
 0xf4a   :  { %1215 = vrot.lane.b32.xlu1 %v4081_v11, %s3564_s2  ;;  %v1197_v11 = vmul.f32 %v4116_v14, %v1190_v44 }
 0xf8b   :  { %v1136_v50 = vpop.permute.xlu2 %1135 }
 0xf8c   :  { %v4112_v12 = vadd.f32 %v1136_v50, %v1128_v10 }
 0xf8e   :  { %3189 = vtanh.f32 %v4112_v12 }
 0xf94   :  { %v3190_v13 = vpop.eup %3189 }
 0xf95   :  { %1141 = vrot.lane.b32.xlu2 %v3190_v13, %s3571_s4 }
 0xfb4   :  { %v1205_v52 = vpop.permute.xlu1 %1204 }
 0xfb5   :  { %v4119_v15 = vadd.f32 %v1205_v52, %v1197_v11 }
 0xfb7   :  { %3191 = vtanh.f32 %v4119_v15 }
 0xfbc   :  { %v1216_v20 = vpop.permute.xlu1 %1215 }
 0xfbd   :  { %v3192_v42 = vpop.eup %3191 }
 0xfbe   :  { %1210 = vrot.lane.b32.xlu0 %v3192_v42, %s3571_s4 }
 0xfef   :  { %v1142_v0 = vpop.permute.xlu2 %1141 }
 0xff0   :  { %v4123_v41 = vmul.f32 %v1142_v0, %v1125_v53 }
 0xff2   :  { %v4129_v6 = vsel %vm1006_vm2, %v4123_v41, %v4071_v36 }
 0xff3   :  { %1225 = vrot.lane.b32.xlu2 %v4129_v6, %s3572_s6 }
0x1030   :  { %v1211_v17 = vpop.permute.xlu0 %1210 }
0x1031   :  { %v1213_v18 = vmul.f32 %v1211_v17, %v1190_v44 }
0x1033   :  { %v1218_v2 = vsel %vm1154_vm15, %v1213_v18, %v1216_v20 }
0x1034   :  { %1221 = vrot.lane.b32.xlu1 %v1218_v2, %s3564_s2  ;;  %v1293_v7 = vpack.c.bf16 %v1218_v2, %v1218_v2  ;;  %v1219_v2 = vsel %vm1154_vm15, %v4119_v15, %v4116_v14 }
0x1036   :  { %1295 = vrot.lane.b32.xlu0 %v1293_v7, %s3564_s2  ;;  %v1338_v7 = vrot.slane %v1219_v2, 4 }
0x104d   :  { %v1226_v25 = vpop.permute.xlu2 %1225 }
0x10a6   :  { %v4138_v26 = vpop.permute.xlu1 %1221 }
0x10a7   :  { %v1228_v36 = vsel %vm286_vm7, %v4138_v26, %v1226_v25 }
0x10a8   :  { %v1229_v1 = vpack.c.bf16 %v1228_v36, %v1228_v36  ;;  %v1296_v27 = vpop.permute.xlu0 %1295 }
0x10a9   :  { %2971 = vmatmul.msk.bf16.vlgmr.msra.gmra.mxu2 %vm286_vm7, %v1296_v27 }
0x10aa   :  { %2969 = vmatmul.msk.bf16.vlgmr.msrb.gmra.mxu1 %vm373_vm8, %v1229_v1 }
0x1127   :  { %v1242_v29 = vpop.f32.mrf.mxu1 }
0x1128   :  { %v1243_v30 = vadd.f32 %v4096_v19, %v1242_v29  ;;  %v4159_v29 = vsel %vm1006_vm2, %v4112_v12, %v4109_v9 }
0x112a   :  { %3193 = vtanh.f32 %v1243_v30  ;;  %v2970_v32 = vmul.f32 -1.442695, %v1243_v30 }
0x112c   :  { %v1309_v61 = vpop.f32.mrf.mxu2 }
0x112d   :  { %v1314_v45 = vrot.slane %v1309_v61, 4 }
0x112f   :  { %v1316_v33 = vadd.f32 %v1314_v45, %v4093_v16  ;;  %v1244_v59 = vpop.f32.mrf.mxu1 }
0x1130   :  { %v3194_v37 = vpop.eup %3193 }
0x1131   :  { %3195 = vtanh.f32 %v1316_v33  ;;  %1268 = vrot.lane.b32.xlu1 %v3194_v37, %s3571_s4  ;;  %v2972_v48 = vmul.f32 -1.442695, %v1316_v33 }
0x1132   :  { %3197 = vpow2.f32 %v2970_v32  ;;  %v4183_v32 = vld [vmem:[#allocation8] sm:$0xff] }
0x1133   :  { %3199 = vpow2.f32 %v2972_v48 }
0x1134   :  { %v1311_v40 = vpop.f32.mrf.mxu2 }
0x1137   :  { %v3196_v5 = vpop.eup %3195 }
0x1138   :  { %1342 = vrot.lane.b32.xlu0 %v3196_v5, %s3571_s4  ;;  %v3198_v28 = vpop.eup %3197  ;;  %v4179_v5 = vld [vmem:[#allocation8 + $0x8] sm:$0xff] }
0x1139   :  { %v1249_v31 = vadd.f32 1.0, %v3198_v28  ;;  %v3200_v51 = vpop.eup %3199  ;;  %1462 = vmatpush.bf16.msra.mxu0 %v4179_v5  ;;  %1680 = vmatpush.bf16.msrb.mxu3 %v4179_v5 }
0x113a   :  { %v1320_v35 = vadd.f32 1.0, %v3200_v51 }
0x113b   :  { %3201 = vrcp.f32 %v1249_v31  ;;  %v1261_v46 = vand.u32 2147483648, %v1249_v31  ;;  %vm1255_vm9 = vweird.f32 %v1249_v31  ;;  %v1259_v3 = vand.u32 2147483647, %v1249_v31 }
0x113c   :  { %3203 = vrcp.f32 %v1320_v35  ;;  %v1332_v11 = vand.u32 2147483648, %v1320_v35  ;;  %vm1326_vm14 = vweird.f32 %v1320_v35  ;;  %v1330_v52 = vand.u32 2147483647, %v1320_v35 }
0x113d   :  { %v1262_v39 = vor.u32 1.1754944e-38, %v1261_v46  ;;  %vm1260_vm12 = vcmp.eq.f32.partialorder %v1259_v3, 8.507059e+37  ;;  %1463 = vmatpush.bf16.msra.mxu0 %v4183_v32  ;;  %1681 = vmatpush.bf16.msrb.mxu3 %v4183_v32 }
0x113e   :  { %v1333_v0 = vor.u32 1.1754944e-38, %v1332_v11  ;;  %vm1331_vm1 = vcmp.eq.f32.partialorder %v1330_v52, 8.507059e+37 }
0x1141   :  { %v3202_v53 = vpop.eup %3201 }
0x1142   :  { %v1251_v16 = vmul.f32 %v3202_v53, %v1249_v31  ;;  %v3204_v57 = vpop.eup %3203  ;;  %vm1256_vm4 = vweird.f32 %v3202_v53 }
0x1143   :  { %v1322_v60 = vmul.f32 %v3204_v57, %v1320_v35  ;;  %vm1257_vm10 = vmor %vm1255_vm9, %vm1256_vm4  ;;  %vm1327_vm13 = vweird.f32 %v3204_v57  ;;  %vm1292_vm4 = vcmp.gt.s32.totalorder %v3749_v38, 7 }
0x1144   :  { %v1252_v58 = vsub.f32 1.0, %v1251_v16  ;;  %vm1328_vm0 = vmor %vm1326_vm14, %vm1327_vm13  ;;  %v4196_v16 = vadd.f32 %v3922_v47, %v3935_v24 }
0x1145   :  { %v1323_v43 = vsub.f32 1.0, %v1322_v60 }
0x1146   :  { %v1253_v55 = vmul.f32 %v3202_v53, %v1252_v58 }
0x1147   :  { %v1324_v62 = vmul.f32 %v3204_v57, %v1323_v43 }
0x1148   :  { %v1254_v8 = vadd.f32 %v3202_v53, %v1253_v55 }
0x1149   :  { %v1325_v50 = vadd.f32 %v3204_v57, %v1324_v62 }
0x114a   :  { %v1258_v44 = vsel %vm1257_vm10, %v3202_v53, %v1254_v8 }
0x114b   :  { %v1263_v10 = vsel %vm1260_vm12, %v1262_v39, %v1258_v44  ;;  %v1329_v42 = vsel %vm1328_vm0, %v3204_v57, %v1325_v50 }
0x114c   :  { %v1334_v18 = vsel %vm1331_vm1, %v1333_v0, %v1329_v42  ;;  %v1266_v30 = vmul.f32 %v1263_v10, %v4159_v29 }
0x114d   :  { %v1340_v25 = vmul.f32 %v1338_v7, %v1334_v18 }
0x11a3   :  { %v1269_v63 = vpop.permute.xlu1 %1268 }
0x11a4   :  { %v1271_v13 = vmul.f32 %v1269_v63, %v1263_v10 }
0x11a6   :  { %1273 = vrot.lane.b32.xlu0 %v1271_v13, %s3571_s4 }
0x11aa   :  { %v1343_v17 = vpop.permute.xlu0 %1342 }
0x11ab   :  { %v1345_v20 = vmul.f32 %v1343_v17, %v1334_v18 }
0x11ad   :  { %1347 = vrot.lane.b32.xlu2 %v1345_v20, %s3571_s4 }
0x1207   :  { %v1348_v36 = vpop.permute.xlu2 %1347 }
0x1208   :  { %v1350_v1 = vadd.f32 %v1348_v36, %v1340_v25 }
0x120a   :  { %3205 = vtanh.f32 %v1350_v1  ;;  %v1364_v15 = vrot.slane %v1350_v1, 4 }
0x1210   :  { %v3206_v27 = vpop.eup %3205 }
0x1211   :  { %1353 = vrot.lane.b32.xlu1 %v3206_v27, %s3571_s4 }
0x1218   :  { %v1274_v61 = vpop.permute.xlu0 %1273 }
0x1219   :  { %v4162_v45 = vadd.f32 %v1274_v61, %v1266_v30 }
0x121b   :  { %3207 = vtanh.f32 %v4162_v45 }
0x1221   :  { %v3208_v14 = vpop.eup %3207 }
0x1222   :  { %1279 = vrot.lane.b32.xlu2 %v3208_v14, %s3571_s4 }
0x122a   :  { %1365 = vrot.lane.b32.xlu2 %v1364_v15, %s3572_s6 }
0x127c   :  { %v1280_v33 = vpop.permute.xlu2 %1279 }
0x127d   :  { %v4167_v59 = vmul.f32 %v1280_v33, %v1263_v10 }
0x127f   :  { %v4173_v9 = vsel %vm1154_vm15, %v4167_v59, %v4129_v6 }
0x1280   :  { %1373 = vrot.lane.b32.xlu1 %v4173_v9, %s3572_s6 }
0x1283   :  { %v1354_v12 = vpop.permute.xlu1 %1353 }
0x1284   :  { %v1356_v37 = vmul.f32 %v1354_v12, %v1334_v18  ;;  %v1366_v62 = vpop.permute.xlu2 %1365 }
0x1286   :  { %v1358_v40 = vrot.slane %v1356_v37, 4 }
0x1288   :  { %1359 = vrot.lane.b32.xlu0 %v1358_v40, %s3564_s2 }
0x1290   :  { %1368 = vrot.lane.b32.xlu0 %v1219_v2, %s3572_s6 }
0x12f2   :  { %v1374_v48 = vpop.permute.xlu1 %1373 }
0x12fa   :  { %v1360_v6 = vpop.permute.xlu0 %1359 }
0x12fb   :  { %v1362_v28 = vsel %vm1292_vm4, %v1360_v6, %v4138_v26 }
0x12fc   :  { %v1376_v31 = vsel %vm286_vm7, %v1362_v28, %v1374_v48  ;;  %v1440_v51 = vpack.c.bf16 %v1362_v28, %v1362_v28 }
0x12fd   :  { %v1377_v35 = vpack.c.bf16 %v1376_v31, %v1376_v31 }
0x12fe   :  { %2983 = vmatmul.msk.bf16.vlgmr.msra.gmra.mxu0 %vm286_vm7, %v1440_v51 }
0x12ff   :  { %2973 = vmatmul.msk.bf16.vlgmr.msra.gmra.mxu3 %vm373_vm8, %v1377_v35 }
0x1302   :  { %v1369_v3 = vpop.permute.xlu0 %1368 }
0x1303   :  { %v1371_v47 = vsel %vm1292_vm4, %v1366_v62, %v1369_v3  ;;  %v4233_v62 = vld [vmem:[#allocation10 + $0x18] sm:$0xff] }
0x1304   :  { %v1494_v24 = vrot.slane %v1371_v47, 4  ;;  %1559 = vmatpush.bf16.msra.mxu1 %v4233_v62  ;;  %v4236_v47 = vld [vmem:[#allocation10 + $0x10] sm:$0xff]  ;;  %1744 = vmatpush.bf16.msrb.mxu0 %v4233_v62 }
0x1305   :  { %1924 = vmatpush.bf16.msra.mxu3 %v4233_v62 }
0x1308   :  { %1560 = vmatpush.bf16.msra.mxu1 %v4236_v47  ;;  %1745 = vmatpush.bf16.msrb.mxu0 %v4236_v47 }
0x1309   :  { %1925 = vmatpush.bf16.msra.mxu3 %v4236_v47 }
0x137b   :  { %v1465_v53 = vpop.f32.mrf.mxu0 }
0x137c   :  { %v1470_v57 = vrot.slane %v1465_v53, 4 }
0x137e   :  { %v1472_v58 = vadd.f32 %v1470_v57, %v4196_v16  ;;  %v4215_v57 = vsel %vm1154_vm15, %v4162_v45, %v4159_v29 }
0x1380   :  { %3209 = vtanh.f32 %v1472_v58  ;;  %v2984_v44 = vmul.f32 -1.442695, %v1472_v58 }
0x1382   :  { %v1390_v60 = vpop.f32.mrf.mxu3 }
0x1383   :  { %v1391_v26 = vadd.f32 %v4096_v19, %v1390_v60  ;;  %v1467_v55 = vpop.f32.mrf.mxu0 }
0x1385   :  { %3211 = vtanh.f32 %v1391_v26  ;;  %v2974_v50 = vmul.f32 -1.442695, %v1391_v26 }
0x1386   :  { %v3210_v43 = vpop.eup %3209  ;;  %3213 = vpow2.f32 %v2984_v44 }
0x1387   :  { %1500 = vrot.lane.b32.xlu2 %v3210_v43, %s3571_s4 }
0x138a   :  { %v1392_v8 = vpop.f32.mrf.mxu3 }
0x138b   :  { %v3212_v46 = vpop.eup %3211 }
0x138c   :  { %1416 = vrot.lane.b32.xlu1 %v3212_v46, %s3571_s4  ;;  %v3214_v19 = vpop.eup %3213 }
0x138d   :  { %v1476_v39 = vadd.f32 1.0, %v3214_v19 }
0x138f   :  { %3215 = vrcp.f32 %v1476_v39  ;;  %v1488_v0 = vand.u32 2147483648, %v1476_v39  ;;  %vm1482_vm10 = vweird.f32 %v1476_v39  ;;  %v1486_v17 = vand.u32 2147483647, %v1476_v39 }
0x1390   :  { %3217 = vpow2.f32 %v2974_v50  ;;  %v4258_v50 = vld [vmem:[%s4700_s12] ss:$0 sm:$0xff] }
0x1391   :  { %v1489_v2 = vor.u32 1.1754944e-38, %v1488_v0  ;;  %vm1487_vm13 = vcmp.eq.f32.partialorder %v1486_v17, 8.507059e+37 }
0x1394   :  { %1495 = vrot.lane.b32.xlu1 %v1494_v24, %s3571_s4  ;;  %v4241_v24 = vld [vmem:[#allocation10 + $0x8] sm:$0xff] }
0x1395   :  { %v3216_v63 = vpop.eup %3215  ;;  %1561 = vmatpush.bf16.msra.mxu1 %v4241_v24  ;;  %1746 = vmatpush.bf16.msrb.mxu0 %v4241_v24 }
0x1396   :  { %v1478_v10 = vmul.f32 %v3216_v63, %v1476_v39  ;;  %vm1483_vm9 = vweird.f32 %v3216_v63  ;;  %v3218_v42 = vpop.eup %3217  ;;  %1926 = vmatpush.bf16.msra.mxu3 %v4241_v24 }
0x1397   :  { %vm1484_vm12 = vmor %vm1482_vm10, %vm1483_vm9  ;;  %v1397_v18 = vadd.f32 1.0, %v3218_v42 }
0x1398   :  { %v1479_v13 = vsub.f32 1.0, %v1478_v10 }
0x1399   :  { %3219 = vrcp.f32 %v1397_v18  ;;  %v1409_v15 = vand.u32 2147483648, %v1397_v18  ;;  %vm1403_vm0 = vweird.f32 %v1397_v18  ;;  %v1407_v33 = vand.u32 2147483647, %v1397_v18 }
0x139a   :  { %v1480_v11 = vmul.f32 %v3216_v63, %v1479_v13 }
0x139b   :  { %v1410_v37 = vor.u32 1.1754944e-38, %v1409_v15  ;;  %vm1408_vm9 = vcmp.eq.f32.partialorder %v1407_v33, 8.507059e+37 }
0x139c   :  { %v1481_v52 = vadd.f32 %v3216_v63, %v1480_v11 }
0x139e   :  { %v1485_v20 = vsel %vm1484_vm12, %v3216_v63, %v1481_v52 }
0x139f   :  { %v1490_v7 = vsel %vm1487_vm13, %v1489_v2, %v1485_v20  ;;  %v3220_v1 = vpop.eup %3219 }
0x13a0   :  { %v1399_v27 = vmul.f32 %v3220_v1, %v1397_v18  ;;  %vm1404_vm14 = vweird.f32 %v3220_v1 }
0x13a1   :  { %vm1405_vm1 = vmor %vm1403_vm0, %vm1404_vm14  ;;  %vm1630_vm0 = vcmask 60416  }
0x13a2   :  { %v1400_v30 = vsub.f32 1.0, %v1399_v27 }
0x13a4   :  { %v1401_v61 = vmul.f32 %v3220_v1, %v1400_v30 }
0x13a6   :  { %v1402_v14 = vadd.f32 %v3220_v1, %v1401_v61 }
0x13a8   :  { %v1406_v12 = vsel %vm1405_vm1, %v3220_v1, %v1402_v14 }
0x13a9   :  { %v1411_v6 = vsel %vm1408_vm9, %v1410_v37, %v1406_v12 }
0x13aa   :  { %v1414_v58 = vmul.f32 %v1411_v6, %v4215_v57 }
0x13e1   :  { %v1501_v25 = vpop.permute.xlu2 %1500 }
0x13e2   :  { %v1503_v36 = vmul.f32 %v1501_v25, %v1490_v7 }
0x13e4   :  { %1505 = vrot.lane.b32.xlu2 %v1503_v36, %s3571_s4 }
0x13fe   :  { %v1417_v40 = vpop.permute.xlu1 %1416 }
0x13ff   :  { %v1419_v48 = vmul.f32 %v1417_v40, %v1411_v6 }
0x1401   :  { %1421 = vrot.lane.b32.xlu0 %v1419_v48, %s3571_s4 }
0x1406   :  { %v1496_v28 = vpop.permute.xlu1 %1495 }
0x1407   :  { %v1498_v31 = vmul.f32 %v1496_v28, %v1490_v7 }
0x143e   :  { %v1506_v51 = vpop.permute.xlu2 %1505 }
0x143f   :  { %v4207_v35 = vadd.f32 %v1506_v51, %v1498_v31 }
0x1441   :  { %3221 = vtanh.f32 %v4207_v35 }
0x1447   :  { %v3222_v53 = vpop.eup %3221 }
0x1448   :  { %1511 = vrot.lane.b32.xlu1 %v3222_v53, %s3571_s4 }
0x1473   :  { %v1422_v60 = vpop.permute.xlu0 %1421 }
0x1474   :  { %v4218_v26 = vadd.f32 %v1422_v60, %v1414_v58  ;;  %v4285_v60 = vld [vmem:[%s4703_s15 + $0x18] sm:$0xff] }
0x1475   :  { %1622 = vmatpush.msrb.mxu2 %v4285_v60 }
0x1476   :  { %3223 = vtanh.f32 %v4218_v26  ;;  %v1432_v12 = vsel %vm1292_vm4, %v4218_v26, %v4215_v57  ;;  %v4290_v26 = vld [vmem:[%s4703_s15 + $0x10] sm:$0xff] }
0x1477   :  { %1623 = vmatpush.msrb.mxu2 %v4290_v26 }
0x147c   :  { %v3224_v55 = vpop.eup %3223 }
0x147d   :  { %1427 = vrot.lane.b32.xlu0 %v3224_v55, %s3571_s4  ;;  %v4297_v55 = vld [vmem:[%s4703_s15 + $0x8] sm:$0xff] }
0x147e   :  { %1624 = vmatpush.msrb.mxu2 %v4297_v55 }
0x14ba   :  { %v1512_v43 = vpop.permute.xlu1 %1511 }
0x14bb   :  { %v4222_v8 = vmul.f32 %v1512_v43, %v1490_v7  ;;  %v4306_v43 = vld [vmem:[%s4703_s15] sm:$0xff] }
0x14bc   :  { %1625 = vmatpush.msrb.mxu2 %v4306_v43 }
0x14bd   :  { %1516 = vrot.lane.b32.xlu2 %v4222_v8, %s3564_s2  ;;  %v1666_v28 = vpack.c.bf16 %v4222_v8, %v4222_v8  ;;  %v4318_v8 = vld [vmem:[#allocation11 + $0x8] sm:$0xff] }
0x14be   :  { %1657 = vmatpush.bf16.msra.mxu2 %v4318_v8 }
0x14bf   :  { %v1668_v31 = vrot.slane %v1666_v28, 2  ;;  %v1709_v28 = vrot.slane %v4207_v35, 4 }
0x14ef   :  { %v1428_v46 = vpop.permute.xlu0 %1427 }
0x14f0   :  { %v4226_v3 = vmul.f32 %v1428_v46, %v1411_v6  ;;  %v4321_v46 = vld [vmem:[#allocation11] sm:$0xff] }
0x14f1   :  { %1658 = vmatpush.bf16.msra.mxu2 %v4321_v46 }
0x14f2   :  { %v1431_v29 = vsel %vm1292_vm4, %v4226_v3, %v4173_v9  ;;  %v4248_v9 = vld [vmem:[#allocation10] sm:$0xff] }
0x14f3   :  { %v1520_v45 = vrot.slane %v1431_v29, 4  ;;  %1562 = vmatpush.bf16.msra.mxu1 %v4248_v9  ;;  %1747 = vmatpush.bf16.msrb.mxu0 %v4248_v9 }
0x14f4   :  { %1927 = vmatpush.bf16.msra.mxu3 %v4248_v9 }
0x14f5   :  { %1521 = vrot.lane.b32.xlu0 %v1520_v45, %s3572_s6 }
0x14f7   :  { %1807 = vmatpush.msrb.mxu1 %v4285_v60  ;;  %1987 = vmatpush.msra.mxu0 %v4285_v60 }
0x14f9   :  { %1808 = vmatpush.msrb.mxu1 %v4290_v26  ;;  %1988 = vmatpush.msra.mxu0 %v4290_v26 }
0x14fb   :  { %1809 = vmatpush.msrb.mxu1 %v4297_v55  ;;  %1989 = vmatpush.msra.mxu0 %v4297_v55 }
0x14fd   :  { %1810 = vmatpush.msrb.mxu1 %v4306_v43  ;;  %1990 = vmatpush.msra.mxu0 %v4306_v43 }
0x1517   :  { %v1517_v44 = vpop.permute.xlu2 %1516 }
0x1567   :  { %v1522_v19 = vpop.permute.xlu0 %1521 }
0x1568   :  { %v1524_v39 = vsel %vm286_vm7, %v1517_v44, %v1522_v19 }
0x1569   :  { %v1525_v63 = vpack.c.bf16 %v1524_v39, %v1524_v39  ;;  %v4337_v39 = vld [vmem:[%s4704_s16] ss:$0 sm:$0xff] }
0x156b   :  { %v1527_v10 = vrot.slane %v1525_v63, 2 }
0x156d   :  { %3001 = vmatmul.msk.bf16.vlgmr.msra.gmra.mxu1 %vm373_vm8, %v1527_v10 }
0x156e   :  { %1830 = vmatpush.bf16.msra.mxu1 %v4318_v8 }
0x1572   :  { %1831 = vmatpush.bf16.msra.mxu1 %v4321_v46 }
0x15ea   :  { %v1564_v13 = vpop.f32.mrf.mxu1 }
0x15eb   :  { %v1565_v11 = vadd.f32 %v4258_v50, %v1564_v13  ;;  %v4344_v13 = vld [vmem:[%s4702_s14] ss:$0 sm:$0xff] }
0x15ed   :  { %3225 = vtanh.f32 %v1565_v11  ;;  %v3002_v0 = vmul.f32 -1.442695, %v1565_v11  ;;  %v4349_v11 = vld [vmem:[%s4714_s27] sm:$0xff] }
0x15ee   :  { %vm1664_vm1 = vcmp.gt.f32.partialorder %v4349_v11, 0.5 }
0x15ef   :  { %3227 = vpow2.f32 %v3002_v0 }
0x15f2   :  { %v1566_v52 = vpop.f32.mrf.mxu1 }
0x15f3   :  { %v3226_v42 = vpop.eup %3225 }
0x15f4   :  { %1590 = vrot.lane.b32.xlu1 %v3226_v42, %s3571_s4 }
0x15f5   :  { %v3228_v17 = vpop.eup %3227 }
0x15f6   :  { %v1571_v18 = vadd.f32 1.0, %v3228_v17 }
0x15f8   :  { %3229 = vrcp.f32 %v1571_v18  ;;  %v1583_v1 = vand.u32 2147483648, %v1571_v18  ;;  %vm1577_vm12 = vweird.f32 %v1571_v18  ;;  %v1581_v27 = vand.u32 2147483647, %v1571_v18 }
0x15fa   :  { %v1584_v61 = vor.u32 1.1754944e-38, %v1583_v1  ;;  %vm1582_vm14 = vcmp.eq.f32.partialorder %v1581_v27, 8.507059e+37 }
0x15fe   :  { %v3230_v20 = vpop.eup %3229 }
0x15ff   :  { %v1573_v2 = vmul.f32 %v3230_v20, %v1571_v18  ;;  %vm1578_vm10 = vweird.f32 %v3230_v20 }
0x1600   :  { %vm1579_vm13 = vmor %vm1577_vm12, %vm1578_vm10 }
0x1601   :  { %v1574_v7 = vsub.f32 1.0, %v1573_v2 }
0x1603   :  { %v1575_v25 = vmul.f32 %v3230_v20, %v1574_v7 }
0x1605   :  { %v1576_v36 = vadd.f32 %v3230_v20, %v1575_v25 }
0x1607   :  { %v1580_v30 = vsel %vm1579_vm13, %v3230_v20, %v1576_v36 }
0x1608   :  { %v1585_v15 = vsel %vm1582_vm14, %v1584_v61, %v1580_v30 }
0x1609   :  { %v1588_v37 = vmul.f32 %v1585_v15, %v1432_v12 }
0x1666   :  { %v1591_v14 = vpop.permute.xlu1 %1590 }
0x1667   :  { %v1593_v33 = vmul.f32 %v1591_v14, %v1585_v15 }
0x1669   :  { %1595 = vrot.lane.b32.xlu2 %v1593_v33, %s3571_s4 }
0x16c3   :  { %v1596_v40 = vpop.permute.xlu2 %1595 }
0x16c4   :  { %v4267_v6 = vadd.f32 %v1596_v40, %v1588_v37 }
0x16c6   :  { %3231 = vtanh.f32 %v4267_v6 }
0x16cc   :  { %v3232_v48 = vpop.eup %3231 }
0x16cd   :  { %1601 = vrot.lane.b32.xlu0 %v3232_v48, %s3571_s4 }
0x16d5   :  { %1669 = vrot.lane.b32.xlu0 %v1668_v31, %s3564_s2 }
0x173f   :  { %v1602_v51 = vpop.permute.xlu0 %1601 }
0x1740   :  { %v4274_v53 = vmul.f32 %v1602_v51, %v1585_v15 }
0x1742   :  { %1606 = vrot.lane.b32.xlu1 %v4274_v53, %s3564_s2  ;;  %v1632_v57 = vpack.c.bf16 %v4274_v53, %v4274_v53 }
0x1744   :  { %1634 = vrot.lane.b32.xlu2 %v1632_v57, %s3564_s2 }
0x1747   :  { %v1670_v58 = vpop.permute.xlu0 %1669 }
0x1748   :  { %3013 = vmatmul.msk.bf16.vlgmr.msrb.gmra.mxu3 %vm286_vm7, %v1670_v58 }
0x1749   :  { %2160 = vmatpush.msrb.mxu3 %v4285_v60 }
0x174b   :  { %2161 = vmatpush.msrb.mxu3 %v4290_v26 }
0x174d   :  { %2162 = vmatpush.msrb.mxu3 %v4297_v55 }
0x174f   :  { %2163 = vmatpush.msrb.mxu3 %v4306_v43 }
0x179e   :  { %v1635_v45 = vpop.permute.xlu2 %1634 }
0x17b4   :  { %v1607_v29 = vpop.permute.xlu1 %1606 }
0x17b5   :  { %3003 = vmatmul.msk.f32.vlgmr.msrb.gmra.mxu2 %vm286_vm7, %v1607_v29 }
0x17b6   :  { %1854 = vmatpush.bf16.msrb.mxu2 %v4179_v5 }
0x17ba   :  { %1855 = vmatpush.bf16.msrb.mxu2 %v4183_v32 }
0x17bd   :  { %3012 = vmatmul.msk.bf16.vlgmr.msra.gmra.mxu2 %vm286_vm7, %v1635_v45 }
0x17be   :  { %2097 = vmatpush.bf16.msra.mxu2 %v4233_v62 }
0x17c2   :  { %2098 = vmatpush.bf16.msra.mxu2 %v4236_v47 }
0x17c6   :  { %2099 = vmatpush.bf16.msra.mxu2 %v4241_v24 }
0x17ca   :  { %2100 = vmatpush.bf16.msra.mxu2 %v4248_v9 }
0x17cb   :  { %v1683_v44 = vpop.f32.mrf.mxu3 }
0x17d3   :  { %v1685_v19 = vpop.f32.mrf.mxu3 }
0x1838   :  { %v1627_v63 = vpop.f32.mrf.mxu2 }
0x1839   :  { %v1628_v10 = vadd.f32 %v4337_v39, %v1627_v63 }
0x183b   :  { %1631 = vst.msk [vmem:[#allocation13] sm:$0xf] %vm1630_vm0, %v1628_v10 }
0x1840   :  { %v1660_v52 = vpop.f32.mrf.mxu2 }
0x1841   :  { %v1661_v42 = vadd.f32 %v4344_v13, %v1660_v52 }
0x1843   :  { %v1665_v0 = vsel %vm1664_vm1, %v3926_v21, %v1661_v42 }
0x1844   :  { %v1687_v17 = vadd.f32 %v1683_v44, %v1665_v0 }
0x1846   :  { %3233 = vtanh.f32 %v1687_v17  ;;  %v3014_v2 = vmul.f32 -1.442695, %v1687_v17 }
0x1848   :  { %v1662_v18 = vpop.f32.mrf.mxu2  ;;  %3235 = vpow2.f32 %v3014_v2 }
0x184c   :  { %v3234_v20 = vpop.eup %3233 }
0x184d   :  { %1713 = vrot.lane.b32.xlu1 %v3234_v20, %s3571_s4 }
0x184e   :  { %v3236_v7 = vpop.eup %3235 }
0x184f   :  { %v1691_v25 = vadd.f32 1.0, %v3236_v7 }
0x1851   :  { %3237 = vrcp.f32 %v1691_v25  ;;  %v1703_v14 = vand.u32 2147483648, %v1691_v25  ;;  %vm1697_vm10 = vweird.f32 %v1691_v25  ;;  %v1701_v15 = vand.u32 2147483647, %v1691_v25 }
0x1853   :  { %v1704_v12 = vor.u32 1.1754944e-38, %v1703_v14  ;;  %vm1702_vm13 = vcmp.eq.f32.partialorder %v1701_v15, 8.507059e+37 }
0x1857   :  { %v3238_v36 = vpop.eup %3237 }
0x1858   :  { %v1693_v1 = vmul.f32 %v3238_v36, %v1691_v25  ;;  %vm1698_vm9 = vweird.f32 %v3238_v36 }
0x1859   :  { %vm1699_vm12 = vmor %vm1697_vm10, %vm1698_vm9 }
0x185a   :  { %v1694_v27 = vsub.f32 1.0, %v1693_v1 }
0x185c   :  { %v1695_v30 = vmul.f32 %v3238_v36, %v1694_v27 }
0x185e   :  { %v1696_v61 = vadd.f32 %v3238_v36, %v1695_v30 }
0x1860   :  { %v1700_v33 = vsel %vm1699_vm12, %v3238_v36, %v1696_v61 }
0x1861   :  { %v1705_v40 = vsel %vm1702_vm13, %v1704_v12, %v1700_v33 }
0x1862   :  { %v1711_v31 = vmul.f32 %v1709_v28, %v1705_v40 }
0x18bf   :  { %v1714_v37 = vpop.permute.xlu1 %1713 }
0x18c0   :  { %v1716_v48 = vmul.f32 %v1714_v37, %v1705_v40 }
0x18c2   :  { %1718 = vrot.lane.b32.xlu2 %v1716_v48, %s3571_s4 }
0x18ca   :  { %1732 = vrot.lane.b32.xlu2 %v4274_v53, %s3572_s6 }
0x191c   :  { %v1719_v51 = vpop.permute.xlu2 %1718 }
0x191d   :  { %v4361_v57 = vadd.f32 %v1719_v51, %v1711_v31 }
0x191f   :  { %3239 = vtanh.f32 %v4361_v57 }
0x1924   :  { %v1733_v44 = vpop.permute.xlu2 %1732 }
0x1925   :  { %v3240_v58 = vpop.eup %3239 }
0x1926   :  { %1724 = vrot.lane.b32.xlu0 %v3240_v58, %s3571_s4 }
0x1998   :  { %v1725_v29 = vpop.permute.xlu0 %1724 }
0x1999   :  { %v1727_v45 = vmul.f32 %v1725_v29, %v1705_v40 }
0x199b   :  { %1729 = vrot.lane.b32.xlu1 %v1727_v45, %s3564_s2  ;;  %v1841_v12 = vpack.c.bf16 %v1727_v45, %v1727_v45 }
0x1a0d   :  { %v1730_v19 = vpop.permute.xlu1 %1729 }
0x1a0e   :  { %v1735_v63 = vsel %vm286_vm7, %v1730_v19, %v1733_v44 }
0x1a0f   :  { %v1736_v53 = vpack.c.bf16 %v1735_v63, %v1735_v63 }
0x1a11   :  { %3015 = vmatmul.msk.bf16.vlgmr.msrb.gmra.mxu0 %vm373_vm8, %v1736_v53 }
0x1a12   :  { %2010 = vmatpush.bf16.msrb.mxu0 %v4318_v8 }
0x1a16   :  { %2011 = vmatpush.bf16.msrb.mxu0 %v4321_v46 }
0x1a8e   :  { %v1749_v35 = vpop.f32.mrf.mxu0 }
0x1a8f   :  { %v1750_v10 = vadd.f32 %v4258_v50, %v1749_v35 }
0x1a91   :  { %3241 = vtanh.f32 %v1750_v10  ;;  %v3016_v0 = vmul.f32 -1.442695, %v1750_v10 }
0x1a93   :  { %3243 = vpow2.f32 %v3016_v0 }
0x1a96   :  { %v1751_v52 = vpop.f32.mrf.mxu0 }
0x1a97   :  { %v3242_v42 = vpop.eup %3241 }
0x1a98   :  { %1775 = vrot.lane.b32.xlu0 %v3242_v42, %s3571_s4 }
0x1a99   :  { %v3244_v17 = vpop.eup %3243 }
0x1a9a   :  { %v1756_v18 = vadd.f32 1.0, %v3244_v17 }
0x1a9c   :  { %3245 = vrcp.f32 %v1756_v18  ;;  %v1768_v1 = vand.u32 2147483648, %v1756_v18  ;;  %vm1762_vm9 = vweird.f32 %v1756_v18  ;;  %v1766_v27 = vand.u32 2147483647, %v1756_v18 }
0x1a9e   :  { %v1769_v61 = vor.u32 1.1754944e-38, %v1768_v1  ;;  %vm1767_vm12 = vcmp.eq.f32.partialorder %v1766_v27, 8.507059e+37 }
0x1aa2   :  { %v3246_v20 = vpop.eup %3245 }
0x1aa3   :  { %v1758_v2 = vmul.f32 %v3246_v20, %v1756_v18  ;;  %vm1763_vm14 = vweird.f32 %v3246_v20 }
0x1aa4   :  { %vm1764_vm10 = vmor %vm1762_vm9, %vm1763_vm14 }
0x1aa5   :  { %v1759_v7 = vsub.f32 1.0, %v1758_v2 }
0x1aa7   :  { %v1760_v25 = vmul.f32 %v3246_v20, %v1759_v7 }
0x1aa9   :  { %v1761_v36 = vadd.f32 %v3246_v20, %v1760_v25 }
0x1aab   :  { %v1765_v30 = vsel %vm1764_vm10, %v3246_v20, %v1761_v36 }
0x1aac   :  { %v1770_v15 = vsel %vm1767_vm12, %v1769_v61, %v1765_v30 }
0x1aad   :  { %v1773_v37 = vmul.f32 %v1770_v15, %v4267_v6 }
0x1b0a   :  { %v1776_v14 = vpop.permute.xlu0 %1775 }
0x1b0b   :  { %v1778_v33 = vmul.f32 %v1776_v14, %v1770_v15 }
0x1b0d   :  { %1780 = vrot.lane.b32.xlu1 %v1778_v33, %s3571_s4 }
0x1b15   :  { %1843 = vrot.lane.b32.xlu1 %v1841_v12, %s3564_s2 }
0x1b7f   :  { %v1781_v40 = vpop.permute.xlu1 %1780 }
0x1b80   :  { %v4375_v48 = vadd.f32 %v1781_v40, %v1773_v37 }
0x1b82   :  { %3247 = vtanh.f32 %v4375_v48 }
0x1b87   :  { %v1844_v28 = vpop.permute.xlu1 %1843 }
0x1b88   :  { %v3248_v31 = vpop.eup %3247  ;;  %3019 = vmatmul.msk.bf16.vlgmr.msrb.gmra.mxu2 %vm286_vm7, %v1844_v28  ;;  %v1886_v28 = vrot.slane %v4361_v57, 4 }
0x1b89   :  { %1786 = vrot.lane.b32.xlu2 %v3248_v31, %s3571_s4  ;;  %2340 = vmatpush.msrb.mxu2 %v4285_v60 }
0x1b8b   :  { %2341 = vmatpush.msrb.mxu2 %v4290_v26 }
0x1b8d   :  { %2342 = vmatpush.msrb.mxu2 %v4297_v55 }
0x1b8f   :  { %2343 = vmatpush.msrb.mxu2 %v4306_v43 }
0x1be3   :  { %v1787_v6 = vpop.permute.xlu2 %1786 }
0x1be4   :  { %v1789_v51 = vmul.f32 %v1787_v6, %v1770_v15 }
0x1be6   :  { %1791 = vrot.lane.b32.xlu0 %v1789_v51, %s3564_s2  ;;  %v1817_v58 = vpack.c.bf16 %v1789_v51, %v1789_v51  ;;  %v1909_v40 = vrot.slane %v1789_v51, 4 }
0x1be8   :  { %1819 = vrot.lane.b32.xlu2 %v1817_v58, %s3564_s2 }
0x1c0b   :  { %v1857_v29 = vpop.f32.mrf.mxu2 }
0x1c0c   :  { %v1862_v42 = vrot.slane %v1857_v29, 4 }
0x1c13   :  { %v1859_v45 = vpop.f32.mrf.mxu2 }
0x1c42   :  { %v1820_v19 = vpop.permute.xlu2 %1819 }
0x1c58   :  { %v1792_v44 = vpop.permute.xlu0 %1791 }
0x1c59   :  { %3017 = vmatmul.msk.f32.vlgmr.msrb.gmra.mxu1 %vm286_vm7, %v1792_v44 }
0x1c5a   :  { %2033 = vmatpush.bf16.msrb.mxu1 %v4179_v5 }
0x1c5e   :  { %2034 = vmatpush.bf16.msrb.mxu1 %v4183_v32 }
0x1c61   :  { %3018 = vmatmul.msk.bf16.vlgmr.msra.gmra.mxu1 %vm286_vm7, %v1820_v19 }
0x1c62   :  { %2277 = vmatpush.bf16.msra.mxu1 %v4233_v62 }
0x1c66   :  { %2278 = vmatpush.bf16.msra.mxu1 %v4236_v47 }
0x1c6a   :  { %2279 = vmatpush.bf16.msra.mxu1 %v4241_v24 }
0x1c6e   :  { %2280 = vmatpush.bf16.msra.mxu1 %v4248_v9 }
0x1cd6   :  { %v1812_v63 = vpop.f32.mrf.mxu1 }
0x1cd7   :  { %v1813_v53 = vadd.f32 %v4337_v39, %v1812_v63 }
0x1cd9   :  { %1816 = vst.msk [vmem:[#allocation13 + $0x4] sm:$0xf] %vm1630_vm0, %v1813_v53 }
0x1cde   :  { %v1833_v35 = vpop.f32.mrf.mxu1 }
0x1cdf   :  { %v1834_v10 = vadd.f32 %v4344_v13, %v1833_v35 }
0x1ce1   :  { %v1838_v52 = vrot.slane %v1834_v10, 4 }
0x1ce3   :  { %v1840_v0 = vsel %vm1664_vm1, %v3926_v21, %v1838_v52 }
0x1ce4   :  { %v1864_v17 = vadd.f32 %v1862_v42, %v1840_v0 }
0x1ce6   :  { %3249 = vtanh.f32 %v1864_v17  ;;  %v1835_v18 = vpop.f32.mrf.mxu1  ;;  %v3020_v2 = vmul.f32 -1.442695, %v1864_v17 }
0x1ce8   :  { %3251 = vpow2.f32 %v3020_v2 }
0x1cec   :  { %v3250_v20 = vpop.eup %3249 }
0x1ced   :  { %1890 = vrot.lane.b32.xlu0 %v3250_v20, %s3571_s4 }
0x1cee   :  { %v3252_v7 = vpop.eup %3251 }
0x1cef   :  { %v1868_v25 = vadd.f32 1.0, %v3252_v7 }
0x1cf1   :  { %3253 = vrcp.f32 %v1868_v25  ;;  %v1880_v14 = vand.u32 2147483648, %v1868_v25  ;;  %vm1874_vm14 = vweird.f32 %v1868_v25  ;;  %v1878_v21 = vand.u32 2147483647, %v1868_v25 }
0x1cf3   :  { %v1881_v15 = vor.u32 1.1754944e-38, %v1880_v14  ;;  %vm1879_vm9 = vcmp.eq.f32.partialorder %v1878_v21, 8.507059e+37 }
0x1cf7   :  { %v3254_v36 = vpop.eup %3253 }
0x1cf8   :  { %v1870_v1 = vmul.f32 %v3254_v36, %v1868_v25  ;;  %vm1875_vm13 = vweird.f32 %v3254_v36 }
0x1cf9   :  { %vm1876_vm1 = vmor %vm1874_vm14, %vm1875_vm13 }
0x1cfa   :  { %v1871_v27 = vsub.f32 1.0, %v1870_v1 }
0x1cfc   :  { %v1872_v30 = vmul.f32 %v3254_v36, %v1871_v27 }
0x1cfe   :  { %v1873_v61 = vadd.f32 %v3254_v36, %v1872_v30 }
0x1d00   :  { %v1877_v11 = vsel %vm1876_vm1, %v3254_v36, %v1873_v61 }
0x1d01   :  { %v1882_v12 = vsel %vm1879_vm9, %v1881_v15, %v1877_v11 }
0x1d02   :  { %v1888_v31 = vmul.f32 %v1886_v28, %v1882_v12 }
0x1d5f   :  { %v1891_v33 = vpop.permute.xlu0 %1890 }
0x1d60   :  { %v1893_v37 = vmul.f32 %v1891_v33, %v1882_v12 }
0x1d62   :  { %1895 = vrot.lane.b32.xlu1 %v1893_v37, %s3571_s4 }
0x1d6a   :  { %1910 = vrot.lane.b32.xlu1 %v1909_v40, %s3572_s6 }
0x1dd4   :  { %v1896_v6 = vpop.permute.xlu1 %1895 }
0x1dd5   :  { %v4404_v58 = vadd.f32 %v1896_v6, %v1888_v31 }
0x1dd7   :  { %3255 = vtanh.f32 %v4404_v58 }
0x1ddc   :  { %v1911_v19 = vpop.permute.xlu1 %1910 }
0x1ddd   :  { %v3256_v29 = vpop.eup %3255 }
0x1dde   :  { %1901 = vrot.lane.b32.xlu2 %v3256_v29, %s3571_s4 }
0x1e38   :  { %v1902_v45 = vpop.permute.xlu2 %1901 }
0x1e39   :  { %v1904_v44 = vmul.f32 %v1902_v45, %v1882_v12 }
0x1e3b   :  { %1906 = vrot.lane.b32.xlu0 %v1904_v44, %s3564_s2  ;;  %v2019_v40 = vpack.c.bf16 %v1904_v44, %v1904_v44 }
0x1e3d   :  { %v2021_v28 = vrot.slane %v2019_v40, 2 }
0x1ead   :  { %v1907_v63 = vpop.permute.xlu0 %1906 }
0x1eae   :  { %v1913_v51 = vsel %vm286_vm7, %v1907_v63, %v1911_v19 }
0x1eaf   :  { %v1914_v53 = vpack.c.bf16 %v1913_v51, %v1913_v51 }
0x1eb1   :  { %v1916_v35 = vrot.slane %v1914_v53, 2 }
0x1eb3   :  { %3021 = vmatmul.msk.bf16.vlgmr.msra.gmra.mxu3 %vm373_vm8, %v1916_v35 }
0x1eb4   :  { %2183 = vmatpush.bf16.msra.mxu3 %v4318_v8 }
0x1eb8   :  { %2184 = vmatpush.bf16.msra.mxu3 %v4321_v46 }
0x1f36   :  { %v1929_v57 = vpop.f32.mrf.mxu3 }
0x1f37   :  { %v1930_v10 = vadd.f32 %v4258_v50, %v1929_v57 }
0x1f39   :  { %3257 = vtanh.f32 %v1930_v10  ;;  %v3022_v0 = vmul.f32 -1.442695, %v1930_v10 }
0x1f3b   :  { %3259 = vpow2.f32 %v3022_v0 }
0x1f3e   :  { %v1931_v52 = vpop.f32.mrf.mxu3 }
0x1f3f   :  { %v3258_v42 = vpop.eup %3257 }
0x1f40   :  { %1955 = vrot.lane.b32.xlu2 %v3258_v42, %s3571_s4 }
0x1f41   :  { %v3260_v17 = vpop.eup %3259 }
0x1f42   :  { %v1936_v18 = vadd.f32 1.0, %v3260_v17 }
0x1f44   :  { %3261 = vrcp.f32 %v1936_v18  ;;  %v1948_v1 = vand.u32 2147483648, %v1936_v18  ;;  %vm1942_vm12 = vweird.f32 %v1936_v18  ;;  %v1946_v27 = vand.u32 2147483647, %v1936_v18 }
0x1f46   :  { %v1949_v61 = vor.u32 1.1754944e-38, %v1948_v1  ;;  %vm1947_vm14 = vcmp.eq.f32.partialorder %v1946_v27, 8.507059e+37 }
0x1f4a   :  { %v3262_v20 = vpop.eup %3261 }
0x1f4b   :  { %v1938_v2 = vmul.f32 %v3262_v20, %v1936_v18  ;;  %vm1943_vm10 = vweird.f32 %v3262_v20 }
0x1f4c   :  { %vm1944_vm13 = vmor %vm1942_vm12, %vm1943_vm10 }
0x1f4d   :  { %v1939_v7 = vsub.f32 1.0, %v1938_v2 }
0x1f4f   :  { %v1940_v25 = vmul.f32 %v3262_v20, %v1939_v7 }
0x1f51   :  { %v1941_v36 = vadd.f32 %v3262_v20, %v1940_v25 }
0x1f53   :  { %v1945_v30 = vsel %vm1944_vm13, %v3262_v20, %v1941_v36 }
0x1f54   :  { %v1950_v21 = vsel %vm1947_vm14, %v1949_v61, %v1945_v30 }
0x1f55   :  { %v1953_v15 = vmul.f32 %v1950_v21, %v4375_v48 }
0x1f9a   :  { %v1956_v14 = vpop.permute.xlu2 %1955 }
0x1f9b   :  { %v1958_v11 = vmul.f32 %v1956_v14, %v1950_v21 }
0x1f9d   :  { %1960 = vrot.lane.b32.xlu0 %v1958_v11, %s3571_s4 }
0x200f   :  { %v1961_v33 = vpop.permute.xlu0 %1960 }
0x2010   :  { %v4417_v12 = vadd.f32 %v1961_v33, %v1953_v15  ;;  %v2062_v15 = vrot.slane %v4404_v58, 4 }
0x2012   :  { %3263 = vtanh.f32 %v4417_v12 }
0x2018   :  { %v3264_v37 = vpop.eup %3263 }
0x2019   :  { %1966 = vrot.lane.b32.xlu1 %v3264_v37, %s3571_s4 }
0x2021   :  { %2022 = vrot.lane.b32.xlu1 %v2021_v28, %s3564_s2 }
0x208b   :  { %v1967_v31 = vpop.permute.xlu1 %1966 }
0x208c   :  { %v1969_v6 = vmul.f32 %v1967_v31, %v1950_v21 }
0x208e   :  { %1971 = vrot.lane.b32.xlu2 %v1969_v6, %s3564_s2  ;;  %v1997_v29 = vpack.c.bf16 %v1969_v6, %v1969_v6 }
0x2090   :  { %1999 = vrot.lane.b32.xlu0 %v1997_v29, %s3564_s2 }
0x2093   :  { %v2023_v48 = vpop.permute.xlu1 %2022 }
0x2094   :  { %3025 = vmatmul.msk.bf16.vlgmr.msrb.gmra.mxu1 %vm286_vm7, %v2023_v48 }
0x2095   :  { %2513 = vmatpush.msrb.mxu1 %v4285_v60 }
0x2097   :  { %2514 = vmatpush.msrb.mxu1 %v4290_v26 }
0x2099   :  { %2515 = vmatpush.msrb.mxu1 %v4297_v55 }
0x209b   :  { %2516 = vmatpush.msrb.mxu1 %v4306_v43 }
0x20e8   :  { %v1972_v45 = vpop.permute.xlu2 %1971 }
0x20e9   :  { %3023 = vmatmul.msk.f32.vlgmr.msra.gmra.mxu0 %vm286_vm7, %v1972_v45 }
0x20ea   :  { %2207 = vmatpush.bf16.msra.mxu0 %v4179_v5  ;;  %v4442_v5 = vld [vmem:[%s4714_s27 + $0x8] sm:$0xff] }
0x20eb   :  { %vm2017_vm1 = vcmp.gt.f32.partialorder %v4442_v5, 0.5 }
0x20ee   :  { %2208 = vmatpush.bf16.msra.mxu0 %v4183_v32 }
0x2102   :  { %v2000_v44 = vpop.permute.xlu0 %1999 }
0x2103   :  { %3024 = vmatmul.msk.bf16.vlgmr.msrb.gmra.mxu0 %vm286_vm7, %v2000_v44 }
0x2104   :  { %2450 = vmatpush.bf16.msrb.mxu0 %v4233_v62 }
0x2108   :  { %2451 = vmatpush.bf16.msrb.mxu0 %v4236_v47 }
0x210c   :  { %2452 = vmatpush.bf16.msrb.mxu0 %v4241_v24 }
0x2110   :  { %2453 = vmatpush.bf16.msrb.mxu0 %v4248_v9 }
0x2111   :  { %v2036_v19 = vpop.f32.mrf.mxu1 }
0x2119   :  { %v2038_v63 = vpop.f32.mrf.mxu1 }
0x2166   :  { %v1992_v51 = vpop.f32.mrf.mxu0 }
0x2167   :  { %v1993_v53 = vadd.f32 %v4337_v39, %v1992_v51 }
0x2169   :  { %1996 = vst.msk [vmem:[#allocation13 + $0x8] sm:$0xf] %vm1630_vm0, %v1993_v53 }
0x2180   :  { %v2013_v32 = vpop.f32.mrf.mxu0 }
0x2181   :  { %v2014_v35 = vadd.f32 %v4344_v13, %v2013_v32 }
0x2183   :  { %v2018_v57 = vsel %vm2017_vm1, %v3930_v22, %v2014_v35 }
0x2184   :  { %v2040_v10 = vadd.f32 %v2036_v19, %v2018_v57 }
0x2186   :  { %3265 = vtanh.f32 %v2040_v10  ;;  %v3026_v0 = vmul.f32 -1.442695, %v2040_v10 }
0x2188   :  { %v2015_v52 = vpop.f32.mrf.mxu0  ;;  %3267 = vpow2.f32 %v3026_v0 }
0x218c   :  { %v3266_v42 = vpop.eup %3265 }
0x218d   :  { %2066 = vrot.lane.b32.xlu2 %v3266_v42, %s3571_s4 }
0x218e   :  { %v3268_v17 = vpop.eup %3267 }
0x218f   :  { %v2044_v18 = vadd.f32 1.0, %v3268_v17 }
0x2191   :  { %3269 = vrcp.f32 %v2044_v18  ;;  %v2056_v1 = vand.u32 2147483648, %v2044_v18  ;;  %vm2050_vm10 = vweird.f32 %v2044_v18  ;;  %v2054_v27 = vand.u32 2147483647, %v2044_v18 }
0x2193   :  { %v2057_v61 = vor.u32 1.1754944e-38, %v2056_v1  ;;  %vm2055_vm13 = vcmp.eq.f32.partialorder %v2054_v27, 8.507059e+37 }
0x2197   :  { %v3270_v20 = vpop.eup %3269 }
0x2198   :  { %v2046_v2 = vmul.f32 %v3270_v20, %v2044_v18  ;;  %vm2051_vm9 = vweird.f32 %v3270_v20 }
0x2199   :  { %vm2052_vm12 = vmor %vm2050_vm10, %vm2051_vm9 }
0x219a   :  { %v2047_v7 = vsub.f32 1.0, %v2046_v2 }
0x219c   :  { %v2048_v25 = vmul.f32 %v3270_v20, %v2047_v7 }
0x219e   :  { %v2049_v36 = vadd.f32 %v3270_v20, %v2048_v25 }
0x21a0   :  { %v2053_v30 = vsel %vm2052_vm12, %v3270_v20, %v2049_v36 }
0x21a1   :  { %v2058_v21 = vsel %vm2055_vm13, %v2057_v61, %v2053_v30 }
0x21a2   :  { %v2064_v33 = vmul.f32 %v2062_v15, %v2058_v21 }
0x21e7   :  { %v2067_v14 = vpop.permute.xlu2 %2066 }
0x21e8   :  { %v2069_v11 = vmul.f32 %v2067_v14, %v2058_v21 }
0x21ea   :  { %2071 = vrot.lane.b32.xlu0 %v2069_v11, %s3571_s4 }
0x21f2   :  { %2085 = vrot.lane.b32.xlu0 %v1969_v6, %s3572_s6 }
0x225c   :  { %v2072_v37 = vpop.permute.xlu0 %2071 }
0x225d   :  { %v4453_v40 = vadd.f32 %v2072_v37, %v2064_v33  ;;  %v4479_v37 = vld [vmem:[#allocation8 + $0x8] sm:$0xff] }
0x225f   :  { %3271 = vtanh.f32 %v4453_v40 }
0x2264   :  { %v2086_v48 = vpop.permute.xlu0 %2085 }
0x2265   :  { %v3272_v28 = vpop.eup %3271 }
0x2266   :  { %2077 = vrot.lane.b32.xlu1 %v3272_v28, %s3571_s4  ;;  %v4482_v28 = vld [vmem:[#allocation8] sm:$0xff] }
0x22d8   :  { %v2078_v31 = vpop.permute.xlu1 %2077 }
0x22d9   :  { %v2080_v29 = vmul.f32 %v2078_v31, %v2058_v21 }
0x22db   :  { %2082 = vrot.lane.b32.xlu2 %v2080_v29, %s3564_s2  ;;  %v2194_v14 = vpack.c.bf16 %v2080_v29, %v2080_v29 }
0x2335   :  { %v2083_v45 = vpop.permute.xlu2 %2082 }
0x2336   :  { %v2088_v44 = vsel %vm286_vm7, %v2083_v45, %v2086_v48 }
0x2337   :  { %v2089_v6 = vpack.c.bf16 %v2088_v44, %v2088_v44 }
0x2339   :  { %3027 = vmatmul.msk.bf16.vlgmr.msra.gmra.mxu2 %vm373_vm8, %v2089_v6 }
0x233a   :  { %2363 = vmatpush.bf16.msra.mxu2 %v4318_v8 }
0x233e   :  { %2364 = vmatpush.bf16.msra.mxu2 %v4321_v46 }
0x23bc   :  { %v2102_v58 = vpop.f32.mrf.mxu2 }
0x23bd   :  { %v2103_v19 = vadd.f32 %v4258_v50, %v2102_v58 }
0x23bf   :  { %3273 = vtanh.f32 %v2103_v19  ;;  %v3028_v53 = vmul.f32 -1.442695, %v2103_v19 }
0x23c1   :  { %3275 = vpow2.f32 %v3028_v53 }
0x23c4   :  { %v2104_v63 = vpop.f32.mrf.mxu2 }
0x23c5   :  { %v3274_v51 = vpop.eup %3273 }
0x23c6   :  { %2128 = vrot.lane.b32.xlu1 %v3274_v51, %s3571_s4 }
0x23c7   :  { %v3276_v32 = vpop.eup %3275 }
0x23c8   :  { %v2109_v35 = vadd.f32 1.0, %v3276_v32 }
0x23ca   :  { %3277 = vrcp.f32 %v2109_v35  ;;  %v2121_v17 = vand.u32 2147483648, %v2109_v35  ;;  %vm2115_vm9 = vweird.f32 %v2109_v35  ;;  %v2119_v18 = vand.u32 2147483647, %v2109_v35 }
0x23cc   :  { %v2122_v2 = vor.u32 1.1754944e-38, %v2121_v17  ;;  %vm2120_vm12 = vcmp.eq.f32.partialorder %v2119_v18, 8.507059e+37 }
0x23d0   :  { %v3278_v57 = vpop.eup %3277 }
0x23d1   :  { %v2111_v10 = vmul.f32 %v3278_v57, %v2109_v35  ;;  %vm2116_vm14 = vweird.f32 %v3278_v57 }
0x23d2   :  { %vm2117_vm10 = vmor %vm2115_vm9, %vm2116_vm14 }
0x23d3   :  { %v2112_v52 = vsub.f32 1.0, %v2111_v10 }
0x23d5   :  { %v2113_v42 = vmul.f32 %v3278_v57, %v2112_v52 }
0x23d7   :  { %v2114_v0 = vadd.f32 %v3278_v57, %v2113_v42 }
0x23d9   :  { %v2118_v20 = vsel %vm2117_vm10, %v3278_v57, %v2114_v0 }
0x23da   :  { %v2123_v25 = vsel %vm2120_vm12, %v2122_v2, %v2118_v20 }
0x23db   :  { %v2126_v1 = vmul.f32 %v2123_v25, %v4417_v12 }
0x2438   :  { %v2129_v7 = vpop.permute.xlu1 %2128 }
0x2439   :  { %v2131_v36 = vmul.f32 %v2129_v7, %v2123_v25 }
0x243b   :  { %2133 = vrot.lane.b32.xlu2 %v2131_v36, %s3571_s4 }
0x2495   :  { %v2134_v27 = vpop.permute.xlu2 %2133 }
0x2496   :  { %v4466_v30 = vadd.f32 %v2134_v27, %v2126_v1 }
0x2498   :  { %3279 = vtanh.f32 %v4466_v30 }
0x249e   :  { %v3280_v61 = vpop.eup %3279 }
0x249f   :  { %2139 = vrot.lane.b32.xlu0 %v3280_v61, %s3571_s4 }
0x24a7   :  { %2196 = vrot.lane.b32.xlu0 %v2194_v14, %s3564_s2 }
0x2511   :  { %v2140_v21 = vpop.permute.xlu0 %2139 }
0x2512   :  { %v2142_v11 = vmul.f32 %v2140_v21, %v2123_v25  ;;  %v2239_v25 = vrot.slane %v4453_v40, 4 }
0x2514   :  { %2144 = vrot.lane.b32.xlu1 %v2142_v11, %s3564_s2  ;;  %v2170_v15 = vpack.c.bf16 %v2142_v11, %v2142_v11  ;;  %v2262_v7 = vrot.slane %v2142_v11, 4 }
0x2516   :  { %2172 = vrot.lane.b32.xlu2 %v2170_v15, %s3564_s2 }
0x2519   :  { %v2197_v33 = vpop.permute.xlu0 %2196 }
0x251a   :  { %3031 = vmatmul.msk.bf16.vlgmr.msra.gmra.mxu0 %vm286_vm7, %v2197_v33 }
0x251b   :  { %2693 = vmatpush.msra.mxu0 %v4285_v60 }
0x251d   :  { %2694 = vmatpush.msra.mxu0 %v4290_v26 }
0x251f   :  { %2695 = vmatpush.msra.mxu0 %v4297_v55 }
0x2521   :  { %2696 = vmatpush.msra.mxu0 %v4306_v43 }
0x2570   :  { %v2173_v31 = vpop.permute.xlu2 %2172 }
0x2586   :  { %v2145_v12 = vpop.permute.xlu1 %2144 }
0x2587   :  { %3029 = vmatmul.msk.f32.vlgmr.msrb.gmra.mxu3 %vm286_vm7, %v2145_v12 }
0x2588   :  { %2386 = vmatpush.bf16.msrb.mxu3 %v4479_v37 }
0x258c   :  { %2387 = vmatpush.bf16.msrb.mxu3 %v4482_v28 }
0x258f   :  { %3030 = vmatmul.msk.bf16.vlgmr.msra.gmra.mxu3 %vm286_vm7, %v2173_v31 }
0x2590   :  { %2630 = vmatpush.bf16.msra.mxu3 %v4233_v62 }
0x2594   :  { %2631 = vmatpush.bf16.msra.mxu3 %v4236_v47 }
0x2597   :  { %v2210_v29 = vpop.f32.mrf.mxu0 }
0x2598   :  { %2632 = vmatpush.bf16.msra.mxu3 %v4241_v24  ;;  %v2215_v63 = vrot.slane %v2210_v29, 4 }
0x259c   :  { %2633 = vmatpush.bf16.msra.mxu3 %v4248_v9 }
0x259f   :  { %v2212_v48 = vpop.f32.mrf.mxu0 }
0x260a   :  { %v2165_v45 = vpop.f32.mrf.mxu3 }
0x260b   :  { %v2166_v44 = vadd.f32 %v4337_v39, %v2165_v45 }
0x260d   :  { %2169 = vst.msk [vmem:[#allocation13 + $0xc] sm:$0xf] %vm1630_vm0, %v2166_v44 }
0x2612   :  { %v2186_v6 = vpop.f32.mrf.mxu3 }
0x2613   :  { %v2187_v58 = vadd.f32 %v4344_v13, %v2186_v6 }
0x2615   :  { %v2191_v19 = vrot.slane %v2187_v58, 4 }
0x2617   :  { %v2193_v62 = vsel %vm2017_vm1, %v3930_v22, %v2191_v19 }
0x2618   :  { %v2217_v47 = vadd.f32 %v2215_v63, %v2193_v62 }
0x261a   :  { %3281 = vtanh.f32 %v2217_v47  ;;  %v2188_v24 = vpop.f32.mrf.mxu3  ;;  %v3032_v9 = vmul.f32 -1.442695, %v2217_v47 }
0x261c   :  { %3283 = vpow2.f32 %v3032_v9 }
0x2620   :  { %v3282_v51 = vpop.eup %3281 }
0x2621   :  { %2243 = vrot.lane.b32.xlu1 %v3282_v51, %s3571_s4 }
0x2622   :  { %v3284_v53 = vpop.eup %3283 }
0x2623   :  { %v2221_v32 = vadd.f32 1.0, %v3284_v53 }
0x2625   :  { %3285 = vrcp.f32 %v2221_v32  ;;  %v2233_v0 = vand.u32 2147483648, %v2221_v32  ;;  %vm2227_vm14 = vweird.f32 %v2221_v32  ;;  %v2231_v22 = vand.u32 2147483647, %v2221_v32 }
0x2627   :  { %v2234_v17 = vor.u32 1.1754944e-38, %v2233_v0  ;;  %vm2232_vm9 = vcmp.eq.f32.partialorder %v2231_v22, 8.507059e+37 }
0x262b   :  { %v3286_v35 = vpop.eup %3285 }
0x262c   :  { %v2223_v57 = vmul.f32 %v3286_v35, %v2221_v32  ;;  %vm2228_vm13 = vweird.f32 %v3286_v35 }
0x262d   :  { %vm2229_vm1 = vmor %vm2227_vm14, %vm2228_vm13 }
0x262e   :  { %v2224_v10 = vsub.f32 1.0, %v2223_v57 }
0x2630   :  { %v2225_v52 = vmul.f32 %v3286_v35, %v2224_v10 }
0x2632   :  { %v2226_v42 = vadd.f32 %v3286_v35, %v2225_v52 }
0x2634   :  { %v2230_v5 = vsel %vm2229_vm1, %v3286_v35, %v2226_v42 }
0x2635   :  { %v2235_v20 = vsel %vm2232_vm9, %v2234_v17, %v2230_v5 }
0x2636   :  { %v2241_v36 = vmul.f32 %v2239_v25, %v2235_v20 }
0x2693   :  { %v2244_v18 = vpop.permute.xlu1 %2243 }
0x2694   :  { %v2246_v2 = vmul.f32 %v2244_v18, %v2235_v20 }
0x2696   :  { %2248 = vrot.lane.b32.xlu2 %v2246_v2, %s3571_s4  ;;  %v3349_v2 = vld [vmem:[#allocation10 + $0x18] sm:$0xff] }
0x269e   :  { %2263 = vrot.lane.b32.xlu2 %v2262_v7, %s3572_s6  ;;  %v3350_v7 = vld [vmem:[#allocation10 + $0x10] sm:$0xff] }
0x26f0   :  { %v2249_v1 = vpop.permute.xlu2 %2248 }
0x26f1   :  { %v4500_v27 = vadd.f32 %v2249_v1, %v2241_v36  ;;  %v4534_v1 = vld [vmem:[%s4714_s27 + $0x10] sm:$0xff] }
0x26f2   :  { %vm2370_vm1 = vcmp.gt.f32.partialorder %v4534_v1, 0.5 }
0x26f3   :  { %3287 = vtanh.f32 %v4500_v27 }
0x26f8   :  { %v2264_v15 = vpop.permute.xlu2 %2263 }
0x26f9   :  { %v3288_v61 = vpop.eup %3287 }
0x26fa   :  { %2254 = vrot.lane.b32.xlu0 %v3288_v61, %s3571_s4 }
0x276c   :  { %v2255_v14 = vpop.permute.xlu0 %2254 }
0x276d   :  { %v2257_v21 = vmul.f32 %v2255_v14, %v2235_v20 }
0x276f   :  { %2259 = vrot.lane.b32.xlu1 %v2257_v21, %s3564_s2  ;;  %v2372_v42 = vpack.c.bf16 %v2257_v21, %v2257_v21 }
0x2771   :  { %v2374_v0 = vrot.slane %v2372_v42, 2  ;;  %v3354_v42 = vld [vmem:[#allocation11] sm:$0xff] }
0x27e1   :  { %v2260_v33 = vpop.permute.xlu1 %2259 }
0x27e2   :  { %v2266_v11 = vsel %vm286_vm7, %v2260_v33, %v2264_v15 }
0x27e3   :  { %v2267_v12 = vpack.c.bf16 %v2266_v11, %v2266_v11 }
0x27e5   :  { %v2269_v31 = vrot.slane %v2267_v12, 2 }
0x27e7   :  { %3033 = vmatmul.msk.bf16.vlgmr.msra.gmra.mxu1 %vm373_vm8, %v2269_v31 }
0x27e8   :  { %2536 = vmatpush.bf16.msra.mxu1 %v4318_v8 }
0x27ec   :  { %2537 = vmatpush.bf16.msra.mxu1 %v4321_v46 }
0x2864   :  { %v2282_v40 = vpop.f32.mrf.mxu1 }
0x2865   :  { %v2283_v29 = vadd.f32 %v4258_v50, %v2282_v40 }
0x2867   :  { %3289 = vtanh.f32 %v2283_v29  ;;  %v3034_v44 = vmul.f32 -1.442695, %v2283_v29 }
0x2869   :  { %3291 = vpow2.f32 %v3034_v44 }
0x286c   :  { %v2284_v48 = vpop.f32.mrf.mxu1 }
0x286d   :  { %v3290_v45 = vpop.eup %3289 }
0x286e   :  { %2308 = vrot.lane.b32.xlu0 %v3290_v45, %s3571_s4 }
0x286f   :  { %v3292_v6 = vpop.eup %3291 }
0x2870   :  { %v2289_v58 = vadd.f32 1.0, %v3292_v6 }
0x2872   :  { %3293 = vrcp.f32 %v2289_v58  ;;  %v2301_v46 = vand.u32 2147483648, %v2289_v58  ;;  %vm2295_vm12 = vweird.f32 %v2289_v58  ;;  %v2299_v24 = vand.u32 2147483647, %v2289_v58 }
0x2874   :  { %v2302_v51 = vor.u32 1.1754944e-38, %v2301_v46  ;;  %vm2300_vm14 = vcmp.eq.f32.partialorder %v2299_v24, 8.507059e+37 }
0x2878   :  { %v3294_v19 = vpop.eup %3293 }
0x2879   :  { %v2291_v63 = vmul.f32 %v3294_v19, %v2289_v58  ;;  %vm2296_vm10 = vweird.f32 %v3294_v19 }
0x287a   :  { %vm2297_vm13 = vmor %vm2295_vm12, %vm2296_vm10 }
0x287b   :  { %v2292_v62 = vsub.f32 1.0, %v2291_v63 }
0x287d   :  { %v2293_v47 = vmul.f32 %v3294_v19, %v2292_v62 }
0x287f   :  { %v2294_v8 = vadd.f32 %v3294_v19, %v2293_v47 }
0x2881   :  { %v2298_v50 = vsel %vm2297_vm13, %v3294_v19, %v2294_v8  ;;  %v2415_v8 = vrot.slane %v4500_v27, 4  ;;  %v3353_v27 = vld [vmem:[#allocation11 + $0x8] sm:$0xff] }
0x2882   :  { %v2303_v53 = vsel %vm2300_vm14, %v2302_v51, %v2298_v50 }
0x2883   :  { %v2306_v35 = vmul.f32 %v2303_v53, %v4466_v30 }
0x28e0   :  { %v2309_v9 = vpop.permute.xlu0 %2308 }
0x28e1   :  { %v2311_v32 = vmul.f32 %v2309_v9, %v2303_v53 }
0x28e3   :  { %2313 = vrot.lane.b32.xlu1 %v2311_v32, %s3571_s4 }
0x2955   :  { %v2314_v57 = vpop.permute.xlu1 %2313 }
0x2956   :  { %v4513_v10 = vadd.f32 %v2314_v57, %v2306_v35 }
0x2958   :  { %3295 = vtanh.f32 %v4513_v10 }
0x295e   :  { %v3296_v52 = vpop.eup %3295 }
0x295f   :  { %2319 = vrot.lane.b32.xlu2 %v3296_v52, %s3571_s4 }
0x2967   :  { %2375 = vrot.lane.b32.xlu2 %v2374_v0, %s3564_s2 }
0x29b9   :  { %v2320_v22 = vpop.permute.xlu2 %2319 }
0x29ba   :  { %v2322_v5 = vmul.f32 %v2320_v22, %v2303_v53  ;;  %v4555_v22 = vld [vmem:[%s4700_s12] ss:$0 sm:$0xff] }
0x29bc   :  { %2324 = vrot.lane.b32.xlu0 %v2322_v5, %s3564_s2  ;;  %v2350_v17 = vpack.c.bf16 %v2322_v5, %v2322_v5 }
0x29be   :  { %2352 = vrot.lane.b32.xlu1 %v2350_v17, %s3564_s2 }
0x29c1   :  { %v2376_v30 = vpop.permute.xlu2 %2375 }
0x29c2   :  { %3037 = vmatmul.msk.bf16.vlgmr.msrb.gmra.mxu3 %vm286_vm7, %v2376_v30 }
0x29c3   :  { %2866 = vmatpush.msrb.mxu3 %v4285_v60  ;;  %v3351_v60 = vld [vmem:[#allocation10 + $0x8] sm:$0xff] }
0x29c5   :  { %2867 = vmatpush.msrb.mxu3 %v4290_v26  ;;  %v3352_v26 = vld [vmem:[#allocation10] sm:$0xff] }
0x29c7   :  { %2868 = vmatpush.msrb.mxu3 %v4297_v55 }
0x29c9   :  { %2869 = vmatpush.msrb.mxu3 %v4306_v43 }
0x2a2e   :  { %v2325_v18 = vpop.permute.xlu0 %2324 }
0x2a2f   :  { %3035 = vmatmul.msk.f32.vlgmr.msrb.gmra.mxu2 %vm286_vm7, %v2325_v18 }
0x2a30   :  { %2560 = vmatpush.bf16.msrb.mxu2 %v4479_v37  ;;  %v2353_v20 = vpop.permute.xlu1 %2352 }
0x2a34   :  { %2561 = vmatpush.bf16.msrb.mxu2 %v4482_v28 }
0x2a37   :  { %3036 = vmatmul.msk.bf16.vlgmr.msra.gmra.mxu2 %vm286_vm7, %v2353_v20 }
0x2a38   :  { %2803 = vmatpush.bf16.msra.mxu2 %v3349_v2 }
0x2a3c   :  { %2804 = vmatpush.bf16.msra.mxu2 %v3350_v7 }
0x2a40   :  { %2805 = vmatpush.bf16.msra.mxu2 %v3351_v60 }
0x2a44   :  { %2806 = vmatpush.bf16.msra.mxu2 %v3352_v26 }
0x2a45   :  { %v2389_v55 = vpop.f32.mrf.mxu3 }
0x2a4d   :  { %v2391_v43 = vpop.f32.mrf.mxu3 }
0x2ab2   :  { %v2345_v25 = vpop.f32.mrf.mxu2 }
0x2ab3   :  { %v2346_v36 = vadd.f32 %v4337_v39, %v2345_v25 }
0x2ab5   :  { %2349 = vst.msk [vmem:[#allocation13 + $0x10] sm:$0xf] %vm1630_vm0, %v2346_v36 }
0x2aba   :  { %v2366_v61 = vpop.f32.mrf.mxu2 }
0x2abb   :  { %v2367_v14 = vadd.f32 %v4344_v13, %v2366_v61 }
0x2abd   :  { %v2371_v21 = vsel %vm2370_vm1, %v3933_v23, %v2367_v14 }
0x2abe   :  { %v2393_v15 = vadd.f32 %v2389_v55, %v2371_v21 }
0x2ac0   :  { %3297 = vtanh.f32 %v2393_v15  ;;  %v3038_v11 = vmul.f32 -1.442695, %v2393_v15 }
0x2ac2   :  { %v2368_v33 = vpop.f32.mrf.mxu2  ;;  %3299 = vpow2.f32 %v3038_v11 }
0x2ac6   :  { %v3298_v39 = vpop.eup %3297 }
0x2ac7   :  { %2419 = vrot.lane.b32.xlu0 %v3298_v39, %s3571_s4 }
0x2ac8   :  { %v3300_v12 = vpop.eup %3299 }
0x2ac9   :  { %v2397_v31 = vadd.f32 1.0, %v3300_v12 }
0x2acb   :  { %3301 = vrcp.f32 %v2397_v31  ;;  %v2409_v44 = vand.u32 2147483648, %v2397_v31  ;;  %vm2403_vm10 = vweird.f32 %v2397_v31  ;;  %v2407_v6 = vand.u32 2147483647, %v2397_v31 }
0x2acd   :  { %v2410_v19 = vor.u32 1.1754944e-38, %v2409_v44  ;;  %vm2408_vm13 = vcmp.eq.f32.partialorder %v2407_v6, 8.507059e+37 }
0x2ad1   :  { %v3302_v40 = vpop.eup %3301 }
0x2ad2   :  { %v2399_v29 = vmul.f32 %v3302_v40, %v2397_v31  ;;  %vm2404_vm9 = vweird.f32 %v3302_v40 }
0x2ad3   :  { %vm2405_vm12 = vmor %vm2403_vm10, %vm2404_vm9 }
0x2ad4   :  { %v2400_v48 = vsub.f32 1.0, %v2399_v29 }
0x2ad6   :  { %v2401_v45 = vmul.f32 %v3302_v40, %v2400_v48 }
0x2ad8   :  { %v2402_v13 = vadd.f32 %v3302_v40, %v2401_v45 }
0x2ada   :  { %v2406_v58 = vsel %vm2405_vm12, %v3302_v40, %v2402_v13 }
0x2adb   :  { %v2411_v62 = vsel %vm2408_vm13, %v2410_v19, %v2406_v58 }
0x2adc   :  { %v2417_v46 = vmul.f32 %v2415_v8, %v2411_v62 }
0x2b39   :  { %v2420_v63 = vpop.permute.xlu0 %2419 }
0x2b3a   :  { %v2422_v47 = vmul.f32 %v2420_v63, %v2411_v62  ;;  %v4576_v63 = vld [vmem:[%s4704_s16] ss:$0 sm:$0xff] }
0x2b3c   :  { %2424 = vrot.lane.b32.xlu1 %v2422_v47, %s3571_s4 }
0x2b44   :  { %2438 = vrot.lane.b32.xlu1 %v2322_v5, %s3572_s6 }
0x2bae   :  { %v2425_v24 = vpop.permute.xlu1 %2424 }
0x2baf   :  { %v4545_v50 = vadd.f32 %v2425_v24, %v2417_v46 }
0x2bb1   :  { %3303 = vtanh.f32 %v4545_v50 }
0x2bb6   :  { %v2439_v32 = vpop.permute.xlu1 %2438 }
0x2bb7   :  { %v3304_v51 = vpop.eup %3303 }
0x2bb8   :  { %2430 = vrot.lane.b32.xlu2 %v3304_v51, %s3571_s4 }
0x2c12   :  { %v2431_v9 = vpop.permute.xlu2 %2430 }
0x2c13   :  { %v2433_v53 = vmul.f32 %v2431_v9, %v2411_v62 }
0x2c15   :  { %2435 = vrot.lane.b32.xlu0 %v2433_v53, %s3564_s2  ;;  %v2547_v39 = vpack.c.bf16 %v2433_v53, %v2433_v53 }
0x2c87   :  { %v2436_v35 = vpop.permute.xlu0 %2435 }
0x2c88   :  { %v2441_v57 = vsel %vm286_vm7, %v2436_v35, %v2439_v32 }
0x2c89   :  { %v2442_v52 = vpack.c.bf16 %v2441_v57, %v2441_v57 }
0x2c8b   :  { %3039 = vmatmul.msk.bf16.vlgmr.msrb.gmra.mxu0 %vm373_vm8, %v2442_v52 }
0x2c8c   :  { %2716 = vmatpush.bf16.msrb.mxu0 %v3353_v27 }
0x2c90   :  { %2717 = vmatpush.bf16.msrb.mxu0 %v3354_v42 }
0x2d08   :  { %v2455_v0 = vpop.f32.mrf.mxu0 }
0x2d09   :  { %v2456_v5 = vadd.f32 %v4555_v22, %v2455_v0 }
0x2d0b   :  { %3305 = vtanh.f32 %v2456_v5  ;;  %v3040_v18 = vmul.f32 -1.442695, %v2456_v5 }
0x2d0d   :  { %3307 = vpow2.f32 %v3040_v18 }
0x2d10   :  { %v2457_v17 = vpop.f32.mrf.mxu0 }
0x2d11   :  { %v3306_v30 = vpop.eup %3305 }
0x2d12   :  { %2481 = vrot.lane.b32.xlu2 %v3306_v30, %s3571_s4 }
0x2d13   :  { %v3308_v20 = vpop.eup %3307 }
0x2d14   :  { %v2462_v2 = vadd.f32 1.0, %v3308_v20 }
0x2d16   :  { %3309 = vrcp.f32 %v2462_v2  ;;  %v2474_v25 = vand.u32 2147483648, %v2462_v2  ;;  %vm2468_vm9 = vweird.f32 %v2462_v2  ;;  %v2472_v36 = vand.u32 2147483647, %v2462_v2 }
0x2d18   :  { %v2475_v14 = vor.u32 1.1754944e-38, %v2474_v25  ;;  %vm2473_vm12 = vcmp.eq.f32.partialorder %v2472_v36, 8.507059e+37 }
0x2d1c   :  { %v3310_v7 = vpop.eup %3309 }
0x2d1d   :  { %v2464_v60 = vmul.f32 %v3310_v7, %v2462_v2  ;;  %vm2469_vm14 = vweird.f32 %v3310_v7 }
0x2d1e   :  { %vm2470_vm10 = vmor %vm2468_vm9, %vm2469_vm14 }
0x2d1f   :  { %v2465_v26 = vsub.f32 1.0, %v2464_v60  ;;  %v2592_v60 = vrot.slane %v4545_v50, 4 }
0x2d21   :  { %v2466_v55 = vmul.f32 %v3310_v7, %v2465_v26 }
0x2d23   :  { %v2467_v43 = vadd.f32 %v3310_v7, %v2466_v55 }
0x2d25   :  { %v2471_v61 = vsel %vm2470_vm10, %v3310_v7, %v2467_v43 }
0x2d26   :  { %v2476_v15 = vsel %vm2473_vm12, %v2475_v14, %v2471_v61 }
0x2d27   :  { %v2479_v11 = vmul.f32 %v2476_v15, %v4513_v10 }
0x2d6c   :  { %v2482_v21 = vpop.permute.xlu2 %2481 }
0x2d6d   :  { %v2484_v33 = vmul.f32 %v2482_v21, %v2476_v15 }
0x2d6f   :  { %2486 = vrot.lane.b32.xlu0 %v2484_v33, %s3571_s4 }
0x2d77   :  { %2549 = vrot.lane.b32.xlu0 %v2547_v39, %s3564_s2 }
0x2de1   :  { %v2487_v12 = vpop.permute.xlu0 %2486 }
0x2de2   :  { %v4562_v31 = vadd.f32 %v2487_v12, %v2479_v11 }
0x2de4   :  { %3311 = vtanh.f32 %v4562_v31 }
0x2de9   :  { %v2550_v40 = vpop.permute.xlu0 %2549 }
0x2dea   :  { %v3312_v29 = vpop.eup %3311  ;;  %3043 = vmatmul.msk.bf16.vlgmr.msrb.gmra.mxu2 %vm286_vm7, %v2550_v40 }
0x2deb   :  { %2492 = vrot.lane.b32.xlu1 %v3312_v29, %s3571_s4 }
0x2e5d   :  { %v2493_v48 = vpop.permute.xlu1 %2492 }
0x2e5e   :  { %v2495_v45 = vmul.f32 %v2493_v48, %v2476_v15 }
0x2e60   :  { %2497 = vrot.lane.b32.xlu2 %v2495_v45, %s3564_s2  ;;  %v2523_v13 = vpack.c.bf16 %v2495_v45, %v2495_v45  ;;  %v2615_v7 = vrot.slane %v2495_v45, 4 }
0x2e62   :  { %2525 = vrot.lane.b32.xlu1 %v2523_v13, %s3564_s2 }
0x2e6d   :  { %v2563_v44 = vpop.f32.mrf.mxu2 }
0x2e6e   :  { %v2568_v46 = vrot.slane %v2563_v44, 4 }
0x2e75   :  { %v2565_v10 = vpop.f32.mrf.mxu2 }
0x2eba   :  { %v2498_v6 = vpop.permute.xlu2 %2497 }
0x2ebb   :  { %3041 = vmatmul.msk.f32.vlgmr.msrb.gmra.mxu1 %vm286_vm7, %v2498_v6 }
0x2ebc   :  { %2739 = vmatpush.bf16.msrb.mxu1 %v4479_v37  ;;  %v4583_v37 = vld [vmem:[%s4702_s14] ss:$0 sm:$0xff] }
0x2ec0   :  { %2740 = vmatpush.bf16.msrb.mxu1 %v4482_v28 }
0x2ed4   :  { %v2526_v58 = vpop.permute.xlu1 %2525 }
0x2ed5   :  { %3042 = vmatmul.msk.bf16.vlgmr.msra.gmra.mxu1 %vm286_vm7, %v2526_v58 }
0x2f38   :  { %v2518_v19 = vpop.f32.mrf.mxu1 }
0x2f39   :  { %v2519_v62 = vadd.f32 %v4576_v63, %v2518_v19 }
0x2f3b   :  { %2522 = vst.msk [vmem:[#allocation13 + $0x14] sm:$0xf] %vm1630_vm0, %v2519_v62 }
0x2f52   :  { %v2539_v47 = vpop.f32.mrf.mxu1 }
0x2f53   :  { %v2540_v28 = vadd.f32 %v4583_v37, %v2539_v47 }
0x2f55   :  { %v2544_v8 = vrot.slane %v2540_v28, 4 }
0x2f57   :  { %v2546_v24 = vsel %vm2370_vm1, %v3933_v23, %v2544_v8 }
0x2f58   :  { %v2570_v51 = vadd.f32 %v2568_v46, %v2546_v24 }
0x2f5a   :  { %3313 = vtanh.f32 %v2570_v51  ;;  %v2541_v9 = vpop.f32.mrf.mxu1  ;;  %v3044_v32 = vmul.f32 -1.442695, %v2570_v51 }
0x2f5c   :  { %3315 = vpow2.f32 %v3044_v32 }
0x2f60   :  { %v3314_v53 = vpop.eup %3313 }
0x2f61   :  { %2596 = vrot.lane.b32.xlu2 %v3314_v53, %s3571_s4 }
0x2f62   :  { %v3316_v35 = vpop.eup %3315 }
0x2f63   :  { %v2574_v57 = vadd.f32 1.0, %v3316_v35 }
0x2f65   :  { %3317 = vrcp.f32 %v2574_v57  ;;  %v2586_v17 = vand.u32 2147483648, %v2574_v57  ;;  %vm2580_vm14 = vweird.f32 %v2574_v57  ;;  %v2584_v23 = vand.u32 2147483647, %v2574_v57 }
0x2f67   :  { %v2587_v30 = vor.u32 1.1754944e-38, %v2586_v17  ;;  %vm2585_vm9 = vcmp.eq.f32.partialorder %v2584_v23, 8.507059e+37 }
0x2f6b   :  { %v3318_v52 = vpop.eup %3317 }
0x2f6c   :  { %v2576_v27 = vmul.f32 %v3318_v52, %v2574_v57  ;;  %vm2581_vm13 = vweird.f32 %v3318_v52 }
0x2f6d   :  { %vm2582_vm1 = vmor %vm2580_vm14, %vm2581_vm13 }
0x2f6e   :  { %v2577_v42 = vsub.f32 1.0, %v2576_v27 }
0x2f70   :  { %v2578_v0 = vmul.f32 %v3318_v52, %v2577_v42 }
0x2f72   :  { %v2579_v5 = vadd.f32 %v3318_v52, %v2578_v0 }
0x2f74   :  { %v2583_v1 = vsel %vm2582_vm1, %v3318_v52, %v2579_v5 }
0x2f75   :  { %v2588_v20 = vsel %vm2585_vm9, %v2587_v30, %v2583_v1 }
0x2f76   :  { %v2594_v26 = vmul.f32 %v2592_v60, %v2588_v20 }
0x2fbb   :  { %v2597_v18 = vpop.permute.xlu2 %2596 }
0x2fbc   :  { %v2599_v2 = vmul.f32 %v2597_v18, %v2588_v20  ;;  %v214_v18 = vld [vmem:[%s4714_s27 + $0x18] sm:$0xff] }
0x2fbd   :  { %vm2723_vm1 = vcmp.gt.f32.partialorder %v214_v18, 0.5  ;;  %v1285_v18 = vsel %vm1154_vm15, %v4167_v59, 0.0  ;;  %v575_v59 = vsel %vm435_vm3, %v3878_v4, 0.0 }
0x2fbe   :  { %2601 = vrot.lane.b32.xlu0 %v2599_v2, %s3571_s4 }
0x2fc6   :  { %2616 = vrot.lane.b32.xlu0 %v2615_v7, %s3572_s6 }
0x3030   :  { %v2602_v55 = vpop.permute.xlu0 %2601 }
0x3031   :  { %v4593_v43 = vadd.f32 %v2602_v55, %v2594_v26 }
0x3033   :  { %3319 = vtanh.f32 %v4593_v43 }
0x3038   :  { %v2617_v14 = vpop.permute.xlu0 %2616 }
0x3039   :  { %v3320_v25 = vpop.eup %3319 }
0x303a   :  { %2607 = vrot.lane.b32.xlu1 %v3320_v25, %s3571_s4 }
0x30ac   :  { %v2608_v36 = vpop.permute.xlu1 %2607 }
0x30ad   :  { %v2610_v61 = vmul.f32 %v2608_v36, %v2588_v20 }
0x30af   :  { %2612 = vrot.lane.b32.xlu2 %v2610_v61, %s3564_s2  ;;  %v2725_v35 = vpack.c.bf16 %v2610_v61, %v2610_v61 }
0x30b1   :  { %v2727_v57 = vrot.slane %v2725_v35, 2 }
0x3109   :  { %v2613_v21 = vpop.permute.xlu2 %2612 }
0x310a   :  { %v2619_v15 = vsel %vm286_vm7, %v2613_v21, %v2617_v14 }
0x310b   :  { %v2620_v33 = vpack.c.bf16 %v2619_v15, %v2619_v15 }
0x310d   :  { %v2622_v39 = vrot.slane %v2620_v33, 2 }
0x310f   :  { %3045 = vmatmul.msk.bf16.vlgmr.msra.gmra.mxu3 %vm373_vm8, %v2622_v39 }
0x3192   :  { %v2635_v50 = vpop.f32.mrf.mxu3 }
0x3193   :  { %v2636_v11 = vadd.f32 %v4555_v22, %v2635_v50 }
0x3195   :  { %3321 = vtanh.f32 %v2636_v11  ;;  %v3046_v29 = vmul.f32 -1.442695, %v2636_v11 }
0x3197   :  { %3323 = vpow2.f32 %v3046_v29 }
0x319a   :  { %v2637_v12 = vpop.f32.mrf.mxu3 }
0x319b   :  { %v3322_v40 = vpop.eup %3321 }
0x319c   :  { %2661 = vrot.lane.b32.xlu1 %v3322_v40, %s3571_s4 }
0x319d   :  { %v3324_v48 = vpop.eup %3323 }
0x319e   :  { %v2642_v45 = vadd.f32 1.0, %v3324_v48  ;;  %v2768_v48 = vrot.slane %v4593_v43, 4 }
0x31a0   :  { %3325 = vrcp.f32 %v2642_v45  ;;  %v2654_v19 = vand.u32 2147483648, %v2642_v45  ;;  %vm2648_vm12 = vweird.f32 %v2642_v45  ;;  %v2652_v62 = vand.u32 2147483647, %v2642_v45 }
0x31a2   :  { %v2655_v28 = vor.u32 1.1754944e-38, %v2654_v19  ;;  %vm2653_vm14 = vcmp.eq.f32.partialorder %v2652_v62, 8.507059e+37 }
0x31a6   :  { %v3326_v13 = vpop.eup %3325 }
0x31a7   :  { %v2644_v44 = vmul.f32 %v3326_v13, %v2642_v45  ;;  %vm2649_vm10 = vweird.f32 %v3326_v13 }
0x31a8   :  { %vm2650_vm13 = vmor %vm2648_vm12, %vm2649_vm10 }
0x31a9   :  { %v2645_v10 = vsub.f32 1.0, %v2644_v44 }
0x31ab   :  { %v2646_v6 = vmul.f32 %v3326_v13, %v2645_v10 }
0x31ad   :  { %v2647_v58 = vadd.f32 %v3326_v13, %v2646_v6 }
0x31af   :  { %v2651_v47 = vsel %vm2650_vm13, %v3326_v13, %v2647_v58 }
0x31b0   :  { %v2656_v46 = vsel %vm2653_vm14, %v2655_v28, %v2651_v47 }
0x31b1   :  { %v2659_v51 = vmul.f32 %v2656_v46, %v4562_v31 }
0x320e   :  { %v2662_v8 = vpop.permute.xlu1 %2661 }
0x320f   :  { %v2664_v24 = vmul.f32 %v2662_v8, %v2656_v46 }
0x3211   :  { %2666 = vrot.lane.b32.xlu2 %v2664_v24, %s3571_s4 }
0x326b   :  { %v2667_v9 = vpop.permute.xlu2 %2666 }
0x326c   :  { %v4604_v53 = vadd.f32 %v2667_v9, %v2659_v51 }
0x326e   :  { %3327 = vtanh.f32 %v4604_v53 }
0x3274   :  { %v3328_v32 = vpop.eup %3327 }
0x3275   :  { %2672 = vrot.lane.b32.xlu0 %v3328_v32, %s3571_s4 }
0x327d   :  { %2728 = vrot.lane.b32.xlu0 %v2727_v57, %s3564_s2 }
0x32e7   :  { %v2673_v52 = vpop.permute.xlu0 %2672 }
0x32e8   :  { %v2675_v27 = vmul.f32 %v2673_v52, %v2656_v46 }
0x32ea   :  { %2677 = vrot.lane.b32.xlu1 %v2675_v27, %s3564_s2  ;;  %v2703_v42 = vpack.c.bf16 %v2675_v27, %v2675_v27 }
0x32ec   :  { %2705 = vrot.lane.b32.xlu2 %v2703_v42, %s3564_s2 }
0x32ef   :  { %v2729_v31 = vpop.permute.xlu0 %2728 }
0x32f0   :  { %3049 = vmatmul.msk.bf16.vlgmr.msrb.gmra.mxu1 %vm286_vm7, %v2729_v31 }
0x3346   :  { %v2706_v5 = vpop.permute.xlu2 %2705 }
0x335c   :  { %v2678_v0 = vpop.permute.xlu1 %2677 }
0x335d   :  { %3047 = vmatmul.msk.f32.vlgmr.msra.gmra.mxu0 %vm286_vm7, %v2678_v0 }
0x3365   :  { %3048 = vmatmul.msk.bf16.vlgmr.msrb.gmra.mxu0 %vm286_vm7, %v2706_v5 }
0x336d   :  { %v2742_v17 = vpop.f32.mrf.mxu1 }
0x3375   :  { %v2744_v23 = vpop.f32.mrf.mxu1 }
0x33da   :  { %v2698_v1 = vpop.f32.mrf.mxu0 }
0x33db   :  { %v2699_v30 = vadd.f32 %v4576_v63, %v2698_v1 }
0x33dd   :  { %2702 = vst.msk [vmem:[#allocation13 + $0x18] sm:$0xf] %vm1630_vm0, %v2699_v30  ;;  %v861_v30 = vsel %vm720_vm11, %v4021_v49, 0.0 }
0x33e2   :  { %v2719_v20 = vpop.f32.mrf.mxu0 }
0x33e3   :  { %v2720_v2 = vadd.f32 %v4583_v37, %v2719_v20 }
0x33e5   :  { %v2724_v7 = vsel %vm2723_vm1, %v4196_v16, %v2720_v2 }
0x33e6   :  { %v2746_v60 = vadd.f32 %v2742_v17, %v2724_v7 }
0x33e8   :  { %3329 = vtanh.f32 %v2746_v60  ;;  %v3050_v25 = vmul.f32 -1.442695, %v2746_v60 }
0x33ea   :  { %v2721_v26 = vpop.f32.mrf.mxu0  ;;  %3331 = vpow2.f32 %v3050_v25 }
0x33eb   :  { %v999_v26 = vsel %vm868_vm5, %v4065_v56, 0.0 }
0x33ee   :  { %v3330_v55 = vpop.eup %3329 }
0x33ef   :  { %2772 = vrot.lane.b32.xlu1 %v3330_v55, %s3571_s4  ;;  %v1433_v55 = vsel %vm1292_vm4, %v4226_v3, 0.0  ;;  %v1147_v3 = vsel %vm1006_vm2, %v4123_v41, 0.0 }
0x33f0   :  { %v3332_v36 = vpop.eup %3331 }
0x33f1   :  { %v2750_v61 = vadd.f32 1.0, %v3332_v36 }
0x33f3   :  { %3333 = vrcp.f32 %v2750_v61  ;;  %v2762_v37 = vand.u32 2147483648, %v2750_v61  ;;  %vm2756_vm10 = vweird.f32 %v2750_v61  ;;  %v2760_v16 = vand.u32 2147483647, %v2750_v61 }
0x33f5   :  { %v2763_v11 = vor.u32 1.1754944e-38, %v2762_v37  ;;  %vm2761_vm13 = vcmp.eq.f32.partialorder %v2760_v16, 8.507059e+37 }
0x33f9   :  { %v3334_v14 = vpop.eup %3333 }
0x33fa   :  { %v2752_v21 = vmul.f32 %v3334_v14, %v2750_v61  ;;  %vm2757_vm9 = vweird.f32 %v3334_v14  ;;  %v713_v61 = vsel %vm582_vm6, %v3960_v34, 0.0 }
0x33fb   :  { %vm2758_vm12 = vmor %vm2756_vm10, %vm2757_vm9  ;;  %vm433_vm10 = vcmask 257024  }
0x33fc   :  { %v2753_v15 = vsub.f32 1.0, %v2752_v21 }
0x33fe   :  { %v2754_v33 = vmul.f32 %v3334_v14, %v2753_v15 }
0x3400   :  { %v2755_v39 = vadd.f32 %v3334_v14, %v2754_v33 }
0x3402   :  { %v2759_v50 = vsel %vm2758_vm12, %v3334_v14, %v2755_v39 }
0x3403   :  { %v2764_v40 = vsel %vm2761_vm13, %v2763_v11, %v2759_v50 }
0x3404   :  { %v2770_v45 = vmul.f32 %v2768_v48, %v2764_v40 }
0x3461   :  { %v2773_v12 = vpop.permute.xlu1 %2772 }
0x3462   :  { %v2775_v29 = vmul.f32 %v2773_v12, %v2764_v40 }
0x3464   :  { %2777 = vrot.lane.b32.xlu2 %v2775_v29, %s3571_s4 }
0x346c   :  { %2791 = vrot.lane.b32.xlu2 %v2675_v27, %s3572_s6 }
0x34be   :  { %v2778_v13 = vpop.permute.xlu2 %2777 }
0x34bf   :  { %v2780_v44 = vadd.f32 %v2778_v13, %v2770_v45 }
0x34c1   :  { %3335 = vtanh.f32 %v2780_v44 }
0x34c6   :  { %v2792_v19 = vpop.permute.xlu2 %2791 }
0x34c7   :  { %v3336_v10 = vpop.eup %3335 }
0x34c8   :  { %2783 = vrot.lane.b32.xlu0 %v3336_v10, %s3571_s4 }
0x353a   :  { %v2784_v6 = vpop.permute.xlu0 %2783 }
0x353b   :  { %v2786_v58 = vmul.f32 %v2784_v6, %v2764_v40 }
0x353d   :  { %2788 = vrot.lane.b32.xlu1 %v2786_v58, %s3564_s2 }
0x35af   :  { %v2789_v62 = vpop.permute.xlu1 %2788 }
0x35b0   :  { %v2794_v47 = vsel %vm286_vm7, %v2789_v62, %v2792_v19 }
0x35b1   :  { %v2795_v28 = vpack.c.bf16 %v2794_v47, %v2794_v47 }
0x35b3   :  { %3051 = vmatmul.msk.bf16.vlgmr.msra.gmra.mxu2 %vm373_vm8, %v2795_v28 }
0x3636   :  { %v2808_v8 = vpop.f32.mrf.mxu2 }
0x3637   :  { %v2809_v43 = vadd.f32 %v4555_v22, %v2808_v8 }
0x3639   :  { %3337 = vtanh.f32 %v2809_v43  ;;  %v3052_v51 = vmul.f32 -1.442695, %v2809_v43 }
0x363b   :  { %3339 = vpow2.f32 %v3052_v51 }
0x363e   :  { %v2810_v46 = vpop.f32.mrf.mxu2 }
0x363f   :  { %v3338_v24 = vpop.eup %3337 }
0x3640   :  { %2834 = vrot.lane.b32.xlu0 %v3338_v24, %s3571_s4 }
0x3641   :  { %v3340_v9 = vpop.eup %3339 }
0x3642   :  { %v2815_v32 = vadd.f32 1.0, %v3340_v9 }
0x3644   :  { %3341 = vrcp.f32 %v2815_v32  ;;  %v2827_v31 = vand.u32 2147483648, %v2815_v32  ;;  %vm2821_vm8 = vweird.f32 %v2815_v32  ;;  %v2825_v0 = vand.u32 2147483647, %v2815_v32 }
0x3646   :  { %v2828_v5 = vor.u32 1.1754944e-38, %v2827_v31  ;;  %vm2826_vm9 = vcmp.eq.f32.partialorder %v2825_v0, 8.507059e+37 }
0x364a   :  { %v3342_v35 = vpop.eup %3341 }
0x364b   :  { %v2817_v57 = vmul.f32 %v3342_v35, %v2815_v32  ;;  %vm2822_vm14 = vweird.f32 %v3342_v35 }
0x364c   :  { %vm2823_vm1 = vmor %vm2821_vm8, %vm2822_vm14 }
0x364d   :  { %v2818_v52 = vsub.f32 1.0, %v2817_v57 }
0x364f   :  { %v2819_v27 = vmul.f32 %v3342_v35, %v2818_v52 }
0x3651   :  { %v2820_v42 = vadd.f32 %v3342_v35, %v2819_v27 }
0x3653   :  { %v2824_v22 = vsel %vm2823_vm1, %v3342_v35, %v2820_v42 }
0x3654   :  { %v2829_v23 = vsel %vm2826_vm9, %v2828_v5, %v2824_v22 }
0x3655   :  { %v2832_v20 = vmul.f32 %v2829_v23, %v4604_v53 }
0x36b2   :  { %v2835_v17 = vpop.permute.xlu0 %2834 }
0x36b3   :  { %v2837_v1 = vmul.f32 %v2835_v17, %v2829_v23 }
0x36b5   :  { %2839 = vrot.lane.b32.xlu1 %v2837_v1, %s3571_s4 }
0x36bd   :  { %430 = vrot.lane.b32.xlu1 %v3820_v54, %s3564_s2 }
0x36c5   :  { %863 = vrot.lane.b32.xlu1 %v861_v30, %s3564_s2 }
0x36cd   :  { %1287 = vrot.lane.b32.xlu1 %v1285_v18, %s3564_s2 }
0x3727   :  { %v2840_v2 = vpop.permute.xlu1 %2839 }
0x3728   :  { %v2842_v7 = vadd.f32 %v2840_v2, %v2832_v20 }
0x372a   :  { %3343 = vtanh.f32 %v2842_v7 }
0x372f   :  { %v431_v60 = vpop.permute.xlu1 %430 }
0x3730   :  { %v3344_v54 = vpop.eup %3343  ;;  %434 = vst.msk [vmem:[#allocation14] sm:$0xf] %vm433_vm10, %v431_v60 }
0x3731   :  { %2845 = vrot.lane.b32.xlu2 %v3344_v54, %s3571_s4  ;;  %s3573_s4 = smov [#allocation14]  }
0x3732   :  { %s2893_s6 = sshll.u32 %s3573_s4, 4  ;;  %s2894_s6 = int_to_ptr.vmem [resolvable:$true] %s2893_s6 }
0x3737   :  { %v864_v49 = vpop.permute.xlu1 %863 }
0x3738   :  { %867 = vst.msk [vmem:[#allocation14 + $0xc] sm:$0xf] %vm433_vm10, %v864_v49 }
0x3739   :  { %577 = vrot.lane.b32.xlu2 %v575_v59, %s3564_s2 }
0x373f   :  { %v1288_v53 = vpop.permute.xlu1 %1287 }
0x3740   :  { %1291 = vst.msk [vmem:[#allocation14 + $0x18] sm:$0xf] %vm433_vm10, %v1288_v53 }
0x3741   :  { %1001 = vrot.lane.b32.xlu2 %v999_v26, %s3564_s2 }
0x3749   :  { %1435 = vrot.lane.b32.xlu2 %v1433_v55, %s3564_s2 }
0x378b   :  { %v2846_v25 = vpop.permute.xlu2 %2845 }
0x378c   :  { %v2848_v36 = vmul.f32 %v2846_v25, %v2829_v23 }
0x378e   :  { %2850 = vrot.lane.b32.xlu0 %v2848_v36, %s3564_s2 }
0x3793   :  { %v578_v4 = vpop.permute.xlu2 %577 }
0x3794   :  { %581 = vst.msk [vmem:[#allocation14 + $0x4] sm:$0xf] %vm433_vm10, %v578_v4 }
0x3796   :  { %715 = vrot.lane.b32.xlu0 %v713_v61, %s3564_s2 }
0x379b   :  { %v1002_v56 = vpop.permute.xlu2 %1001 }
0x379c   :  { %1005 = vst.msk [vmem:[#allocation14 + $0x10] sm:$0xf] %vm433_vm10, %v1002_v56 }
0x379e   :  { %1149 = vrot.lane.b32.xlu0 %v1147_v3, %s3564_s2 }
0x37a3   :  { %v1436_v14 = vpop.permute.xlu2 %1435 }
0x37a4   :  { %1439 = vst.msk [vmem:[#allocation14 + $0x1c] sm:$0xf] %vm433_vm10, %v1436_v14 }
0x3800   :  { %v2851_v21 = vpop.permute.xlu0 %2850 }
0x3801   :  { %3053 = vmatmul.msk.f32.vlgmr.msrb.gmra.mxu3 %vm286_vm7, %v2851_v21 }
0x3808   :  { %v716_v15 = vpop.permute.xlu0 %715 }
0x3809   :  { %719 = vst.msk [vmem:[#allocation14 + $0x8] sm:$0xf] %vm433_vm10, %v716_v15 }
0x3810   :  { %v1150_v38 = vpop.permute.xlu0 %1149 }
0x3811   :  { %1153 = vst.msk [vmem:[#allocation14 + $0x14] sm:$0xf] %vm433_vm10, %v1150_v38 }
0x3812   :  { %2901 = dma.vmem_to_hbm [thread:$0]  %s2894_s6, 512, %s2896_s21, [#allocation15], %s3564_s2, %s3564_s2, %s3565_s23  }
0x3884   :  { %v2871_v34 = vpop.f32.mrf.mxu3 }
0x3885   :  { %v2872_v41 = vadd.f32 %v4576_v63, %v2871_v34 }
0x3887   :  { %2875 = vst.msk [vmem:[#allocation13 + $0x1c] sm:$0xf] %vm1630_vm0, %v2872_v41 }
0x3888   :  { %2888 = dma.vmem_to_hbm [thread:$0]  %s2881_s5, 512, %s2883_s7, [#allocation4], %s3564_s2, %s3564_s2, %s3565_s23  }
0x3889   :  { %3558 = dma.done.wait [#allocation4], 512  }
0x388a   :  { %3559 = vsyncadd [#allocation4], 4294966784 }
0x388b   :  { %3560 = dma.done.wait [#allocation15], 512  }
0x388c   :  { %3561 = vsyncadd [#allocation15], 4294966784 }
0x388d   :  { %2910 = vsyncpa [#allocation3], 1 }
0x388e   :  { %2911 = vsyncpa [#allocation6], 1 }
0x388f   :  { %2912 = vsyncpa [#allocation9], 1 }
0x3890   :  { %2913 = vsyncpa [#allocation12], 1 }
0x3891   :  { %2914 = vsyncpa [#allocation4], 1 }
0x3892   :  { %2915 = vsyncpa [#allocation15], 1 }

</bundles_post_ra>
